<compile_context>
chip_gen: v7x
topology: tpu7x:2x2x1
jax: 0.10.0
libtpu: 0.0.40
codegen_flags: <defaults>
</compile_context>

<pallas_src>
import numpy as np

import jax
import jax.numpy as jnp
from jax.experimental import pallas as pl
from jax.experimental.pallas import tpu as pltpu

BN_EPS = 1e-5


# ----------------------------- in-kernel helpers ----------------------------

def _bn_act(y, sc_ref, bi_ref, relu):
    # y: (M, C), scale/bias refs: (1, C)
    y = y * sc_ref[...] + bi_ref[...]
    return jnp.maximum(y, 0.0) if relu else y


def _conv3x3(Sall_ref, x, w_ref):
    """Full 3x3 conv via one stacked gather-matmul + 9 channel matmuls.

    Sall_ref: (9*Mo, Mi) 0/1 spatial gather (pad/stride folded in)
    x       : (Mi, Cin)  flattened NHWC activation of one sample
    w_ref   : (9, Cin, Cout)
    returns (Mo, Cout) float32
    """
    mo = Sall_ref.shape[0] // 9
    cout = w_ref.shape[-1]
    taps = jnp.dot(Sall_ref[...], x, preferred_element_type=jnp.float32)   # (9*Mo, Cin)
    acc = jnp.zeros((mo, cout), jnp.float32)
    for kk in range(9):
        acc = acc + jnp.dot(taps[kk * mo:(kk + 1) * mo, :], w_ref[kk],
                            preferred_element_type=jnp.float32)
    return acc


def _dw3x3(Sall_ref, x, w_ref):
    """Depthwise 3x3 conv: one stacked gather-matmul + unrolled 9-term MAC.

    Sall_ref: (9*Mo, Mi), x: (Mi, C), w_ref: (9, 1, C) -> (Mo, C) float32
    """
    mo = Sall_ref.shape[0] // 9
    c = x.shape[-1]
    taps = jnp.dot(Sall_ref[...], x, preferred_element_type=jnp.float32)   # (9*Mo, C)
    acc = jnp.zeros((mo, c), jnp.float32)
    for kk in range(9):
        acc = acc + taps[kk * mo:(kk + 1) * mo, :] * w_ref[kk]
    return acc


def _pw(x, w_ref):
    # 1x1 conv = channel matmul. x: (M, Cin), w: (Cin, Cout)
    return jnp.dot(x, w_ref[...], preferred_element_type=jnp.float32)


# ------------------------------ fused kernel --------------------------------

def _childnet_fused_kernel(*refs):
    (x_ref,
     stem_S_ref, stem_w_ref, stem_sc_ref, stem_bi_ref,
     b1_S_ref, b1_dww_ref, b1_dws_ref, b1_dwb_ref,
     b1_pww_ref, b1_pws_ref, b1_pwb_ref,
     b2_expw_ref, b2_exps_ref, b2_expb_ref,
     b2_S_ref, b2_dww_ref, b2_dws_ref, b2_dwb_ref,
     b2_pjw_ref, b2_pjs_ref, b2_pjb_ref,
     b3_expw_ref, b3_exps_ref, b3_expb_ref,
     b3_S_ref, b3_dww_ref, b3_dws_ref, b3_dwb_ref,
     b3_pjw_ref, b3_pjs_ref, b3_pjb_ref,
     o_ref) = refs

    x = x_ref[0]                                                  # (H*W, Cin)

    # conv_stem -> bn1 -> act1
    h = _bn_act(_conv3x3(stem_S_ref, x, stem_w_ref),
                stem_sc_ref, stem_bi_ref, True)                   # (H1*W1, 16)

    # block1: DepthwiseSeparableConv (+ residual)
    y = _bn_act(_dw3x3(b1_S_ref, h, b1_dww_ref), b1_dws_ref, b1_dwb_ref, True)
    h = _bn_act(_pw(y, b1_pww_ref), b1_pws_ref, b1_pwb_ref, False) + h

    # block2: InvertedResidual, stride 2, no residual
    y = _bn_act(_pw(h, b2_expw_ref), b2_exps_ref, b2_expb_ref, True)
    y = _bn_act(_dw3x3(b2_S_ref, y, b2_dww_ref), b2_dws_ref, b2_dwb_ref, True)
    h = _bn_act(_pw(y, b2_pjw_ref), b2_pjs_ref, b2_pjb_ref, False)   # (H2*W2, 24)

    # block3: InvertedResidual, stride 1, residual
    y = _bn_act(_pw(h, b3_expw_ref), b3_exps_ref, b3_expb_ref, True)
    y = _bn_act(_dw3x3(b3_S_ref, y, b3_dww_ref), b3_dws_ref, b3_dwb_ref, True)
    h = _bn_act(_pw(y, b3_pjw_ref), b3_pjs_ref, b3_pjb_ref, False) + h

    o_ref[0] = h.astype(o_ref.dtype)


# ------------------------- gather-matrix construction -----------------------

def _gather_mats(H, W, stride):
    """Stacked 0/1 matrix S of shape (9*Ho*Wo, H*W) s.t. the kk-th block row
    group, S[kk*Ho*Wo:(kk+1)*Ho*Wo] @ x_flat, extracts the (kh, kw) tap of a
    3x3 conv with pad=1 and the given stride (zeros at the padded border)."""
    Ho = (H + 2 - 3) // stride + 1
    Wo = (W + 2 - 3) // stride + 1
    S = np.zeros((9, Ho * Wo, H * W), np.float32)
    for kh in range(3):
        for kw in range(3):
            kk = kh * 3 + kw
            for ho in range(Ho):
                hi = ho * stride + kh - 1
                if not (0 <= hi < H):
                    continue
                for wo in range(Wo):
                    wi = wo * stride + kw - 1
                    if 0 <= wi < W:
                        S[kk, ho * Wo + wo, hi * W + wi] = 1.0
    return jnp.asarray(S.reshape(9 * Ho * Wo, H * W))


# --------------------------- parameter construction -------------------------

def _make_bn(key, c):
    k1, k2, k3, k4 = jax.random.split(key, 4)
    gamma = jax.random.uniform(k1, (c,), minval=0.5, maxval=1.5)
    beta = jax.random.normal(k2, (c,)) * 0.1
    mean = jax.random.normal(k3, (c,)) * 0.1
    var = jax.random.uniform(k4, (c,), minval=0.5, maxval=1.5)
    scale = gamma / jnp.sqrt(var + BN_EPS)
    bias = beta - mean * scale
    return (scale.reshape(1, c).astype(jnp.float32),
            bias.reshape(1, c).astype(jnp.float32))


def _make_full_conv(key, cin, cout):
    kw_, kb_ = jax.random.split(key)
    w = (jax.random.normal(kw_, (9, cin, cout)) * 0.1).astype(jnp.float32)
    sc, bi = _make_bn(kb_, cout)
    return w, sc, bi


def _make_pw_conv(key, cin, cout):
    kw_, kb_ = jax.random.split(key)
    w = (jax.random.normal(kw_, (cin, cout)) * 0.1).astype(jnp.float32)
    sc, bi = _make_bn(kb_, cout)
    return w, sc, bi


def _make_dw_conv(key, c):
    kw_, kb_ = jax.random.split(key)
    w = (jax.random.normal(kw_, (9, 1, c)) * 0.1).astype(jnp.float32)
    sc, bi = _make_bn(kb_, c)
    return w, sc, bi


def make_params(key, in_chans=3, stem_size=16):
    keys = jax.random.split(key, 9)
    c1, c2, c3 = 16, 24, 24   # per-stage output channels
    e = 4                     # expansion ratio for inverted residual blocks

    sw, ss, sb = _make_full_conv(keys[0], in_chans, stem_size)
    d1w, d1s, d1b = _make_dw_conv(keys[1], stem_size)
    p1w, p1s, p1b = _make_pw_conv(keys[2], stem_size, c1)
    e2w, e2s, e2b = _make_pw_conv(keys[3], c1, c1 * e)
    d2w, d2s, d2b = _make_dw_conv(keys[4], c1 * e)
    j2w, j2s, j2b = _make_pw_conv(keys[5], c1 * e, c2)
    e3w, e3s, e3b = _make_pw_conv(keys[6], c2, c2 * e)
    d3w, d3s, d3b = _make_dw_conv(keys[7], c2 * e)
    j3w, j3s, j3b = _make_pw_conv(keys[8], c2 * e, c3)

    return {
        "stem": {"w": sw, "scale": ss, "bias": sb},
        "b1": {"dw_w": d1w, "dw_scale": d1s, "dw_bias": d1b,
               "pw_w": p1w, "pw_scale": p1s, "pw_bias": p1b},
        "b2": {"exp_w": e2w, "exp_scale": e2s, "exp_bias": e2b,
               "dw_w": d2w, "dw_scale": d2s, "dw_bias": d2b,
               "proj_w": j2w, "proj_scale": j2s, "proj_bias": j2b},
        "b3": {"exp_w": e3w, "exp_scale": e3s, "exp_bias": e3b,
               "dw_w": d3w, "dw_scale": d3s, "dw_bias": d3b,
               "proj_w": j3w, "proj_scale": j3s, "proj_bias": j3b},
    }


# -------------------------------- forward -----------------------------------

def _full_spec(shape):
    nd = len(shape)
    return pl.BlockSpec(tuple(shape), lambda n, _nd=nd: (0,) * _nd)


def childnet_fcn_forward(x_nchw, params):
    # PyTorch interface is NCHW; compute uses flattened NHWC (channels on lanes).
    N, Cin, H, W = x_nchw.shape
    x = jnp.transpose(x_nchw, (0, 2, 3, 1)).reshape(N, H * W, Cin).astype(jnp.float32)

    H1 = (H + 2 - 3) // 2 + 1
    W1 = (W + 2 - 3) // 2 + 1
    H2 = (H1 + 2 - 3) // 2 + 1
    W2 = (W1 + 2 - 3) // 2 + 1

    # Spatial gather matrices (trace-time constants; the MXU does the im2col).
    S_stem = _gather_mats(H, W, 2)
    S_b1 = _gather_mats(H1, W1, 1)
    S_b2 = _gather_mats(H1, W1, 2)
    S_b3 = _gather_mats(H2, W2, 1)

    p = params
    c_out = p["b3"]["proj_w"].shape[1]

    arrays = [
        x,
        S_stem, p["stem"]["w"], p["stem"]["scale"], p["stem"]["bias"],
        S_b1, p["b1"]["dw_w"], p["b1"]["dw_scale"], p["b1"]["dw_bias"],
        p["b1"]["pw_w"], p["b1"]["pw_scale"], p["b1"]["pw_bias"],
        p["b2"]["exp_w"], p["b2"]["exp_scale"], p["b2"]["exp_bias"],
        S_b2, p["b2"]["dw_w"], p["b2"]["dw_scale"], p["b2"]["dw_bias"],
        p["b2"]["proj_w"], p["b2"]["proj_scale"], p["b2"]["proj_bias"],
        p["b3"]["exp_w"], p["b3"]["exp_scale"], p["b3"]["exp_bias"],
        S_b3, p["b3"]["dw_w"], p["b3"]["dw_scale"], p["b3"]["dw_bias"],
        p["b3"]["proj_w"], p["b3"]["proj_scale"], p["b3"]["proj_bias"],
    ]

    in_specs = ([pl.BlockSpec((1, H * W, Cin), lambda n: (n, 0, 0))] +
                [_full_spec(a.shape) for a in arrays[1:]])

    out = pl.pallas_call(
        _childnet_fused_kernel,
        out_shape=jax.ShapeDtypeStruct((N, H2 * W2, c_out), jnp.float32),
        grid=(N,),
        in_specs=in_specs,
        out_specs=pl.BlockSpec((1, H2 * W2, c_out), lambda n: (n, 0, 0)),
        compiler_params=pltpu.CompilerParams(
            dimension_semantics=("parallel",),   # shard batch over v7x's 2 TCs
            vmem_limit_bytes=64 << 20),
    )(*arrays)

    return out.reshape(N, H2, W2, c_out).transpose(0, 3, 1, 2)   # back to NCHW


# --------------------------- pure-JAX reference ------------------------------

def _ref_forward(x_nchw, params):
    x = jnp.transpose(x_nchw, (0, 2, 3, 1)).astype(jnp.float32)
    hp = jax.lax.Precision.HIGHEST

    def conv(x, w9, stride):
        w = w9.reshape(3, 3, w9.shape[1], w9.shape[2])
        return jax.lax.conv_general_dilated(
            x, w, (stride, stride), [(1, 1), (1, 1)],
            dimension_numbers=("NHWC", "HWIO", "NHWC"), precision=hp)

    def dwconv(x, w9, stride):
        c = w9.shape[2]
        w = w9.reshape(3, 3, 1, c)
        return jax.lax.conv_general_dilated(
            x, w, (stride, stride), [(1, 1), (1, 1)],
            dimension_numbers=("NHWC", "HWIO", "NHWC"),
            feature_group_count=c, precision=hp)

    def pw(x, w):
        return jnp.einsum("nhwc,cd->nhwd", x, w, precision=hp)

    def bn(y, sc, bi, relu):
        y = y * sc.reshape(1, 1, 1, -1) + bi.reshape(1, 1, 1, -1)
        return jnp.maximum(y, 0.0) if relu else y

    p = params
    h = bn(conv(x, p["stem"]["w"], 2), p["stem"]["scale"], p["stem"]["bias"], True)

    b = p["b1"]
    y = bn(dwconv(h, b["dw_w"], 1), b["dw_scale"], b["dw_bias"], True)
    h = bn(pw(y, b["pw_w"]), b["pw_scale"], b["pw_bias"], False) + h

    b = p["b2"]
    y = bn(pw(h, b["exp_w"]), b["exp_scale"], b["exp_bias"], True)
    y = bn(dwconv(y, b["dw_w"], 2), b["dw_scale"], b["dw_bias"], True)
    h = bn(pw(y, b["proj_w"]), b["proj_scale"], b["proj_bias"], False)

    b = p["b3"]
    y = bn(pw(h, b["exp_w"]), b["exp_scale"], b["exp_bias"], True)
    y = bn(dwconv(y, b["dw_w"], 1), b["dw_scale"], b["dw_bias"], True)
    h = bn(pw(y, b["proj_w"]), b["proj_scale"], b["proj_bias"], False) + h

    return jnp.transpose(h, (0, 3, 1, 2))


if __name__ == "__main__":
    key = jax.random.PRNGKey(0)
    kx, kp = jax.random.split(key)
    x = jax.random.normal(kx, (2, 3, 16, 16), dtype=jnp.float32)   # NCHW
    params = make_params(kp)

    fwd = jax.jit(childnet_fcn_forward)
    out = jax.block_until_ready(fwd(x, params))
    assert out.shape == (2, 24, 4, 4), out.shape

    ref = jax.block_until_ready(_ref_forward(x, params))
    err = float(jnp.max(jnp.abs(out - ref)))
    assert err < 1e-2, f"max abs err vs reference: {err}"

    print("KERNEL_OK")
</pallas_src>

<mosaic_0001>
module attributes {stable_mosaic.version = 11 : i64} {
  func.func @_childnet_fused_kernel(%arg0: i32, %arg1: memref<1x256x3xf32, #tpu.memory_space<vmem>>, %arg2: memref<576x256xf32, #tpu.memory_space<vmem>>, %arg3: memref<9x3x16xf32, #tpu.memory_space<vmem>>, %arg4: memref<1x16xf32, #tpu.memory_space<vmem>>, %arg5: memref<1x16xf32, #tpu.memory_space<vmem>>, %arg6: memref<576x64xf32, #tpu.memory_space<vmem>>, %arg7: memref<9x1x16xf32, #tpu.memory_space<vmem>>, %arg8: memref<1x16xf32, #tpu.memory_space<vmem>>, %arg9: memref<1x16xf32, #tpu.memory_space<vmem>>, %arg10: memref<16x16xf32, #tpu.memory_space<vmem>>, %arg11: memref<1x16xf32, #tpu.memory_space<vmem>>, %arg12: memref<1x16xf32, #tpu.memory_space<vmem>>, %arg13: memref<16x64xf32, #tpu.memory_space<vmem>>, %arg14: memref<1x64xf32, #tpu.memory_space<vmem>>, %arg15: memref<1x64xf32, #tpu.memory_space<vmem>>, %arg16: memref<144x64xf32, #tpu.memory_space<vmem>>, %arg17: memref<9x1x64xf32, #tpu.memory_space<vmem>>, %arg18: memref<1x64xf32, #tpu.memory_space<vmem>>, %arg19: memref<1x64xf32, #tpu.memory_space<vmem>>, %arg20: memref<64x24xf32, #tpu.memory_space<vmem>>, %arg21: memref<1x24xf32, #tpu.memory_space<vmem>>, %arg22: memref<1x24xf32, #tpu.memory_space<vmem>>, %arg23: memref<24x96xf32, #tpu.memory_space<vmem>>, %arg24: memref<1x96xf32, #tpu.memory_space<vmem>>, %arg25: memref<1x96xf32, #tpu.memory_space<vmem>>, %arg26: memref<144x16xf32, #tpu.memory_space<vmem>>, %arg27: memref<9x1x96xf32, #tpu.memory_space<vmem>>, %arg28: memref<1x96xf32, #tpu.memory_space<vmem>>, %arg29: memref<1x96xf32, #tpu.memory_space<vmem>>, %arg30: memref<96x24xf32, #tpu.memory_space<vmem>>, %arg31: memref<1x24xf32, #tpu.memory_space<vmem>>, %arg32: memref<1x24xf32, #tpu.memory_space<vmem>>, %arg33: memref<1x16x24xf32, #tpu.memory_space<vmem>>) attributes {dimension_semantics = [#tpu.dimension_semantics<parallel>], iteration_bounds = array<i64: 2>, scalar_prefetch = 0 : i64, scratch_operands = 0 : i64, tpu.core_type = #tpu.core_type<tc>, window_params = [{transform_indices = @transform_0, window_bounds = array<i64: 1, 256, 3>}, {pipeline_mode = #tpu.pipeline_mode<synchronous>, transform_indices = @transform_1, window_bounds = array<i64: 576, 256>}, {pipeline_mode = #tpu.pipeline_mode<synchronous>, transform_indices = @transform_2, window_bounds = array<i64: 9, 3, 16>}, {pipeline_mode = #tpu.pipeline_mode<synchronous>, transform_indices = @transform_3, window_bounds = array<i64: 1, 16>}, {pipeline_mode = #tpu.pipeline_mode<synchronous>, transform_indices = @transform_4, window_bounds = array<i64: 1, 16>}, {pipeline_mode = #tpu.pipeline_mode<synchronous>, transform_indices = @transform_5, window_bounds = array<i64: 576, 64>}, {pipeline_mode = #tpu.pipeline_mode<synchronous>, transform_indices = @transform_6, window_bounds = array<i64: 9, 1, 16>}, {pipeline_mode = #tpu.pipeline_mode<synchronous>, transform_indices = @transform_7, window_bounds = array<i64: 1, 16>}, {pipeline_mode = #tpu.pipeline_mode<synchronous>, transform_indices = @transform_8, window_bounds = array<i64: 1, 16>}, {pipeline_mode = #tpu.pipeline_mode<synchronous>, transform_indices = @transform_9, window_bounds = array<i64: 16, 16>}, {pipeline_mode = #tpu.pipeline_mode<synchronous>, transform_indices = @transform_10, window_bounds = array<i64: 1, 16>}, {pipeline_mode = #tpu.pipeline_mode<synchronous>, transform_indices = @transform_11, window_bounds = array<i64: 1, 16>}, {pipeline_mode = #tpu.pipeline_mode<synchronous>, transform_indices = @transform_12, window_bounds = array<i64: 16, 64>}, {pipeline_mode = #tpu.pipeline_mode<synchronous>, transform_indices = @transform_13, window_bounds = array<i64: 1, 64>}, {pipeline_mode = #tpu.pipeline_mode<synchronous>, transform_indices = @transform_14, window_bounds = array<i64: 1, 64>}, {pipeline_mode = #tpu.pipeline_mode<synchronous>, transform_indices = @transform_15, window_bounds = array<i64: 144, 64>}, {pipeline_mode = #tpu.pipeline_mode<synchronous>, transform_indices = @transform_16, window_bounds = array<i64: 9, 1, 64>}, {pipeline_mode = #tpu.pipeline_mode<synchronous>, transform_indices = @transform_17, window_bounds = array<i64: 1, 64>}, {pipeline_mode = #tpu.pipeline_mode<synchronous>, transform_indices = @transform_18, window_bounds = array<i64: 1, 64>}, {pipeline_mode = #tpu.pipeline_mode<synchronous>, transform_indices = @transform_19, window_bounds = array<i64: 64, 24>}, {pipeline_mode = #tpu.pipeline_mode<synchronous>, transform_indices = @transform_20, window_bounds = array<i64: 1, 24>}, {pipeline_mode = #tpu.pipeline_mode<synchronous>, transform_indices = @transform_21, window_bounds = array<i64: 1, 24>}, {pipeline_mode = #tpu.pipeline_mode<synchronous>, transform_indices = @transform_22, window_bounds = array<i64: 24, 96>}, {pipeline_mode = #tpu.pipeline_mode<synchronous>, transform_indices = @transform_23, window_bounds = array<i64: 1, 96>}, {pipeline_mode = #tpu.pipeline_mode<synchronous>, transform_indices = @transform_24, window_bounds = array<i64: 1, 96>}, {pipeline_mode = #tpu.pipeline_mode<synchronous>, transform_indices = @transform_25, window_bounds = array<i64: 144, 16>}, {pipeline_mode = #tpu.pipeline_mode<synchronous>, transform_indices = @transform_26, window_bounds = array<i64: 9, 1, 96>}, {pipeline_mode = #tpu.pipeline_mode<synchronous>, transform_indices = @transform_27, window_bounds = array<i64: 1, 96>}, {pipeline_mode = #tpu.pipeline_mode<synchronous>, transform_indices = @transform_28, window_bounds = array<i64: 1, 96>}, {pipeline_mode = #tpu.pipeline_mode<synchronous>, transform_indices = @transform_29, window_bounds = array<i64: 96, 24>}, {pipeline_mode = #tpu.pipeline_mode<synchronous>, transform_indices = @transform_30, window_bounds = array<i64: 1, 24>}, {pipeline_mode = #tpu.pipeline_mode<synchronous>, transform_indices = @transform_31, window_bounds = array<i64: 1, 24>}, {transform_indices = @transform_32, window_bounds = array<i64: 1, 16, 24>}]} {
    %c0 = arith.constant 0 : index
    %c0_0 = arith.constant 0 : index
    %c0_1 = arith.constant 0 : index
    %0 = vector.load %arg1[%c0, %c0_0, %c0_1] : memref<1x256x3xf32, #tpu.memory_space<vmem>>, vector<1x256x3xf32>
    %1 = vector.shape_cast %0 : vector<1x256x3xf32> to vector<256x3xf32>
    %c0_2 = arith.constant 0 : index
    %c0_3 = arith.constant 0 : index
    %2 = vector.load %arg2[%c0_2, %c0_3] : memref<576x256xf32, #tpu.memory_space<vmem>>, vector<576x256xf32>
    %cst = arith.constant dense<0.000000e+00> : vector<576x3xf32>
    %3 = tpu.matmul %2, %1, %cst {dimension_numbers = #tpu.dot_dimension_numbers<[1], [0], [0], [1], [0, 0, 1, 1], [], []>} : vector<576x256xf32>, vector<256x3xf32>, vector<576x3xf32> -> vector<576x3xf32>
    %cst_4 = arith.constant 0.000000e+00 : f32
    %4 = vector.broadcast %cst_4 : f32 to vector<64x16xf32>
    %5 = vector.extract_strided_slice %3 {offsets = [0, 0], sizes = [64, 3], strides = [1, 1]} : vector<576x3xf32> to vector<64x3xf32>
    %c0_5 = arith.constant 0 : index
    %c0_6 = arith.constant 0 : index
    %c0_7 = arith.constant 0 : index
    %6 = vector.load %arg3[%c0_5, %c0_6, %c0_7] : memref<9x3x16xf32, #tpu.memory_space<vmem>>, vector<1x3x16xf32>
    %7 = vector.shape_cast %6 : vector<1x3x16xf32> to vector<3x16xf32>
    %cst_8 = arith.constant dense<0.000000e+00> : vector<64x16xf32>
    %8 = tpu.matmul %5, %7, %cst_8 {dimension_numbers = #tpu.dot_dimension_numbers<[1], [0], [0], [1], [0, 0, 1, 1], [], []>} : vector<64x3xf32>, vector<3x16xf32>, vector<64x16xf32> -> vector<64x16xf32>
    %9 = arith.addf %4, %8 : vector<64x16xf32>
    %10 = vector.extract_strided_slice %3 {offsets = [64, 0], sizes = [64, 3], strides = [1, 1]} : vector<576x3xf32> to vector<64x3xf32>
    %c1 = arith.constant 1 : index
    %c0_9 = arith.constant 0 : index
    %c0_10 = arith.constant 0 : index
    %11 = vector.load %arg3[%c1, %c0_9, %c0_10] : memref<9x3x16xf32, #tpu.memory_space<vmem>>, vector<1x3x16xf32>
    %12 = vector.shape_cast %11 : vector<1x3x16xf32> to vector<3x16xf32>
    %cst_11 = arith.constant dense<0.000000e+00> : vector<64x16xf32>
    %13 = tpu.matmul %10, %12, %cst_11 {dimension_numbers = #tpu.dot_dimension_numbers<[1], [0], [0], [1], [0, 0, 1, 1], [], []>} : vector<64x3xf32>, vector<3x16xf32>, vector<64x16xf32> -> vector<64x16xf32>
    %14 = arith.addf %9, %13 : vector<64x16xf32>
    %15 = vector.extract_strided_slice %3 {offsets = [128, 0], sizes = [64, 3], strides = [1, 1]} : vector<576x3xf32> to vector<64x3xf32>
    %c2 = arith.constant 2 : index
    %c0_12 = arith.constant 0 : index
    %c0_13 = arith.constant 0 : index
    %16 = vector.load %arg3[%c2, %c0_12, %c0_13] : memref<9x3x16xf32, #tpu.memory_space<vmem>>, vector<1x3x16xf32>
    %17 = vector.shape_cast %16 : vector<1x3x16xf32> to vector<3x16xf32>
    %cst_14 = arith.constant dense<0.000000e+00> : vector<64x16xf32>
    %18 = tpu.matmul %15, %17, %cst_14 {dimension_numbers = #tpu.dot_dimension_numbers<[1], [0], [0], [1], [0, 0, 1, 1], [], []>} : vector<64x3xf32>, vector<3x16xf32>, vector<64x16xf32> -> vector<64x16xf32>
    %19 = arith.addf %14, %18 : vector<64x16xf32>
    %20 = vector.extract_strided_slice %3 {offsets = [192, 0], sizes = [64, 3], strides = [1, 1]} : vector<576x3xf32> to vector<64x3xf32>
    %c3 = arith.constant 3 : index
    %c0_15 = arith.constant 0 : index
    %c0_16 = arith.constant 0 : index
    %21 = vector.load %arg3[%c3, %c0_15, %c0_16] : memref<9x3x16xf32, #tpu.memory_space<vmem>>, vector<1x3x16xf32>
    %22 = vector.shape_cast %21 : vector<1x3x16xf32> to vector<3x16xf32>
    %cst_17 = arith.constant dense<0.000000e+00> : vector<64x16xf32>
    %23 = tpu.matmul %20, %22, %cst_17 {dimension_numbers = #tpu.dot_dimension_numbers<[1], [0], [0], [1], [0, 0, 1, 1], [], []>} : vector<64x3xf32>, vector<3x16xf32>, vector<64x16xf32> -> vector<64x16xf32>
    %24 = arith.addf %19, %23 : vector<64x16xf32>
    %25 = vector.extract_strided_slice %3 {offsets = [256, 0], sizes = [64, 3], strides = [1, 1]} : vector<576x3xf32> to vector<64x3xf32>
    %c4 = arith.constant 4 : index
    %c0_18 = arith.constant 0 : index
    %c0_19 = arith.constant 0 : index
    %26 = vector.load %arg3[%c4, %c0_18, %c0_19] : memref<9x3x16xf32, #tpu.memory_space<vmem>>, vector<1x3x16xf32>
    %27 = vector.shape_cast %26 : vector<1x3x16xf32> to vector<3x16xf32>
    %cst_20 = arith.constant dense<0.000000e+00> : vector<64x16xf32>
    %28 = tpu.matmul %25, %27, %cst_20 {dimension_numbers = #tpu.dot_dimension_numbers<[1], [0], [0], [1], [0, 0, 1, 1], [], []>} : vector<64x3xf32>, vector<3x16xf32>, vector<64x16xf32> -> vector<64x16xf32>
    %29 = arith.addf %24, %28 : vector<64x16xf32>
    %30 = vector.extract_strided_slice %3 {offsets = [320, 0], sizes = [64, 3], strides = [1, 1]} : vector<576x3xf32> to vector<64x3xf32>
    %c5 = arith.constant 5 : index
    %c0_21 = arith.constant 0 : index
    %c0_22 = arith.constant 0 : index
    %31 = vector.load %arg3[%c5, %c0_21, %c0_22] : memref<9x3x16xf32, #tpu.memory_space<vmem>>, vector<1x3x16xf32>
    %32 = vector.shape_cast %31 : vector<1x3x16xf32> to vector<3x16xf32>
    %cst_23 = arith.constant dense<0.000000e+00> : vector<64x16xf32>
    %33 = tpu.matmul %30, %32, %cst_23 {dimension_numbers = #tpu.dot_dimension_numbers<[1], [0], [0], [1], [0, 0, 1, 1], [], []>} : vector<64x3xf32>, vector<3x16xf32>, vector<64x16xf32> -> vector<64x16xf32>
    %34 = arith.addf %29, %33 : vector<64x16xf32>
    %35 = vector.extract_strided_slice %3 {offsets = [384, 0], sizes = [64, 3], strides = [1, 1]} : vector<576x3xf32> to vector<64x3xf32>
    %c6 = arith.constant 6 : index
    %c0_24 = arith.constant 0 : index
    %c0_25 = arith.constant 0 : index
    %36 = vector.load %arg3[%c6, %c0_24, %c0_25] : memref<9x3x16xf32, #tpu.memory_space<vmem>>, vector<1x3x16xf32>
    %37 = vector.shape_cast %36 : vector<1x3x16xf32> to vector<3x16xf32>
    %cst_26 = arith.constant dense<0.000000e+00> : vector<64x16xf32>
    %38 = tpu.matmul %35, %37, %cst_26 {dimension_numbers = #tpu.dot_dimension_numbers<[1], [0], [0], [1], [0, 0, 1, 1], [], []>} : vector<64x3xf32>, vector<3x16xf32>, vector<64x16xf32> -> vector<64x16xf32>
    %39 = arith.addf %34, %38 : vector<64x16xf32>
    %40 = vector.extract_strided_slice %3 {offsets = [448, 0], sizes = [64, 3], strides = [1, 1]} : vector<576x3xf32> to vector<64x3xf32>
    %c7 = arith.constant 7 : index
    %c0_27 = arith.constant 0 : index
    %c0_28 = arith.constant 0 : index
    %41 = vector.load %arg3[%c7, %c0_27, %c0_28] : memref<9x3x16xf32, #tpu.memory_space<vmem>>, vector<1x3x16xf32>
    %42 = vector.shape_cast %41 : vector<1x3x16xf32> to vector<3x16xf32>
    %cst_29 = arith.constant dense<0.000000e+00> : vector<64x16xf32>
    %43 = tpu.matmul %40, %42, %cst_29 {dimension_numbers = #tpu.dot_dimension_numbers<[1], [0], [0], [1], [0, 0, 1, 1], [], []>} : vector<64x3xf32>, vector<3x16xf32>, vector<64x16xf32> -> vector<64x16xf32>
    %44 = arith.addf %39, %43 : vector<64x16xf32>
    %45 = vector.extract_strided_slice %3 {offsets = [512, 0], sizes = [64, 3], strides = [1, 1]} : vector<576x3xf32> to vector<64x3xf32>
    %c8 = arith.constant 8 : index
    %c0_30 = arith.constant 0 : index
    %c0_31 = arith.constant 0 : index
    %46 = vector.load %arg3[%c8, %c0_30, %c0_31] : memref<9x3x16xf32, #tpu.memory_space<vmem>>, vector<1x3x16xf32>
    %47 = vector.shape_cast %46 : vector<1x3x16xf32> to vector<3x16xf32>
    %cst_32 = arith.constant dense<0.000000e+00> : vector<64x16xf32>
    %48 = tpu.matmul %45, %47, %cst_32 {dimension_numbers = #tpu.dot_dimension_numbers<[1], [0], [0], [1], [0, 0, 1, 1], [], []>} : vector<64x3xf32>, vector<3x16xf32>, vector<64x16xf32> -> vector<64x16xf32>
    %49 = arith.addf %44, %48 : vector<64x16xf32>
    %c0_33 = arith.constant 0 : index
    %c0_34 = arith.constant 0 : index
    %50 = vector.load %arg4[%c0_33, %c0_34] : memref<1x16xf32, #tpu.memory_space<vmem>>, vector<1x16xf32>
    %51 = vector.broadcast %50 : vector<1x16xf32> to vector<64x16xf32>
    %52 = arith.mulf %49, %51 : vector<64x16xf32>
    %c0_35 = arith.constant 0 : index
    %c0_36 = arith.constant 0 : index
    %53 = vector.load %arg5[%c0_35, %c0_36] : memref<1x16xf32, #tpu.memory_space<vmem>>, vector<1x16xf32>
    %54 = vector.broadcast %53 : vector<1x16xf32> to vector<64x16xf32>
    %55 = arith.addf %52, %54 : vector<64x16xf32>
    %cst_37 = arith.constant 0.000000e+00 : f32
    %56 = vector.broadcast %cst_37 : f32 to vector<64x16xf32>
    %57 = arith.maximumf %55, %56 : vector<64x16xf32>
    %c0_38 = arith.constant 0 : index
    %c0_39 = arith.constant 0 : index
    %58 = vector.load %arg6[%c0_38, %c0_39] : memref<576x64xf32, #tpu.memory_space<vmem>>, vector<576x64xf32>
    %cst_40 = arith.constant dense<0.000000e+00> : vector<576x16xf32>
    %59 = tpu.matmul %58, %57, %cst_40 {dimension_numbers = #tpu.dot_dimension_numbers<[1], [0], [0], [1], [0, 0, 1, 1], [], []>} : vector<576x64xf32>, vector<64x16xf32>, vector<576x16xf32> -> vector<576x16xf32>
    %cst_41 = arith.constant 0.000000e+00 : f32
    %60 = vector.broadcast %cst_41 : f32 to vector<64x16xf32>
    %61 = vector.extract_strided_slice %59 {offsets = [0, 0], sizes = [64, 16], strides = [1, 1]} : vector<576x16xf32> to vector<64x16xf32>
    %c0_42 = arith.constant 0 : index
    %c0_43 = arith.constant 0 : index
    %c0_44 = arith.constant 0 : index
    %62 = vector.load %arg7[%c0_42, %c0_43, %c0_44] : memref<9x1x16xf32, #tpu.memory_space<vmem>>, vector<1x1x16xf32>
    %63 = vector.shape_cast %62 : vector<1x1x16xf32> to vector<1x16xf32>
    %64 = vector.broadcast %63 : vector<1x16xf32> to vector<64x16xf32>
    %65 = arith.mulf %61, %64 : vector<64x16xf32>
    %66 = arith.addf %60, %65 : vector<64x16xf32>
    %67 = vector.extract_strided_slice %59 {offsets = [64, 0], sizes = [64, 16], strides = [1, 1]} : vector<576x16xf32> to vector<64x16xf32>
    %c1_45 = arith.constant 1 : index
    %c0_46 = arith.constant 0 : index
    %c0_47 = arith.constant 0 : index
    %68 = vector.load %arg7[%c1_45, %c0_46, %c0_47] : memref<9x1x16xf32, #tpu.memory_space<vmem>>, vector<1x1x16xf32>
    %69 = vector.shape_cast %68 : vector<1x1x16xf32> to vector<1x16xf32>
    %70 = vector.broadcast %69 : vector<1x16xf32> to vector<64x16xf32>
    %71 = arith.mulf %67, %70 : vector<64x16xf32>
    %72 = arith.addf %66, %71 : vector<64x16xf32>
    %73 = vector.extract_strided_slice %59 {offsets = [128, 0], sizes = [64, 16], strides = [1, 1]} : vector<576x16xf32> to vector<64x16xf32>
    %c2_48 = arith.constant 2 : index
    %c0_49 = arith.constant 0 : index
    %c0_50 = arith.constant 0 : index
    %74 = vector.load %arg7[%c2_48, %c0_49, %c0_50] : memref<9x1x16xf32, #tpu.memory_space<vmem>>, vector<1x1x16xf32>
    %75 = vector.shape_cast %74 : vector<1x1x16xf32> to vector<1x16xf32>
    %76 = vector.broadcast %75 : vector<1x16xf32> to vector<64x16xf32>
    %77 = arith.mulf %73, %76 : vector<64x16xf32>
    %78 = arith.addf %72, %77 : vector<64x16xf32>
    %79 = vector.extract_strided_slice %59 {offsets = [192, 0], sizes = [64, 16], strides = [1, 1]} : vector<576x16xf32> to vector<64x16xf32>
    %c3_51 = arith.constant 3 : index
    %c0_52 = arith.constant 0 : index
    %c0_53 = arith.constant 0 : index
    %80 = vector.load %arg7[%c3_51, %c0_52, %c0_53] : memref<9x1x16xf32, #tpu.memory_space<vmem>>, vector<1x1x16xf32>
    %81 = vector.shape_cast %80 : vector<1x1x16xf32> to vector<1x16xf32>
    %82 = vector.broadcast %81 : vector<1x16xf32> to vector<64x16xf32>
    %83 = arith.mulf %79, %82 : vector<64x16xf32>
    %84 = arith.addf %78, %83 : vector<64x16xf32>
    %85 = vector.extract_strided_slice %59 {offsets = [256, 0], sizes = [64, 16], strides = [1, 1]} : vector<576x16xf32> to vector<64x16xf32>
    %c4_54 = arith.constant 4 : index
    %c0_55 = arith.constant 0 : index
    %c0_56 = arith.constant 0 : index
    %86 = vector.load %arg7[%c4_54, %c0_55, %c0_56] : memref<9x1x16xf32, #tpu.memory_space<vmem>>, vector<1x1x16xf32>
    %87 = vector.shape_cast %86 : vector<1x1x16xf32> to vector<1x16xf32>
    %88 = vector.broadcast %87 : vector<1x16xf32> to vector<64x16xf32>
    %89 = arith.mulf %85, %88 : vector<64x16xf32>
    %90 = arith.addf %84, %89 : vector<64x16xf32>
    %91 = vector.extract_strided_slice %59 {offsets = [320, 0], sizes = [64, 16], strides = [1, 1]} : vector<576x16xf32> to vector<64x16xf32>
    %c5_57 = arith.constant 5 : index
    %c0_58 = arith.constant 0 : index
    %c0_59 = arith.constant 0 : index
    %92 = vector.load %arg7[%c5_57, %c0_58, %c0_59] : memref<9x1x16xf32, #tpu.memory_space<vmem>>, vector<1x1x16xf32>
    %93 = vector.shape_cast %92 : vector<1x1x16xf32> to vector<1x16xf32>
    %94 = vector.broadcast %93 : vector<1x16xf32> to vector<64x16xf32>
    %95 = arith.mulf %91, %94 : vector<64x16xf32>
    %96 = arith.addf %90, %95 : vector<64x16xf32>
    %97 = vector.extract_strided_slice %59 {offsets = [384, 0], sizes = [64, 16], strides = [1, 1]} : vector<576x16xf32> to vector<64x16xf32>
    %c6_60 = arith.constant 6 : index
    %c0_61 = arith.constant 0 : index
    %c0_62 = arith.constant 0 : index
    %98 = vector.load %arg7[%c6_60, %c0_61, %c0_62] : memref<9x1x16xf32, #tpu.memory_space<vmem>>, vector<1x1x16xf32>
    %99 = vector.shape_cast %98 : vector<1x1x16xf32> to vector<1x16xf32>
    %100 = vector.broadcast %99 : vector<1x16xf32> to vector<64x16xf32>
    %101 = arith.mulf %97, %100 : vector<64x16xf32>
    %102 = arith.addf %96, %101 : vector<64x16xf32>
    %103 = vector.extract_strided_slice %59 {offsets = [448, 0], sizes = [64, 16], strides = [1, 1]} : vector<576x16xf32> to vector<64x16xf32>
    %c7_63 = arith.constant 7 : index
    %c0_64 = arith.constant 0 : index
    %c0_65 = arith.constant 0 : index
    %104 = vector.load %arg7[%c7_63, %c0_64, %c0_65] : memref<9x1x16xf32, #tpu.memory_space<vmem>>, vector<1x1x16xf32>
    %105 = vector.shape_cast %104 : vector<1x1x16xf32> to vector<1x16xf32>
    %106 = vector.broadcast %105 : vector<1x16xf32> to vector<64x16xf32>
    %107 = arith.mulf %103, %106 : vector<64x16xf32>
    %108 = arith.addf %102, %107 : vector<64x16xf32>
    %109 = vector.extract_strided_slice %59 {offsets = [512, 0], sizes = [64, 16], strides = [1, 1]} : vector<576x16xf32> to vector<64x16xf32>
    %c8_66 = arith.constant 8 : index
    %c0_67 = arith.constant 0 : index
    %c0_68 = arith.constant 0 : index
    %110 = vector.load %arg7[%c8_66, %c0_67, %c0_68] : memref<9x1x16xf32, #tpu.memory_space<vmem>>, vector<1x1x16xf32>
    %111 = vector.shape_cast %110 : vector<1x1x16xf32> to vector<1x16xf32>
    %112 = vector.broadcast %111 : vector<1x16xf32> to vector<64x16xf32>
    %113 = arith.mulf %109, %112 : vector<64x16xf32>
    %114 = arith.addf %108, %113 : vector<64x16xf32>
    %c0_69 = arith.constant 0 : index
    %c0_70 = arith.constant 0 : index
    %115 = vector.load %arg8[%c0_69, %c0_70] : memref<1x16xf32, #tpu.memory_space<vmem>>, vector<1x16xf32>
    %116 = vector.broadcast %115 : vector<1x16xf32> to vector<64x16xf32>
    %117 = arith.mulf %114, %116 : vector<64x16xf32>
    %c0_71 = arith.constant 0 : index
    %c0_72 = arith.constant 0 : index
    %118 = vector.load %arg9[%c0_71, %c0_72] : memref<1x16xf32, #tpu.memory_space<vmem>>, vector<1x16xf32>
    %119 = vector.broadcast %118 : vector<1x16xf32> to vector<64x16xf32>
    %120 = arith.addf %117, %119 : vector<64x16xf32>
    %cst_73 = arith.constant 0.000000e+00 : f32
    %121 = vector.broadcast %cst_73 : f32 to vector<64x16xf32>
    %122 = arith.maximumf %120, %121 : vector<64x16xf32>
    %c0_74 = arith.constant 0 : index
    %c0_75 = arith.constant 0 : index
    %123 = vector.load %arg10[%c0_74, %c0_75] : memref<16x16xf32, #tpu.memory_space<vmem>>, vector<16x16xf32>
    %cst_76 = arith.constant dense<0.000000e+00> : vector<64x16xf32>
    %124 = tpu.matmul %122, %123, %cst_76 {dimension_numbers = #tpu.dot_dimension_numbers<[1], [0], [0], [1], [0, 0, 1, 1], [], []>} : vector<64x16xf32>, vector<16x16xf32>, vector<64x16xf32> -> vector<64x16xf32>
    %c0_77 = arith.constant 0 : index
    %c0_78 = arith.constant 0 : index
    %125 = vector.load %arg11[%c0_77, %c0_78] : memref<1x16xf32, #tpu.memory_space<vmem>>, vector<1x16xf32>
    %126 = vector.broadcast %125 : vector<1x16xf32> to vector<64x16xf32>
    %127 = arith.mulf %124, %126 : vector<64x16xf32>
    %c0_79 = arith.constant 0 : index
    %c0_80 = arith.constant 0 : index
    %128 = vector.load %arg12[%c0_79, %c0_80] : memref<1x16xf32, #tpu.memory_space<vmem>>, vector<1x16xf32>
    %129 = vector.broadcast %128 : vector<1x16xf32> to vector<64x16xf32>
    %130 = arith.addf %127, %129 : vector<64x16xf32>
    %131 = arith.addf %130, %57 : vector<64x16xf32>
    %c0_81 = arith.constant 0 : index
    %c0_82 = arith.constant 0 : index
    %132 = vector.load %arg13[%c0_81, %c0_82] : memref<16x64xf32, #tpu.memory_space<vmem>>, vector<16x64xf32>
    %cst_83 = arith.constant dense<0.000000e+00> : vector<64x64xf32>
    %133 = tpu.matmul %131, %132, %cst_83 {dimension_numbers = #tpu.dot_dimension_numbers<[1], [0], [0], [1], [0, 0, 1, 1], [], []>} : vector<64x16xf32>, vector<16x64xf32>, vector<64x64xf32> -> vector<64x64xf32>
    %c0_84 = arith.constant 0 : index
    %c0_85 = arith.constant 0 : index
    %134 = vector.load %arg14[%c0_84, %c0_85] : memref<1x64xf32, #tpu.memory_space<vmem>>, vector<1x64xf32>
    %135 = vector.broadcast %134 : vector<1x64xf32> to vector<64x64xf32>
    %136 = arith.mulf %133, %135 : vector<64x64xf32>
    %c0_86 = arith.constant 0 : index
    %c0_87 = arith.constant 0 : index
    %137 = vector.load %arg15[%c0_86, %c0_87] : memref<1x64xf32, #tpu.memory_space<vmem>>, vector<1x64xf32>
    %138 = vector.broadcast %137 : vector<1x64xf32> to vector<64x64xf32>
    %139 = arith.addf %136, %138 : vector<64x64xf32>
    %cst_88 = arith.constant 0.000000e+00 : f32
    %140 = vector.broadcast %cst_88 : f32 to vector<64x64xf32>
    %141 = arith.maximumf %139, %140 : vector<64x64xf32>
    %c0_89 = arith.constant 0 : index
    %c0_90 = arith.constant 0 : index
    %142 = vector.load %arg16[%c0_89, %c0_90] : memref<144x64xf32, #tpu.memory_space<vmem>>, vector<144x64xf32>
    %cst_91 = arith.constant dense<0.000000e+00> : vector<144x64xf32>
    %143 = tpu.matmul %142, %141, %cst_91 {dimension_numbers = #tpu.dot_dimension_numbers<[1], [0], [0], [1], [0, 0, 1, 1], [], []>} : vector<144x64xf32>, vector<64x64xf32>, vector<144x64xf32> -> vector<144x64xf32>
    %cst_92 = arith.constant 0.000000e+00 : f32
    %144 = vector.broadcast %cst_92 : f32 to vector<16x64xf32>
    %145 = vector.extract_strided_slice %143 {offsets = [0, 0], sizes = [16, 64], strides = [1, 1]} : vector<144x64xf32> to vector<16x64xf32>
    %c0_93 = arith.constant 0 : index
    %c0_94 = arith.constant 0 : index
    %c0_95 = arith.constant 0 : index
    %146 = vector.load %arg17[%c0_93, %c0_94, %c0_95] : memref<9x1x64xf32, #tpu.memory_space<vmem>>, vector<1x1x64xf32>
    %147 = vector.shape_cast %146 : vector<1x1x64xf32> to vector<1x64xf32>
    %148 = vector.broadcast %147 : vector<1x64xf32> to vector<16x64xf32>
    %149 = arith.mulf %145, %148 : vector<16x64xf32>
    %150 = arith.addf %144, %149 : vector<16x64xf32>
    %151 = vector.extract_strided_slice %143 {offsets = [16, 0], sizes = [16, 64], strides = [1, 1]} : vector<144x64xf32> to vector<16x64xf32>
    %c1_96 = arith.constant 1 : index
    %c0_97 = arith.constant 0 : index
    %c0_98 = arith.constant 0 : index
    %152 = vector.load %arg17[%c1_96, %c0_97, %c0_98] : memref<9x1x64xf32, #tpu.memory_space<vmem>>, vector<1x1x64xf32>
    %153 = vector.shape_cast %152 : vector<1x1x64xf32> to vector<1x64xf32>
    %154 = vector.broadcast %153 : vector<1x64xf32> to vector<16x64xf32>
    %155 = arith.mulf %151, %154 : vector<16x64xf32>
    %156 = arith.addf %150, %155 : vector<16x64xf32>
    %157 = vector.extract_strided_slice %143 {offsets = [32, 0], sizes = [16, 64], strides = [1, 1]} : vector<144x64xf32> to vector<16x64xf32>
    %c2_99 = arith.constant 2 : index
    %c0_100 = arith.constant 0 : index
    %c0_101 = arith.constant 0 : index
    %158 = vector.load %arg17[%c2_99, %c0_100, %c0_101] : memref<9x1x64xf32, #tpu.memory_space<vmem>>, vector<1x1x64xf32>
    %159 = vector.shape_cast %158 : vector<1x1x64xf32> to vector<1x64xf32>
    %160 = vector.broadcast %159 : vector<1x64xf32> to vector<16x64xf32>
    %161 = arith.mulf %157, %160 : vector<16x64xf32>
    %162 = arith.addf %156, %161 : vector<16x64xf32>
    %163 = vector.extract_strided_slice %143 {offsets = [48, 0], sizes = [16, 64], strides = [1, 1]} : vector<144x64xf32> to vector<16x64xf32>
    %c3_102 = arith.constant 3 : index
    %c0_103 = arith.constant 0 : index
    %c0_104 = arith.constant 0 : index
    %164 = vector.load %arg17[%c3_102, %c0_103, %c0_104] : memref<9x1x64xf32, #tpu.memory_space<vmem>>, vector<1x1x64xf32>
    %165 = vector.shape_cast %164 : vector<1x1x64xf32> to vector<1x64xf32>
    %166 = vector.broadcast %165 : vector<1x64xf32> to vector<16x64xf32>
    %167 = arith.mulf %163, %166 : vector<16x64xf32>
    %168 = arith.addf %162, %167 : vector<16x64xf32>
    %169 = vector.extract_strided_slice %143 {offsets = [64, 0], sizes = [16, 64], strides = [1, 1]} : vector<144x64xf32> to vector<16x64xf32>
    %c4_105 = arith.constant 4 : index
    %c0_106 = arith.constant 0 : index
    %c0_107 = arith.constant 0 : index
    %170 = vector.load %arg17[%c4_105, %c0_106, %c0_107] : memref<9x1x64xf32, #tpu.memory_space<vmem>>, vector<1x1x64xf32>
    %171 = vector.shape_cast %170 : vector<1x1x64xf32> to vector<1x64xf32>
    %172 = vector.broadcast %171 : vector<1x64xf32> to vector<16x64xf32>
    %173 = arith.mulf %169, %172 : vector<16x64xf32>
    %174 = arith.addf %168, %173 : vector<16x64xf32>
    %175 = vector.extract_strided_slice %143 {offsets = [80, 0], sizes = [16, 64], strides = [1, 1]} : vector<144x64xf32> to vector<16x64xf32>
    %c5_108 = arith.constant 5 : index
    %c0_109 = arith.constant 0 : index
    %c0_110 = arith.constant 0 : index
    %176 = vector.load %arg17[%c5_108, %c0_109, %c0_110] : memref<9x1x64xf32, #tpu.memory_space<vmem>>, vector<1x1x64xf32>
    %177 = vector.shape_cast %176 : vector<1x1x64xf32> to vector<1x64xf32>
    %178 = vector.broadcast %177 : vector<1x64xf32> to vector<16x64xf32>
    %179 = arith.mulf %175, %178 : vector<16x64xf32>
    %180 = arith.addf %174, %179 : vector<16x64xf32>
    %181 = vector.extract_strided_slice %143 {offsets = [96, 0], sizes = [16, 64], strides = [1, 1]} : vector<144x64xf32> to vector<16x64xf32>
    %c6_111 = arith.constant 6 : index
    %c0_112 = arith.constant 0 : index
    %c0_113 = arith.constant 0 : index
    %182 = vector.load %arg17[%c6_111, %c0_112, %c0_113] : memref<9x1x64xf32, #tpu.memory_space<vmem>>, vector<1x1x64xf32>
    %183 = vector.shape_cast %182 : vector<1x1x64xf32> to vector<1x64xf32>
    %184 = vector.broadcast %183 : vector<1x64xf32> to vector<16x64xf32>
    %185 = arith.mulf %181, %184 : vector<16x64xf32>
    %186 = arith.addf %180, %185 : vector<16x64xf32>
    %187 = vector.extract_strided_slice %143 {offsets = [112, 0], sizes = [16, 64], strides = [1, 1]} : vector<144x64xf32> to vector<16x64xf32>
    %c7_114 = arith.constant 7 : index
    %c0_115 = arith.constant 0 : index
    %c0_116 = arith.constant 0 : index
    %188 = vector.load %arg17[%c7_114, %c0_115, %c0_116] : memref<9x1x64xf32, #tpu.memory_space<vmem>>, vector<1x1x64xf32>
    %189 = vector.shape_cast %188 : vector<1x1x64xf32> to vector<1x64xf32>
    %190 = vector.broadcast %189 : vector<1x64xf32> to vector<16x64xf32>
    %191 = arith.mulf %187, %190 : vector<16x64xf32>
    %192 = arith.addf %186, %191 : vector<16x64xf32>
    %193 = vector.extract_strided_slice %143 {offsets = [128, 0], sizes = [16, 64], strides = [1, 1]} : vector<144x64xf32> to vector<16x64xf32>
    %c8_117 = arith.constant 8 : index
    %c0_118 = arith.constant 0 : index
    %c0_119 = arith.constant 0 : index
    %194 = vector.load %arg17[%c8_117, %c0_118, %c0_119] : memref<9x1x64xf32, #tpu.memory_space<vmem>>, vector<1x1x64xf32>
    %195 = vector.shape_cast %194 : vector<1x1x64xf32> to vector<1x64xf32>
    %196 = vector.broadcast %195 : vector<1x64xf32> to vector<16x64xf32>
    %197 = arith.mulf %193, %196 : vector<16x64xf32>
    %198 = arith.addf %192, %197 : vector<16x64xf32>
    %c0_120 = arith.constant 0 : index
    %c0_121 = arith.constant 0 : index
    %199 = vector.load %arg18[%c0_120, %c0_121] : memref<1x64xf32, #tpu.memory_space<vmem>>, vector<1x64xf32>
    %200 = vector.broadcast %199 : vector<1x64xf32> to vector<16x64xf32>
    %201 = arith.mulf %198, %200 : vector<16x64xf32>
    %c0_122 = arith.constant 0 : index
    %c0_123 = arith.constant 0 : index
    %202 = vector.load %arg19[%c0_122, %c0_123] : memref<1x64xf32, #tpu.memory_space<vmem>>, vector<1x64xf32>
    %203 = vector.broadcast %202 : vector<1x64xf32> to vector<16x64xf32>
    %204 = arith.addf %201, %203 : vector<16x64xf32>
    %cst_124 = arith.constant 0.000000e+00 : f32
    %205 = vector.broadcast %cst_124 : f32 to vector<16x64xf32>
    %206 = arith.maximumf %204, %205 : vector<16x64xf32>
    %c0_125 = arith.constant 0 : index
    %c0_126 = arith.constant 0 : index
    %207 = vector.load %arg20[%c0_125, %c0_126] : memref<64x24xf32, #tpu.memory_space<vmem>>, vector<64x24xf32>
    %cst_127 = arith.constant dense<0.000000e+00> : vector<16x24xf32>
    %208 = tpu.matmul %206, %207, %cst_127 {dimension_numbers = #tpu.dot_dimension_numbers<[1], [0], [0], [1], [0, 0, 1, 1], [], []>} : vector<16x64xf32>, vector<64x24xf32>, vector<16x24xf32> -> vector<16x24xf32>
    %c0_128 = arith.constant 0 : index
    %c0_129 = arith.constant 0 : index
    %209 = vector.load %arg21[%c0_128, %c0_129] : memref<1x24xf32, #tpu.memory_space<vmem>>, vector<1x24xf32>
    %210 = vector.broadcast %209 : vector<1x24xf32> to vector<16x24xf32>
    %211 = arith.mulf %208, %210 : vector<16x24xf32>
    %c0_130 = arith.constant 0 : index
    %c0_131 = arith.constant 0 : index
    %212 = vector.load %arg22[%c0_130, %c0_131] : memref<1x24xf32, #tpu.memory_space<vmem>>, vector<1x24xf32>
    %213 = vector.broadcast %212 : vector<1x24xf32> to vector<16x24xf32>
    %214 = arith.addf %211, %213 : vector<16x24xf32>
    %c0_132 = arith.constant 0 : index
    %c0_133 = arith.constant 0 : index
    %215 = vector.load %arg23[%c0_132, %c0_133] : memref<24x96xf32, #tpu.memory_space<vmem>>, vector<24x96xf32>
    %cst_134 = arith.constant dense<0.000000e+00> : vector<16x96xf32>
    %216 = tpu.matmul %214, %215, %cst_134 {dimension_numbers = #tpu.dot_dimension_numbers<[1], [0], [0], [1], [0, 0, 1, 1], [], []>} : vector<16x24xf32>, vector<24x96xf32>, vector<16x96xf32> -> vector<16x96xf32>
    %c0_135 = arith.constant 0 : index
    %c0_136 = arith.constant 0 : index
    %217 = vector.load %arg24[%c0_135, %c0_136] : memref<1x96xf32, #tpu.memory_space<vmem>>, vector<1x96xf32>
    %218 = vector.broadcast %217 : vector<1x96xf32> to vector<16x96xf32>
    %219 = arith.mulf %216, %218 : vector<16x96xf32>
    %c0_137 = arith.constant 0 : index
    %c0_138 = arith.constant 0 : index
    %220 = vector.load %arg25[%c0_137, %c0_138] : memref<1x96xf32, #tpu.memory_space<vmem>>, vector<1x96xf32>
    %221 = vector.broadcast %220 : vector<1x96xf32> to vector<16x96xf32>
    %222 = arith.addf %219, %221 : vector<16x96xf32>
    %cst_139 = arith.constant 0.000000e+00 : f32
    %223 = vector.broadcast %cst_139 : f32 to vector<16x96xf32>
    %224 = arith.maximumf %222, %223 : vector<16x96xf32>
    %c0_140 = arith.constant 0 : index
    %c0_141 = arith.constant 0 : index
    %225 = vector.load %arg26[%c0_140, %c0_141] : memref<144x16xf32, #tpu.memory_space<vmem>>, vector<144x16xf32>
    %cst_142 = arith.constant dense<0.000000e+00> : vector<144x96xf32>
    %226 = tpu.matmul %225, %224, %cst_142 {dimension_numbers = #tpu.dot_dimension_numbers<[1], [0], [0], [1], [0, 0, 1, 1], [], []>} : vector<144x16xf32>, vector<16x96xf32>, vector<144x96xf32> -> vector<144x96xf32>
    %cst_143 = arith.constant 0.000000e+00 : f32
    %227 = vector.broadcast %cst_143 : f32 to vector<16x96xf32>
    %228 = vector.extract_strided_slice %226 {offsets = [0, 0], sizes = [16, 96], strides = [1, 1]} : vector<144x96xf32> to vector<16x96xf32>
    %c0_144 = arith.constant 0 : index
    %c0_145 = arith.constant 0 : index
    %c0_146 = arith.constant 0 : index
    %229 = vector.load %arg27[%c0_144, %c0_145, %c0_146] : memref<9x1x96xf32, #tpu.memory_space<vmem>>, vector<1x1x96xf32>
    %230 = vector.shape_cast %229 : vector<1x1x96xf32> to vector<1x96xf32>
    %231 = vector.broadcast %230 : vector<1x96xf32> to vector<16x96xf32>
    %232 = arith.mulf %228, %231 : vector<16x96xf32>
    %233 = arith.addf %227, %232 : vector<16x96xf32>
    %234 = vector.extract_strided_slice %226 {offsets = [16, 0], sizes = [16, 96], strides = [1, 1]} : vector<144x96xf32> to vector<16x96xf32>
    %c1_147 = arith.constant 1 : index
    %c0_148 = arith.constant 0 : index
    %c0_149 = arith.constant 0 : index
    %235 = vector.load %arg27[%c1_147, %c0_148, %c0_149] : memref<9x1x96xf32, #tpu.memory_space<vmem>>, vector<1x1x96xf32>
    %236 = vector.shape_cast %235 : vector<1x1x96xf32> to vector<1x96xf32>
    %237 = vector.broadcast %236 : vector<1x96xf32> to vector<16x96xf32>
    %238 = arith.mulf %234, %237 : vector<16x96xf32>
    %239 = arith.addf %233, %238 : vector<16x96xf32>
    %240 = vector.extract_strided_slice %226 {offsets = [32, 0], sizes = [16, 96], strides = [1, 1]} : vector<144x96xf32> to vector<16x96xf32>
    %c2_150 = arith.constant 2 : index
    %c0_151 = arith.constant 0 : index
    %c0_152 = arith.constant 0 : index
    %241 = vector.load %arg27[%c2_150, %c0_151, %c0_152] : memref<9x1x96xf32, #tpu.memory_space<vmem>>, vector<1x1x96xf32>
    %242 = vector.shape_cast %241 : vector<1x1x96xf32> to vector<1x96xf32>
    %243 = vector.broadcast %242 : vector<1x96xf32> to vector<16x96xf32>
    %244 = arith.mulf %240, %243 : vector<16x96xf32>
    %245 = arith.addf %239, %244 : vector<16x96xf32>
    %246 = vector.extract_strided_slice %226 {offsets = [48, 0], sizes = [16, 96], strides = [1, 1]} : vector<144x96xf32> to vector<16x96xf32>
    %c3_153 = arith.constant 3 : index
    %c0_154 = arith.constant 0 : index
    %c0_155 = arith.constant 0 : index
    %247 = vector.load %arg27[%c3_153, %c0_154, %c0_155] : memref<9x1x96xf32, #tpu.memory_space<vmem>>, vector<1x1x96xf32>
    %248 = vector.shape_cast %247 : vector<1x1x96xf32> to vector<1x96xf32>
    %249 = vector.broadcast %248 : vector<1x96xf32> to vector<16x96xf32>
    %250 = arith.mulf %246, %249 : vector<16x96xf32>
    %251 = arith.addf %245, %250 : vector<16x96xf32>
    %252 = vector.extract_strided_slice %226 {offsets = [64, 0], sizes = [16, 96], strides = [1, 1]} : vector<144x96xf32> to vector<16x96xf32>
    %c4_156 = arith.constant 4 : index
    %c0_157 = arith.constant 0 : index
    %c0_158 = arith.constant 0 : index
    %253 = vector.load %arg27[%c4_156, %c0_157, %c0_158] : memref<9x1x96xf32, #tpu.memory_space<vmem>>, vector<1x1x96xf32>
    %254 = vector.shape_cast %253 : vector<1x1x96xf32> to vector<1x96xf32>
    %255 = vector.broadcast %254 : vector<1x96xf32> to vector<16x96xf32>
    %256 = arith.mulf %252, %255 : vector<16x96xf32>
    %257 = arith.addf %251, %256 : vector<16x96xf32>
    %258 = vector.extract_strided_slice %226 {offsets = [80, 0], sizes = [16, 96], strides = [1, 1]} : vector<144x96xf32> to vector<16x96xf32>
    %c5_159 = arith.constant 5 : index
    %c0_160 = arith.constant 0 : index
    %c0_161 = arith.constant 0 : index
    %259 = vector.load %arg27[%c5_159, %c0_160, %c0_161] : memref<9x1x96xf32, #tpu.memory_space<vmem>>, vector<1x1x96xf32>
    %260 = vector.shape_cast %259 : vector<1x1x96xf32> to vector<1x96xf32>
    %261 = vector.broadcast %260 : vector<1x96xf32> to vector<16x96xf32>
    %262 = arith.mulf %258, %261 : vector<16x96xf32>
    %263 = arith.addf %257, %262 : vector<16x96xf32>
    %264 = vector.extract_strided_slice %226 {offsets = [96, 0], sizes = [16, 96], strides = [1, 1]} : vector<144x96xf32> to vector<16x96xf32>
    %c6_162 = arith.constant 6 : index
    %c0_163 = arith.constant 0 : index
    %c0_164 = arith.constant 0 : index
    %265 = vector.load %arg27[%c6_162, %c0_163, %c0_164] : memref<9x1x96xf32, #tpu.memory_space<vmem>>, vector<1x1x96xf32>
    %266 = vector.shape_cast %265 : vector<1x1x96xf32> to vector<1x96xf32>
    %267 = vector.broadcast %266 : vector<1x96xf32> to vector<16x96xf32>
    %268 = arith.mulf %264, %267 : vector<16x96xf32>
    %269 = arith.addf %263, %268 : vector<16x96xf32>
    %270 = vector.extract_strided_slice %226 {offsets = [112, 0], sizes = [16, 96], strides = [1, 1]} : vector<144x96xf32> to vector<16x96xf32>
    %c7_165 = arith.constant 7 : index
    %c0_166 = arith.constant 0 : index
    %c0_167 = arith.constant 0 : index
    %271 = vector.load %arg27[%c7_165, %c0_166, %c0_167] : memref<9x1x96xf32, #tpu.memory_space<vmem>>, vector<1x1x96xf32>
    %272 = vector.shape_cast %271 : vector<1x1x96xf32> to vector<1x96xf32>
    %273 = vector.broadcast %272 : vector<1x96xf32> to vector<16x96xf32>
    %274 = arith.mulf %270, %273 : vector<16x96xf32>
    %275 = arith.addf %269, %274 : vector<16x96xf32>
    %276 = vector.extract_strided_slice %226 {offsets = [128, 0], sizes = [16, 96], strides = [1, 1]} : vector<144x96xf32> to vector<16x96xf32>
    %c8_168 = arith.constant 8 : index
    %c0_169 = arith.constant 0 : index
    %c0_170 = arith.constant 0 : index
    %277 = vector.load %arg27[%c8_168, %c0_169, %c0_170] : memref<9x1x96xf32, #tpu.memory_space<vmem>>, vector<1x1x96xf32>
    %278 = vector.shape_cast %277 : vector<1x1x96xf32> to vector<1x96xf32>
    %279 = vector.broadcast %278 : vector<1x96xf32> to vector<16x96xf32>
    %280 = arith.mulf %276, %279 : vector<16x96xf32>
    %281 = arith.addf %275, %280 : vector<16x96xf32>
    %c0_171 = arith.constant 0 : index
    %c0_172 = arith.constant 0 : index
    %282 = vector.load %arg28[%c0_171, %c0_172] : memref<1x96xf32, #tpu.memory_space<vmem>>, vector<1x96xf32>
    %283 = vector.broadcast %282 : vector<1x96xf32> to vector<16x96xf32>
    %284 = arith.mulf %281, %283 : vector<16x96xf32>
    %c0_173 = arith.constant 0 : index
    %c0_174 = arith.constant 0 : index
    %285 = vector.load %arg29[%c0_173, %c0_174] : memref<1x96xf32, #tpu.memory_space<vmem>>, vector<1x96xf32>
    %286 = vector.broadcast %285 : vector<1x96xf32> to vector<16x96xf32>
    %287 = arith.addf %284, %286 : vector<16x96xf32>
    %cst_175 = arith.constant 0.000000e+00 : f32
    %288 = vector.broadcast %cst_175 : f32 to vector<16x96xf32>
    %289 = arith.maximumf %287, %288 : vector<16x96xf32>
    %c0_176 = arith.constant 0 : index
    %c0_177 = arith.constant 0 : index
    %290 = vector.load %arg30[%c0_176, %c0_177] : memref<96x24xf32, #tpu.memory_space<vmem>>, vector<96x24xf32>
    %cst_178 = arith.constant dense<0.000000e+00> : vector<16x24xf32>
    %291 = tpu.matmul %289, %290, %cst_178 {dimension_numbers = #tpu.dot_dimension_numbers<[1], [0], [0], [1], [0, 0, 1, 1], [], []>} : vector<16x96xf32>, vector<96x24xf32>, vector<16x24xf32> -> vector<16x24xf32>
    %c0_179 = arith.constant 0 : index
    %c0_180 = arith.constant 0 : index
    %292 = vector.load %arg31[%c0_179, %c0_180] : memref<1x24xf32, #tpu.memory_space<vmem>>, vector<1x24xf32>
    %293 = vector.broadcast %292 : vector<1x24xf32> to vector<16x24xf32>
    %294 = arith.mulf %291, %293 : vector<16x24xf32>
    %c0_181 = arith.constant 0 : index
    %c0_182 = arith.constant 0 : index
    %295 = vector.load %arg32[%c0_181, %c0_182] : memref<1x24xf32, #tpu.memory_space<vmem>>, vector<1x24xf32>
    %296 = vector.broadcast %295 : vector<1x24xf32> to vector<16x24xf32>
    %297 = arith.addf %294, %296 : vector<16x24xf32>
    %298 = arith.addf %297, %214 : vector<16x24xf32>
    %c0_183 = arith.constant 0 : index
    %c0_184 = arith.constant 0 : index
    %c0_185 = arith.constant 0 : index
    %299 = vector.load %arg33[%c0_183, %c0_184, %c0_185] : memref<1x16x24xf32, #tpu.memory_space<vmem>>, vector<1x16x24xf32>
    %300 = vector.shape_cast %299 : vector<1x16x24xf32> to vector<16x24xf32>
    %301 = vector.shape_cast %298 : vector<16x24xf32> to vector<1x16x24xf32>
    tpu.vector_store %arg33[%c0_183, %c0_184, %c0_185], %301 {strides = array<i32>} : memref<1x16x24xf32, #tpu.memory_space<vmem>>, vector<1x16x24xf32>,
    return
  }
  func.func @transform_0(%arg0: i32) -> (i32, i32, i32) {
    %c0_i32 = arith.constant 0 : i32
    %c0_i32_0 = arith.constant 0 : i32
    %c0_i32_1 = arith.constant 0 : i32
    return %arg0, %c0_i32, %c0_i32_0 : i32, i32, i32
  }
  func.func @transform_1(%arg0: i32) -> (i32, i32) {
    %c0_i32 = arith.constant 0 : i32
    %c0_i32_0 = arith.constant 0 : i32
    %c0_i32_1 = arith.constant 0 : i32
    return %c0_i32, %c0_i32_0 : i32, i32
  }
  func.func @transform_2(%arg0: i32) -> (i32, i32, i32) {
    %c0_i32 = arith.constant 0 : i32
    %c0_i32_0 = arith.constant 0 : i32
    %c0_i32_1 = arith.constant 0 : i32
    %c0_i32_2 = arith.constant 0 : i32
    return %c0_i32, %c0_i32_0, %c0_i32_1 : i32, i32, i32
  }
  func.func @transform_3(%arg0: i32) -> (i32, i32) {
    %c0_i32 = arith.constant 0 : i32
    %c0_i32_0 = arith.constant 0 : i32
    %c0_i32_1 = arith.constant 0 : i32
    return %c0_i32, %c0_i32_0 : i32, i32
  }
  func.func @transform_4(%arg0: i32) -> (i32, i32) {
    %c0_i32 = arith.constant 0 : i32
    %c0_i32_0 = arith.constant 0 : i32
    %c0_i32_1 = arith.constant 0 : i32
    return %c0_i32, %c0_i32_0 : i32, i32
  }
  func.func @transform_5(%arg0: i32) -> (i32, i32) {
    %c0_i32 = arith.constant 0 : i32
    %c0_i32_0 = arith.constant 0 : i32
    %c0_i32_1 = arith.constant 0 : i32
    return %c0_i32, %c0_i32_0 : i32, i32
  }
  func.func @transform_6(%arg0: i32) -> (i32, i32, i32) {
    %c0_i32 = arith.constant 0 : i32
    %c0_i32_0 = arith.constant 0 : i32
    %c0_i32_1 = arith.constant 0 : i32
    %c0_i32_2 = arith.constant 0 : i32
    return %c0_i32, %c0_i32_0, %c0_i32_1 : i32, i32, i32
  }
  func.func @transform_7(%arg0: i32) -> (i32, i32) {
    %c0_i32 = arith.constant 0 : i32
    %c0_i32_0 = arith.constant 0 : i32
    %c0_i32_1 = arith.constant 0 : i32
    return %c0_i32, %c0_i32_0 : i32, i32
  }
  func.func @transform_8(%arg0: i32) -> (i32, i32) {
    %c0_i32 = arith.constant 0 : i32
    %c0_i32_0 = arith.constant 0 : i32
    %c0_i32_1 = arith.constant 0 : i32
    return %c0_i32, %c0_i32_0 : i32, i32
  }
  func.func @transform_9(%arg0: i32) -> (i32, i32) {
    %c0_i32 = arith.constant 0 : i32
    %c0_i32_0 = arith.constant 0 : i32
    %c0_i32_1 = arith.constant 0 : i32
    return %c0_i32, %c0_i32_0 : i32, i32
  }
  func.func @transform_10(%arg0: i32) -> (i32, i32) {
    %c0_i32 = arith.constant 0 : i32
    %c0_i32_0 = arith.constant 0 : i32
    %c0_i32_1 = arith.constant 0 : i32
    return %c0_i32, %c0_i32_0 : i32, i32
  }
  func.func @transform_11(%arg0: i32) -> (i32, i32) {
    %c0_i32 = arith.constant 0 : i32
    %c0_i32_0 = arith.constant 0 : i32
    %c0_i32_1 = arith.constant 0 : i32
    return %c0_i32, %c0_i32_0 : i32, i32
  }
  func.func @transform_12(%arg0: i32) -> (i32, i32) {
    %c0_i32 = arith.constant 0 : i32
    %c0_i32_0 = arith.constant 0 : i32
    %c0_i32_1 = arith.constant 0 : i32
    return %c0_i32, %c0_i32_0 : i32, i32
  }
  func.func @transform_13(%arg0: i32) -> (i32, i32) {
    %c0_i32 = arith.constant 0 : i32
    %c0_i32_0 = arith.constant 0 : i32
    %c0_i32_1 = arith.constant 0 : i32
    return %c0_i32, %c0_i32_0 : i32, i32
  }
  func.func @transform_14(%arg0: i32) -> (i32, i32) {
    %c0_i32 = arith.constant 0 : i32
    %c0_i32_0 = arith.constant 0 : i32
    %c0_i32_1 = arith.constant 0 : i32
    return %c0_i32, %c0_i32_0 : i32, i32
  }
  func.func @transform_15(%arg0: i32) -> (i32, i32) {
    %c0_i32 = arith.constant 0 : i32
    %c0_i32_0 = arith.constant 0 : i32
    %c0_i32_1 = arith.constant 0 : i32
    return %c0_i32, %c0_i32_0 : i32, i32
  }
  func.func @transform_16(%arg0: i32) -> (i32, i32, i32) {
    %c0_i32 = arith.constant 0 : i32
    %c0_i32_0 = arith.constant 0 : i32
    %c0_i32_1 = arith.constant 0 : i32
    %c0_i32_2 = arith.constant 0 : i32
    return %c0_i32, %c0_i32_0, %c0_i32_1 : i32, i32, i32
  }
  func.func @transform_17(%arg0: i32) -> (i32, i32) {
    %c0_i32 = arith.constant 0 : i32
    %c0_i32_0 = arith.constant 0 : i32
    %c0_i32_1 = arith.constant 0 : i32
    return %c0_i32, %c0_i32_0 : i32, i32
  }
  func.func @transform_18(%arg0: i32) -> (i32, i32) {
    %c0_i32 = arith.constant 0 : i32
    %c0_i32_0 = arith.constant 0 : i32
    %c0_i32_1 = arith.constant 0 : i32
    return %c0_i32, %c0_i32_0 : i32, i32
  }
  func.func @transform_19(%arg0: i32) -> (i32, i32) {
    %c0_i32 = arith.constant 0 : i32
    %c0_i32_0 = arith.constant 0 : i32
    %c0_i32_1 = arith.constant 0 : i32
    return %c0_i32, %c0_i32_0 : i32, i32
  }
  func.func @transform_20(%arg0: i32) -> (i32, i32) {
    %c0_i32 = arith.constant 0 : i32
    %c0_i32_0 = arith.constant 0 : i32
    %c0_i32_1 = arith.constant 0 : i32
    return %c0_i32, %c0_i32_0 : i32, i32
  }
  func.func @transform_21(%arg0: i32) -> (i32, i32) {
    %c0_i32 = arith.constant 0 : i32
    %c0_i32_0 = arith.constant 0 : i32
    %c0_i32_1 = arith.constant 0 : i32
    return %c0_i32, %c0_i32_0 : i32, i32
  }
  func.func @transform_22(%arg0: i32) -> (i32, i32) {
    %c0_i32 = arith.constant 0 : i32
    %c0_i32_0 = arith.constant 0 : i32
    %c0_i32_1 = arith.constant 0 : i32
    return %c0_i32, %c0_i32_0 : i32, i32
  }
  func.func @transform_23(%arg0: i32) -> (i32, i32) {
    %c0_i32 = arith.constant 0 : i32
    %c0_i32_0 = arith.constant 0 : i32
    %c0_i32_1 = arith.constant 0 : i32
    return %c0_i32, %c0_i32_0 : i32, i32
  }
  func.func @transform_24(%arg0: i32) -> (i32, i32) {
    %c0_i32 = arith.constant 0 : i32
    %c0_i32_0 = arith.constant 0 : i32
    %c0_i32_1 = arith.constant 0 : i32
    return %c0_i32, %c0_i32_0 : i32, i32
  }
  func.func @transform_25(%arg0: i32) -> (i32, i32) {
    %c0_i32 = arith.constant 0 : i32
    %c0_i32_0 = arith.constant 0 : i32
    %c0_i32_1 = arith.constant 0 : i32
    return %c0_i32, %c0_i32_0 : i32, i32
  }
  func.func @transform_26(%arg0: i32) -> (i32, i32, i32) {
    %c0_i32 = arith.constant 0 : i32
    %c0_i32_0 = arith.constant 0 : i32
    %c0_i32_1 = arith.constant 0 : i32
    %c0_i32_2 = arith.constant 0 : i32
    return %c0_i32, %c0_i32_0, %c0_i32_1 : i32, i32, i32
  }
  func.func @transform_27(%arg0: i32) -> (i32, i32) {
    %c0_i32 = arith.constant 0 : i32
    %c0_i32_0 = arith.constant 0 : i32
    %c0_i32_1 = arith.constant 0 : i32
    return %c0_i32, %c0_i32_0 : i32, i32
  }
  func.func @transform_28(%arg0: i32) -> (i32, i32) {
    %c0_i32 = arith.constant 0 : i32
    %c0_i32_0 = arith.constant 0 : i32
    %c0_i32_1 = arith.constant 0 : i32
    return %c0_i32, %c0_i32_0 : i32, i32
  }
  func.func @transform_29(%arg0: i32) -> (i32, i32) {
    %c0_i32 = arith.constant 0 : i32
    %c0_i32_0 = arith.constant 0 : i32
    %c0_i32_1 = arith.constant 0 : i32
    return %c0_i32, %c0_i32_0 : i32, i32
  }
  func.func @transform_30(%arg0: i32) -> (i32, i32) {
    %c0_i32 = arith.constant 0 : i32
    %c0_i32_0 = arith.constant 0 : i32
    %c0_i32_1 = arith.constant 0 : i32
    return %c0_i32, %c0_i32_0 : i32, i32
  }
  func.func @transform_31(%arg0: i32) -> (i32, i32) {
    %c0_i32 = arith.constant 0 : i32
    %c0_i32_0 = arith.constant 0 : i32
    %c0_i32_1 = arith.constant 0 : i32
    return %c0_i32, %c0_i32_0 : i32, i32
  }
  func.func @transform_32(%arg0: i32) -> (i32, i32, i32) {
    %c0_i32 = arith.constant 0 : i32
    %c0_i32_0 = arith.constant 0 : i32
    %c0_i32_1 = arith.constant 0 : i32
    return %arg0, %c0_i32, %c0_i32_0 : i32, i32, i32
  }
}

</mosaic_0001>

<bundles_post_ra>
// kernel: childnet_fcn_forward.1
= control target key start
LH: loop header
LB: loop body
LE: loop exit
PB: predicated region body
PF: predicated region fallthrough
CT: control target
= control target key end

     0   :  { %s8707_s6 = smov 1   ;;  %s8708_s10 = smov 2   ;;  %s9928_s0 = inlined_call_operand.smem [shape: u32[33], index: -1, kind: input, shape index: {}] }
   0x1   :  { %s8790_s5 = sld [smem:[%s9928_s0]]   ;;  %s8709_s14 = smov 3  }
   0x2   :  { %s8795_s9 = sld [smem:[%s9928_s0 + %s8707_s6]]   ;;  %s8710_s18 = smov 4  }
   0x3   :  { %s8800_s13 = sld [smem:[%s9928_s0 + %s8708_s10]]   ;;  %s8711_s22 = smov 5  }
   0x4   :  { %s8805_s17 = sld [smem:[%s9928_s0 + %s8709_s14]]   ;;  %s8712_s26 = smov 6  }
   0x5   :  { %s8810_s21 = sld [smem:[%s9928_s0 + %s8710_s18]]   ;;  %s8713_s30 = smov 7  }
   0x6   :  { %s8815_s25 = sld [smem:[%s9928_s0 + %s8711_s22]]   ;;  %s8714_s4 = smov 8  }
   0x7   :  { %9983 = sst [smem:[#allocation71_spill]] %s8790_s5  ;;  %s8715_s10 = smov 9  }
   0x8   :  { %9984 = sst [smem:[#allocation72_spill]] %s8795_s9  ;;  %s8716_s15 = smov 10  }
   0x9   :  { %9985 = sst [smem:[#allocation73_spill]] %s8800_s13  ;;  %s8717_s20 = smov 11  }
   0xa   :  { %s8820_s29 = sld [smem:[%s9928_s0 + %s8712_s26]]   ;;  %s8718_s26 = smov 12  }
   0xb   :  { %9986 = sst [smem:[#allocation74_spill]] %s8810_s21  ;;  %s8719_s1 = smov 13  }
   0xc   :  { %s8825_s3 = sld [smem:[%s9928_s0 + %s8713_s30]]   ;;  %s8720_s7 = smov 14  }
   0xd   :  { %s8830_s8 = sld [smem:[%s9928_s0 + %s8714_s4]]   ;;  %s8722_s22 = smov 16  }
   0xe   :  { %s8835_s14 = sld [smem:[%s9928_s0 + %s8715_s10]]   ;;  %s8723_s28 = smov 17  }
   0xf   :  { %s8840_s19 = sld [smem:[%s9928_s0 + %s8716_s15]]   ;;  %s8721_s15 = smov 15  }
  0x10   :  { %9987 = sst [smem:[#allocation75_spill]] %s8820_s29 }
  0x11   :  { %s8845_s24 = sld [smem:[%s9928_s0 + %s8717_s20]]  }
  0x12   :  { %9988 = sst [smem:[#allocation76_spill]] %s8825_s3 }
  0x13   :  { %9989 = sst [smem:[#allocation77_spill]] %s8830_s8 }
  0x14   :  { %9990 = sst [smem:[#allocation78_spill]] %s8835_s14 }
  0x15   :  { %9991 = sst [smem:[#allocation79_spill]] %s8840_s19 }
  0x16   :  { %s8850_s30 = sld [smem:[%s9928_s0 + %s8718_s26]]  }
  0x17   :  { %s8855_s6 = sld [smem:[%s9928_s0 + %s8719_s1]]  }
  0x18   :  { %s8860_s12 = sld [smem:[%s9928_s0 + %s8720_s7]]   ;;  %s8724_s7 = smov 18  }
  0x19   :  { %s8865_s20 = sld [smem:[%s9928_s0 + %s8721_s15]]   ;;  %s8725_s15 = smov 19  }
  0x1a   :  { %s8870_s27 = sld [smem:[%s9928_s0 + %s8722_s22]]   ;;  %s8726_s22 = smov 20  }
  0x1b   :  { %s8875_s4 = sld [smem:[%s9928_s0 + %s8723_s28]]   ;;  %s8727_s28 = smov 21  }
  0x1c   :  { %9992 = sst [smem:[#allocation80_spill]] %s8850_s30 }
  0x1d   :  { %9993 = sst [smem:[#allocation81_spill]] %s8855_s6 }
  0x1e   :  { %9994 = sst [smem:[#allocation82_spill]] %s8860_s12 }
  0x1f   :  { %s8880_s5 = sld [smem:[%s9928_s0 + %s8724_s7]]   ;;  %s8728_s7 = smov 22  }
  0x20   :  { %9995 = sst [smem:[#allocation83_spill]] %s8870_s27 }
  0x21   :  { %9996 = sst [smem:[#allocation84_spill]] %s8875_s4 }
  0x22   :  { %s8885_s12 = sld [smem:[%s9928_s0 + %s8725_s15]]   ;;  %s8729_s15 = smov 23  }
  0x23   :  { %s8890_s27 = sld [smem:[%s9928_s0 + %s8726_s22]]   ;;  %s8730_s22 = smov 24  }
  0x24   :  { %s8895_s30 = sld [smem:[%s9928_s0 + %s8727_s28]]   ;;  %s8731_s28 = smov 25  }
  0x25   :  { %9997 = sst [smem:[#allocation85_spill]] %s8880_s5 }
  0x26   :  { %s8900_s5 = sld [smem:[%s9928_s0 + %s8728_s7]]   ;;  %s8732_s7 = smov 26  }
  0x27   :  { %s8905_s19 = sld [smem:[%s9928_s0 + %s8729_s15]]   ;;  %s8733_s15 = smov 27  }
  0x28   :  { %9998 = sst [smem:[#allocation86_spill]] %s8885_s12 }
  0x29   :  { %9999 = sst [smem:[#allocation87_spill]] %s8890_s27 }
  0x2a   :  { %s8910_s27 = sld [smem:[%s9928_s0 + %s8730_s22]]   ;;  %s8734_s22 = smov 28  }
  0x2b   :  { %s8915_s8 = sld [smem:[%s9928_s0 + %s8731_s28]]   ;;  %s8735_s28 = smov 29  }
  0x2c   :  { %10000 = sst [smem:[#allocation88_spill]] %s8900_s5 }
  0x2d   :  { %s8920_s5 = sld [smem:[%s9928_s0 + %s8732_s7]]   ;;  %s8736_s7 = smov 30  }
  0x2e   :  { %s8925_s29 = sld [smem:[%s9928_s0 + %s8733_s15]]   ;;  %s8737_s15 = smov 31  }
  0x2f   :  { %s8935_s21 = sld [smem:[%s9928_s0 + %s8735_s28]]  }
  0x30   :  { %10001 = sst [smem:[#allocation89_spill]] %s8910_s27 }
  0x31   :  { %10002 = sst [smem:[#allocation90_spill]] %s8915_s8 }
  0x32   :  { %s8930_s27 = sld [smem:[%s9928_s0 + %s8734_s22]]   ;;  %s8738_s22 = smov 32  }
  0x33   :  { %10003 = sst [smem:[#allocation91_spill]] %s8920_s5 }
  0x34   :  { %s8940_s5 = sld [smem:[%s9928_s0 + %s8736_s7]]  }
  0x35   :  { %s8945_s13 = sld [smem:[%s9928_s0 + %s8737_s15]]  }
  0x38   :  { %10004 = sst [smem:[#allocation92_spill]] %s8930_s27 }
  0x39   :  { %s8950_s27 = sld [smem:[%s9928_s0 + %s8738_s22]]  }
  0x3a   :  { %10005 = sst [smem:[#allocation93_spill]] %s8940_s5 }
  0x3b   :  { %10006 = sst [smem:[#allocation94_spill]] %s8945_s13 }
  0x3f   :  { %10007 = sst [smem:[#allocation95_spill]] %s8950_s27 }
  0x40   :  { %70 = vsyncpa [#allocation3], 0 }
  0x41   :  { %72 = vsyncpa [#allocation3 + $0x1], 0 }
  0x42   :  { %73 = vsyncpa [#allocation6], 0 }
  0x43   :  { %74 = vsyncpa [#allocation9], 0 }
  0x44   :  { %75 = vsyncpa [#allocation12], 0 }
  0x45   :  { %76 = vsyncpa [#allocation15], 0 }
  0x46   :  { %77 = vsyncpa [#allocation18], 0 }
  0x47   :  { %78 = vsyncpa [#allocation21], 0 }
  0x48   :  { %79 = vsyncpa [#allocation24], 0 }
  0x49   :  { %80 = vsyncpa [#allocation27], 0 }
  0x4a   :  { %81 = vsyncpa [#allocation30], 0 }
  0x4b   :  { %82 = vsyncpa [#allocation33], 0 }
  0x4c   :  { %83 = vsyncpa [#allocation36], 0 }
  0x4d   :  { %84 = vsyncpa [#allocation39], 0 }
  0x4e   :  { %85 = vsyncpa [#allocation42], 0 }
  0x4f   :  { %86 = vsyncpa [#allocation45], 0 }
  0x50   :  { %87 = vsyncpa [#allocation48], 0 }
  0x51   :  { %88 = vsyncpa [#allocation51], 0 }
  0x52   :  { %89 = vsyncpa [#allocation4], 0 }
  0x53   :  { %91 = vsyncpa [#allocation4 + $0x1], 0  ;;  %s8952_s0 = smov 0   ;;  %s8954_s28 = smov 0  }
  0x54   :  { %s8956_s1 = smov 0   ;;  %s8958_s2 = smov 0  }
  0x55 LB: > { %s10008_s13 = sld [smem:[#allocation94_spill]]  ;;  %s10009_s5 = sld [smem:[#allocation93_spill]]  ;;  %s8693_s0 = sphi %s8952_s0, %s10086_s0   ;;  %s8705_s2 = sphi %s8958_s2, %s10089_s2   ;;  %s8701_s1 = sphi %s8956_s1, %s10088_s1   ;;  %s8697_s28 = sphi %s8954_s28, %s10087_s28  }
  0x56   : > { %s10010_s14 = sld [smem:[#allocation78_spill]]  ;;  %s10012_s8 = sld [smem:[#allocation90_spill]] }
  0x57   : > { %s10011_s12 = sld [smem:[#allocation86_spill]]  ;;  %s10013_s6 = sld [smem:[#allocation81_spill]] }
  0x58   : > { %s10014_s4 = sld [smem:[#allocation84_spill]]  ;;  %s10016_s9 = sld [smem:[#allocation72_spill]] }
  0x59   : > { %s10015_s3 = sld [smem:[#allocation76_spill]]  ;;  %s8739_s7 = smov [#allocation5]  }
  0x5a   : > { %s817_s10 = sshll.u32 %s8739_s7, 4  ;;  %s8973_s11 = sadd.s32 4294967295, %s8705_s2   ;;  %s8978_s10 = int_to_ptr.vmem [resolvable:$true] %s817_s10 }
  0x5b   : > { %10017 = sst [smem:[#allocation96_spill]] %s8973_s11  ;;  %p6078_p0 = scmp.ge.s32.totalorder %s8705_s2, 1 }
  0x5c   : > { %p9945_p1 = scmp.eq.s32.totalorder %s8973_s11, 0  ;;  %p805_p2 = scmp.lt.s32.totalorder %s8705_s2, 3 }
  0x5d   : > { %s8740_s16 = smov [#allocation8]   ;;  %s8741_s23 = smov [#allocation11]  }
  0x5e   : > { %p8980_p3 = pnand %p6078_p0, %p805_p2  ;;  %s844_s18 = sshll.u32 %s8740_s16, 4  ;;  %s8993_s18 = int_to_ptr.vmem [resolvable:$true] %s844_s18 }
  0x5f   : > { %s865_s26 = sshll.u32 %s8741_s23, 4  ;;  %s7677_s7 = scalar_lea.hbm %s10016_s9, 18432  ;;  %s8995_s26 = int_to_ptr.vmem [resolvable:$true] %s865_s26 }
  0x60   : > { %s10018_s15 = scalar_select %p8980_p3, 1, 0 }
  0x61   : > { %p7406_p5 = pneg %p8980_p3  ;;  %p7678_p7 = scmp.ne.s32.totalorder %s10016_s9, %s7677_s7 }
  0x62   : > { %10019 = sst [smem:[#allocation97_spill]] %s10018_s15  ;;  %p7684_p11 = scmp.lt.u32.totalorder %s7677_s7, %s10016_s9 }
  0x63   : > { %p8989_p6 = pnand %p7406_p5, %p9945_p1 }
  0x65   : > { %p9001_p8 = pneg %p8989_p6 }
  0x67   : > { %p7680_p9 = pnand %p9001_p8, %p7678_p7 }
  0x69   : > { %p7681_p10 = pneg %p7680_p9 }
  0x6b   : > { %p7686_p12 = pnand %p7684_p11, %p7681_p10 }
  0x6d   : > { %7689 = shalt.err (!%p7686_p12)
}
  0x6e   : > { %s7690_s16 = scalar_lea.vmem %s8978_s10, 18432  ;;  %p7698_p5 = scmp.lt.s32.totalorder %s8978_s10, %s8978_s10 }
  0x6f   : > { %p7691_p13 = scmp.ne.s32.totalorder %s8978_s10, %s7690_s16  ;;  %p7699_p4 = scmp.lt.s32.totalorder %s7690_s16, %s7690_s16 }
  0x71   : > { %p7693_p0 = pnand %p7691_p13, %p9001_p8  ;;  %p7700_p1 = por %p7699_p4, %p7698_p5 }
  0x73   : > { %p7694_p2 = pneg %p7693_p0 }
  0x75   : > { %p7701_p3 = pnand %p7700_p1, %p7694_p2 }
  0x77   : > { %7704 = shalt.err (!%p7701_p3)
}
  0x78   : > { %s8742_s23 = smov 256   ;;  %s9951_s7 = smov 16  }
  0x79   : > { %7409 = dma.hbm_to_vmem [thread:$0]  (!%p8989_p6), %s10016_s9, 18432, %s8978_s10, [#allocation6], %s8742_s23, %s8742_s23, %s9951_s7  }
  0x7a   : > { %s7705_s15 = scalar_lea.hbm %s8805_s17, 16 }
  0x7b   : > { %p7706_p7 = scmp.ne.s32.totalorder %s8805_s17, %s7705_s15  ;;  %p7712_p4 = scmp.lt.u32.totalorder %s7705_s15, %s8805_s17 }
  0x7d   : > { %p7708_p9 = pnand %p7706_p7, %p9001_p8 }
  0x7f   : > { %p7709_p10 = pneg %p7708_p9 }
  0x81   : > { %p7714_p1 = pnand %p7712_p4, %p7709_p10 }
  0x83   : > { %7717 = shalt.err (!%p7714_p1)
}
  0x84   : > { %s7718_s16 = scalar_lea.vmem %s8993_s18, 16  ;;  %s7725_s11 = scalar_lea.vmem %s8993_s18, 32 }
  0x85   : > { %p7719_p3 = scmp.ne.s32.totalorder %s8993_s18, %s7718_s16  ;;  %p7726_p13 = scmp.lt.s32.totalorder %s8993_s18, %s8993_s18 }
  0x86   : > { %p7727_p0 = scmp.lt.s32.totalorder %s7725_s11, %s7718_s16 }
  0x87   : > { %p7721_p11 = pnand %p7719_p3, %p9001_p8 }
  0x88   : > { %p7728_p2 = por %p7727_p0, %p7726_p13 }
  0x89   : > { %p7722_p12 = pneg %p7721_p11 }
  0x8b   : > { %p7729_p5 = pnand %p7728_p2, %p7722_p12 }
  0x8d   : > { %7732 = shalt.err (!%p7729_p5)
}
  0x8e   : > { %7415 = dma.hbm_to_vmem [thread:$0]  (!%p8989_p6), %s8805_s17, 16, %s8993_s18, [#allocation9]  }
  0x8f   : > { %s7733_s10 = scalar_lea.hbm %s8815_s25, 9216 }
  0x90   : > { %p7734_p7 = scmp.ne.s32.totalorder %s8815_s25, %s7733_s10  ;;  %p7740_p4 = scmp.lt.u32.totalorder %s7733_s10, %s8815_s25 }
  0x92   : > { %p7736_p9 = pnand %p7734_p7, %p9001_p8 }
  0x94   : > { %p7737_p10 = pneg %p7736_p9 }
  0x96   : > { %p7742_p1 = pnand %p7740_p4, %p7737_p10 }
  0x98   : > { %7745 = shalt.err (!%p7742_p1)
}
  0x99   : > { %s7746_s11 = scalar_lea.vmem %s8995_s26, 9216  ;;  %p7754_p13 = scmp.lt.s32.totalorder %s8995_s26, %s8995_s26 }
  0x9a   : > { %p7747_p3 = scmp.ne.s32.totalorder %s8995_s26, %s7746_s11  ;;  %p7755_p0 = scmp.lt.s32.totalorder %s7746_s11, %s7746_s11 }
  0x9c   : > { %p7749_p11 = pnand %p7747_p3, %p9001_p8  ;;  %p7756_p2 = por %p7755_p0, %p7754_p13 }
  0x9e   : > { %p7750_p12 = pneg %p7749_p11 }
  0xa0   : > { %p7757_p5 = pnand %p7756_p2, %p7750_p12 }
  0xa2   : > { %7760 = shalt.err (!%p7757_p5)
}
  0xa3   : > { %s9954_s15 = smov 128   ;;  %s9956_s18 = smov 8  }
  0xa4   : > { %7421 = dma.hbm_to_vmem [thread:$0]  (!%p8989_p6), %s8815_s25, 9216, %s8995_s26, [#allocation12], %s9954_s15, %s9954_s15, %s9956_s18  }
  0xa5   : > { %s8746_s23 = smov [#allocation14]   ;;  %s8747_s10 = smov [#allocation17]  }
  0xa6   : > { %s892_s16 = sshll.u32 %s8746_s23, 4  ;;  %s913_s11 = sshll.u32 %s8747_s10, 4  ;;  %s893_s16 = int_to_ptr.vmem [resolvable:$true] %s892_s16  ;;  %s914_s11 = int_to_ptr.vmem [resolvable:$true] %s913_s11 }
  0xa7   : > { %s7761_s7 = scalar_lea.hbm %s10015_s3, 16 }
  0xa8   : > { %p7762_p7 = scmp.ne.s32.totalorder %s10015_s3, %s7761_s7  ;;  %p7768_p4 = scmp.lt.u32.totalorder %s7761_s7, %s10015_s3 }
  0xaa   : > { %p7764_p9 = pnand %p7762_p7, %p9001_p8 }
  0xac   : > { %p7765_p10 = pneg %p7764_p9 }
  0xae   : > { %p7770_p1 = pnand %p7768_p4, %p7765_p10 }
  0xb0   : > { %7773 = shalt.err (!%p7770_p1)
}
  0xb1   : > { %s7774_s9 = scalar_lea.vmem %s893_s16, 16  ;;  %s7781_s26 = scalar_lea.vmem %s893_s16, 32 }
  0xb2   : > { %p7775_p3 = scmp.ne.s32.totalorder %s893_s16, %s7774_s9  ;;  %p7782_p13 = scmp.lt.s32.totalorder %s893_s16, %s893_s16 }
  0xb3   : > { %p7783_p0 = scmp.lt.s32.totalorder %s7781_s26, %s7774_s9 }
  0xb4   : > { %p7777_p11 = pnand %p7775_p3, %p9001_p8 }
  0xb5   : > { %p7784_p2 = por %p7783_p0, %p7782_p13 }
  0xb6   : > { %p7778_p12 = pneg %p7777_p11 }
  0xb8   : > { %p7785_p5 = pnand %p7784_p2, %p7778_p12 }
  0xba   : > { %7788 = shalt.err (!%p7785_p5)
}
  0xbb   : > { %7427 = dma.hbm_to_vmem [thread:$0]  (!%p8989_p6), %s10015_s3, 16, %s893_s16, [#allocation15]  }
  0xbc   : > { %s7789_s7 = scalar_lea.hbm %s10010_s14, 256 }
  0xbd   : > { %p7790_p7 = scmp.ne.s32.totalorder %s10010_s14, %s7789_s7  ;;  %p7796_p4 = scmp.lt.u32.totalorder %s7789_s7, %s10010_s14 }
  0xbf   : > { %p7792_p9 = pnand %p7790_p7, %p9001_p8 }
  0xc1   : > { %p7793_p10 = pneg %p7792_p9 }
  0xc3   : > { %p7798_p1 = pnand %p7796_p4, %p7793_p10 }
  0xc5   : > { %7801 = shalt.err (!%p7798_p1)
}
  0xc6   : > { %s7802_s9 = scalar_lea.vmem %s914_s11, 256  ;;  %p7810_p13 = scmp.lt.s32.totalorder %s914_s11, %s914_s11 }
  0xc7   : > { %p7803_p3 = scmp.ne.s32.totalorder %s914_s11, %s7802_s9  ;;  %p7811_p0 = scmp.lt.s32.totalorder %s7802_s9, %s7802_s9 }
  0xc9   : > { %p7805_p11 = pnand %p7803_p3, %p9001_p8  ;;  %p7812_p2 = por %p7811_p0, %p7810_p13 }
  0xcb   : > { %p7806_p12 = pneg %p7805_p11 }
  0xcd   : > { %p7813_p5 = pnand %p7812_p2, %p7806_p12 }
  0xcf   : > { %7816 = shalt.err (!%p7813_p5)
}
  0xd0   : > { %7433 = dma.hbm_to_vmem [thread:$0]  (!%p8989_p6), %s10010_s14, 256, %s914_s11, [#allocation18], %s9954_s15, %s9954_s15, %s9956_s18  }
  0xd1   : > { %s8748_s23 = smov [#allocation20]   ;;  %s8749_s10 = smov [#allocation23]  }
  0xd2   : > { %s938_s16 = sshll.u32 %s8748_s23, 4  ;;  %s962_s26 = sshll.u32 %s8749_s10, 4  ;;  %s939_s16 = int_to_ptr.vmem [resolvable:$true] %s938_s16  ;;  %s963_s26 = int_to_ptr.vmem [resolvable:$true] %s962_s26 }
  0xd3   : > { %s7817_s7 = scalar_lea.hbm %s8845_s24, 16 }
  0xd4   : > { %p7818_p7 = scmp.ne.s32.totalorder %s8845_s24, %s7817_s7  ;;  %p7824_p4 = scmp.lt.u32.totalorder %s7817_s7, %s8845_s24 }
  0xd6   : > { %p7820_p9 = pnand %p7818_p7, %p9001_p8 }
  0xd8   : > { %p7821_p10 = pneg %p7820_p9 }
  0xda   : > { %p7826_p1 = pnand %p7824_p4, %p7821_p10 }
  0xdc   : > { %7829 = shalt.err (!%p7826_p1)
}
  0xdd   : > { %s7830_s9 = scalar_lea.vmem %s939_s16, 16  ;;  %s7837_s11 = scalar_lea.vmem %s939_s16, 32 }
  0xde   : > { %p7831_p3 = scmp.ne.s32.totalorder %s939_s16, %s7830_s9  ;;  %p7838_p13 = scmp.lt.s32.totalorder %s939_s16, %s939_s16 }
  0xdf   : > { %p7839_p0 = scmp.lt.s32.totalorder %s7837_s11, %s7830_s9 }
  0xe0   : > { %p7833_p11 = pnand %p7831_p3, %p9001_p8 }
  0xe1   : > { %p7840_p2 = por %p7839_p0, %p7838_p13 }
  0xe2   : > { %p7834_p12 = pneg %p7833_p11 }
  0xe4   : > { %p7841_p5 = pnand %p7840_p2, %p7834_p12 }
  0xe6   : > { %7844 = shalt.err (!%p7841_p5)
}
  0xe7   : > { %7439 = dma.hbm_to_vmem [thread:$0]  (!%p8989_p6), %s8845_s24, 16, %s939_s16, [#allocation21]  }
  0xe8   : > { %s7845_s23 = scalar_lea.hbm %s10013_s6, 16 }
  0xe9   : > { %p7846_p7 = scmp.ne.s32.totalorder %s10013_s6, %s7845_s23  ;;  %p7852_p4 = scmp.lt.u32.totalorder %s7845_s23, %s10013_s6 }
  0xeb   : > { %p7848_p9 = pnand %p7846_p7, %p9001_p8 }
  0xed   : > { %p7849_p10 = pneg %p7848_p9 }
  0xef   : > { %p7854_p1 = pnand %p7852_p4, %p7849_p10 }
  0xf1   : > { %7857 = shalt.err (!%p7854_p1)
}
  0xf2   : > { %s7858_s10 = scalar_lea.vmem %s963_s26, 16  ;;  %s7865_s7 = scalar_lea.vmem %s963_s26, 32 }
  0xf3   : > { %p7859_p3 = scmp.ne.s32.totalorder %s963_s26, %s7858_s10  ;;  %p7866_p13 = scmp.lt.s32.totalorder %s963_s26, %s963_s26 }
  0xf4   : > { %p7867_p0 = scmp.lt.s32.totalorder %s7865_s7, %s7858_s10 }
  0xf5   : > { %p7861_p11 = pnand %p7859_p3, %p9001_p8 }
  0xf6   : > { %p7868_p2 = por %p7867_p0, %p7866_p13 }
  0xf7   : > { %p7862_p12 = pneg %p7861_p11 }
  0xf9   : > { %p7869_p5 = pnand %p7868_p2, %p7862_p12 }
  0xfb   : > { %7872 = shalt.err (!%p7869_p5)
}
  0xfc   : > { %7445 = dma.hbm_to_vmem [thread:$0]  (!%p8989_p6), %s10013_s6, 16, %s963_s26, [#allocation24]  }
  0xfd   : > { %s8750_s16 = smov [#allocation26]   ;;  %s8751_s11 = smov [#allocation29]  }
  0xfe   : > { %s983_s9 = sshll.u32 %s8750_s16, 4  ;;  %s1010_s23 = sshll.u32 %s8751_s11, 4  ;;  %s984_s9 = int_to_ptr.vmem [resolvable:$true] %s983_s9  ;;  %s1011_s23 = int_to_ptr.vmem [resolvable:$true] %s1010_s23 }
  0xff   : > { %s7873_s15 = scalar_lea.hbm %s8865_s20, 2304 }
 0x100   : > { %p7874_p7 = scmp.ne.s32.totalorder %s8865_s20, %s7873_s15  ;;  %p7880_p4 = scmp.lt.u32.totalorder %s7873_s15, %s8865_s20 }
 0x102   : > { %p7876_p9 = pnand %p7874_p7, %p9001_p8 }
 0x104   : > { %p7877_p10 = pneg %p7876_p9 }
 0x106   : > { %p7882_p1 = pnand %p7880_p4, %p7877_p10 }
 0x108   : > { %7885 = shalt.err (!%p7882_p1)
}
 0x109   : > { %s7886_s10 = scalar_lea.vmem %s984_s9, 2304  ;;  %p7894_p13 = scmp.lt.s32.totalorder %s984_s9, %s984_s9 }
 0x10a   : > { %p7887_p3 = scmp.ne.s32.totalorder %s984_s9, %s7886_s10  ;;  %p7895_p0 = scmp.lt.s32.totalorder %s7886_s10, %s7886_s10 }
 0x10c   : > { %p7889_p11 = pnand %p7887_p3, %p9001_p8  ;;  %p7896_p2 = por %p7895_p0, %p7894_p13 }
 0x10e   : > { %p7890_p12 = pneg %p7889_p11 }
 0x110   : > { %p7897_p5 = pnand %p7896_p2, %p7890_p12 }
 0x112   : > { %7900 = shalt.err (!%p7897_p5)
}
 0x113   : > { %s10022_s26 = smov 128   ;;  %s7901_s15 = scalar_lea.hbm %s10014_s4, 16 }
 0x114   : > { %7451 = dma.hbm_to_vmem [thread:$0]  (!%p8989_p6), %s8865_s20, 2304, %s984_s9, [#allocation27], %s10022_s26, %s10022_s26, %s9956_s18  }
 0x115   : > { %p7902_p7 = scmp.ne.s32.totalorder %s10014_s4, %s7901_s15  ;;  %p7908_p4 = scmp.lt.u32.totalorder %s7901_s15, %s10014_s4 }
 0x117   : > { %p7904_p9 = pnand %p7902_p7, %p9001_p8 }
 0x119   : > { %p7905_p10 = pneg %p7904_p9 }
 0x11b   : > { %p7910_p1 = pnand %p7908_p4, %p7905_p10 }
 0x11d   : > { %7913 = shalt.err (!%p7910_p1)
}
 0x11e   : > { %s7914_s7 = scalar_lea.vmem %s1011_s23, 16  ;;  %s7921_s16 = scalar_lea.vmem %s1011_s23, 32 }
 0x11f   : > { %p7915_p3 = scmp.ne.s32.totalorder %s1011_s23, %s7914_s7  ;;  %p7922_p13 = scmp.lt.s32.totalorder %s1011_s23, %s1011_s23 }
 0x120   : > { %p7923_p0 = scmp.lt.s32.totalorder %s7921_s16, %s7914_s7 }
 0x121   : > { %p7917_p11 = pnand %p7915_p3, %p9001_p8 }
 0x122   : > { %p7924_p2 = por %p7923_p0, %p7922_p13 }
 0x123   : > { %p7918_p12 = pneg %p7917_p11 }
 0x125   : > { %p7925_p5 = pnand %p7924_p2, %p7918_p12 }
 0x127   : > { %7928 = shalt.err (!%p7925_p5)
}
 0x128   : > { %7457 = dma.hbm_to_vmem [thread:$0]  (!%p8989_p6), %s10014_s4, 16, %s1011_s23, [#allocation30]  }
 0x129   : > { %s8752_s9 = smov [#allocation32]   ;;  %s8753_s10 = smov [#allocation35]  }
 0x12a   : > { %s1031_s11 = sshll.u32 %s8752_s9, 4  ;;  %s1056_s15 = sshll.u32 %s8753_s10, 4  ;;  %s1032_s11 = int_to_ptr.vmem [resolvable:$true] %s1031_s11  ;;  %s1057_s15 = int_to_ptr.vmem [resolvable:$true] %s1056_s15 }
 0x12b   : > { %s7929_s18 = scalar_lea.hbm %s10011_s12, 1024 }
 0x12c   : > { %p7930_p7 = scmp.ne.s32.totalorder %s10011_s12, %s7929_s18  ;;  %p7936_p4 = scmp.lt.u32.totalorder %s7929_s18, %s10011_s12 }
 0x12e   : > { %p7932_p9 = pnand %p7930_p7, %p9001_p8 }
 0x130   : > { %p7933_p10 = pneg %p7932_p9 }
 0x132   : > { %p7938_p1 = pnand %p7936_p4, %p7933_p10 }
 0x134   : > { %7941 = shalt.err (!%p7938_p1)
}
 0x135   : > { %s7942_s7 = scalar_lea.vmem %s1032_s11, 1024  ;;  %p7950_p13 = scmp.lt.s32.totalorder %s1032_s11, %s1032_s11 }
 0x136   : > { %p7943_p3 = scmp.ne.s32.totalorder %s1032_s11, %s7942_s7  ;;  %p7951_p0 = scmp.lt.s32.totalorder %s7942_s7, %s7942_s7 }
 0x138   : > { %p7945_p11 = pnand %p7943_p3, %p9001_p8  ;;  %p7952_p2 = por %p7951_p0, %p7950_p13 }
 0x13a   : > { %p7946_p12 = pneg %p7945_p11 }
 0x13c   : > { %p7953_p5 = pnand %p7952_p2, %p7946_p12 }
 0x13e   : > { %7956 = shalt.err (!%p7953_p5)
}
 0x13f   : > { %s10023_s23 = smov 8   ;;  %s7957_s18 = scalar_lea.hbm %s8895_s30, 16 }
 0x140   : > { %7463 = dma.hbm_to_vmem [thread:$0]  (!%p8989_p6), %s10011_s12, 1024, %s1032_s11, [#allocation33], %s10022_s26, %s10022_s26, %s10023_s23  }
 0x141   : > { %p7958_p7 = scmp.ne.s32.totalorder %s8895_s30, %s7957_s18  ;;  %p7964_p4 = scmp.lt.u32.totalorder %s7957_s18, %s8895_s30 }
 0x143   : > { %p7960_p9 = pnand %p7958_p7, %p9001_p8 }
 0x145   : > { %p7961_p10 = pneg %p7960_p9 }
 0x147   : > { %p7966_p1 = pnand %p7964_p4, %p7961_p10 }
 0x149   : > { %7969 = shalt.err (!%p7966_p1)
}
 0x14a   : > { %s7970_s16 = scalar_lea.vmem %s1057_s15, 16  ;;  %s7977_s9 = scalar_lea.vmem %s1057_s15, 32 }
 0x14b   : > { %p7971_p3 = scmp.ne.s32.totalorder %s1057_s15, %s7970_s16  ;;  %p7978_p13 = scmp.lt.s32.totalorder %s1057_s15, %s1057_s15 }
 0x14c   : > { %p7979_p0 = scmp.lt.s32.totalorder %s7977_s9, %s7970_s16 }
 0x14d   : > { %p7973_p11 = pnand %p7971_p3, %p9001_p8 }
 0x14e   : > { %p7980_p2 = por %p7979_p0, %p7978_p13 }
 0x14f   : > { %p7974_p12 = pneg %p7973_p11 }
 0x151   : > { %p7981_p5 = pnand %p7980_p2, %p7974_p12 }
 0x153   : > { %7984 = shalt.err (!%p7981_p5)
}
 0x154   : > { %7469 = dma.hbm_to_vmem [thread:$0]  (!%p8989_p6), %s8895_s30, 16, %s1057_s15, [#allocation36]  }
 0x155   : > { %s8754_s11 = smov [#allocation38]   ;;  %s8755_s7 = smov [#allocation41]  }
 0x156   : > { %s1080_s10 = sshll.u32 %s8754_s11, 4  ;;  %s1101_s18 = sshll.u32 %s8755_s7, 4  ;;  %s1081_s10 = int_to_ptr.vmem [resolvable:$true] %s1080_s10  ;;  %s1102_s18 = int_to_ptr.vmem [resolvable:$true] %s1101_s18 }
 0x157   : > { %s7985_s3 = scalar_lea.hbm %s8905_s19, 16 }
 0x158   : > { %p7986_p7 = scmp.ne.s32.totalorder %s8905_s19, %s7985_s3  ;;  %p7992_p4 = scmp.lt.u32.totalorder %s7985_s3, %s8905_s19 }
 0x15a   : > { %p7988_p9 = pnand %p7986_p7, %p9001_p8 }
 0x15c   : > { %p7989_p10 = pneg %p7988_p9 }
 0x15e   : > { %p7994_p1 = pnand %p7992_p4, %p7989_p10 }
 0x160   : > { %7997 = shalt.err (!%p7994_p1)
}
 0x161   : > { %s7998_s16 = scalar_lea.vmem %s1081_s10, 16  ;;  %s8005_s15 = scalar_lea.vmem %s1081_s10, 32 }
 0x162   : > { %p7999_p3 = scmp.ne.s32.totalorder %s1081_s10, %s7998_s16  ;;  %p8006_p13 = scmp.lt.s32.totalorder %s1081_s10, %s1081_s10 }
 0x163   : > { %p8007_p0 = scmp.lt.s32.totalorder %s8005_s15, %s7998_s16 }
 0x164   : > { %p8001_p11 = pnand %p7999_p3, %p9001_p8 }
 0x165   : > { %p8008_p2 = por %p8007_p0, %p8006_p13 }
 0x166   : > { %p8002_p12 = pneg %p8001_p11 }
 0x168   : > { %p8009_p5 = pnand %p8008_p2, %p8002_p12 }
 0x16a   : > { %8012 = shalt.err (!%p8009_p5)
}
 0x16b   : > { %7475 = dma.hbm_to_vmem [thread:$0]  (!%p8989_p6), %s8905_s19, 16, %s1081_s10, [#allocation39]  }
 0x16c   : > { %s8013_s3 = scalar_lea.hbm %s10012_s8, 2304 }
 0x16d   : > { %p8014_p7 = scmp.ne.s32.totalorder %s10012_s8, %s8013_s3  ;;  %p8020_p4 = scmp.lt.u32.totalorder %s8013_s3, %s10012_s8 }
 0x16f   : > { %p8016_p9 = pnand %p8014_p7, %p9001_p8 }
 0x171   : > { %p8017_p10 = pneg %p8016_p9 }
 0x173   : > { %p8022_p1 = pnand %p8020_p4, %p8017_p10 }
 0x175   : > { %8025 = shalt.err (!%p8022_p1)
}
 0x176   : > { %s8026_s9 = scalar_lea.vmem %s1102_s18, 2304  ;;  %p8034_p13 = scmp.lt.s32.totalorder %s1102_s18, %s1102_s18 }
 0x177   : > { %p8027_p3 = scmp.ne.s32.totalorder %s1102_s18, %s8026_s9  ;;  %p8035_p0 = scmp.lt.s32.totalorder %s8026_s9, %s8026_s9 }
 0x179   : > { %p8029_p11 = pnand %p8027_p3, %p9001_p8  ;;  %p8036_p2 = por %p8035_p0, %p8034_p13 }
 0x17b   : > { %p8030_p12 = pneg %p8029_p11 }
 0x17d   : > { %p8037_p5 = pnand %p8036_p2, %p8030_p12 }
 0x17f   : > { %8040 = shalt.err (!%p8037_p5)
}
 0x180   : > { %7481 = dma.hbm_to_vmem [thread:$0]  (!%p8989_p6), %s10012_s8, 2304, %s1102_s18, [#allocation42], %s10022_s26, %s10022_s26, %s10023_s23  }
 0x181   : > { %s8756_s11 = smov [#allocation44]   ;;  %s8757_s7 = smov [#allocation47]  }
 0x182   : > { %s1128_s10 = sshll.u32 %s8756_s11, 4  ;;  %s1149_s16 = sshll.u32 %s8757_s7, 4  ;;  %s1129_s10 = int_to_ptr.vmem [resolvable:$true] %s1128_s10  ;;  %s1150_s16 = int_to_ptr.vmem [resolvable:$true] %s1149_s16 }
 0x183   : > { %s8041_s15 = scalar_lea.hbm %s8925_s29, 16 }
 0x184   : > { %p8042_p7 = scmp.ne.s32.totalorder %s8925_s29, %s8041_s15  ;;  %p8048_p4 = scmp.lt.u32.totalorder %s8041_s15, %s8925_s29 }
 0x186   : > { %p8044_p9 = pnand %p8042_p7, %p9001_p8 }
 0x188   : > { %p8045_p10 = pneg %p8044_p9 }
 0x18a   : > { %p8050_p1 = pnand %p8048_p4, %p8045_p10 }
 0x18c   : > { %8053 = shalt.err (!%p8050_p1)
}
 0x18d   : > { %s8054_s3 = scalar_lea.vmem %s1129_s10, 16  ;;  %s8061_s18 = scalar_lea.vmem %s1129_s10, 32 }
 0x18e   : > { %p8055_p3 = scmp.ne.s32.totalorder %s1129_s10, %s8054_s3  ;;  %p8062_p13 = scmp.lt.s32.totalorder %s1129_s10, %s1129_s10 }
 0x18f   : > { %p8063_p0 = scmp.lt.s32.totalorder %s8061_s18, %s8054_s3 }
 0x190   : > { %p8057_p11 = pnand %p8055_p3, %p9001_p8 }
 0x191   : > { %p8064_p2 = por %p8063_p0, %p8062_p13 }
 0x192   : > { %p8058_p12 = pneg %p8057_p11 }
 0x194   : > { %p8065_p5 = pnand %p8064_p2, %p8058_p12 }
 0x196   : > { %8068 = shalt.err (!%p8065_p5)
}
 0x197   : > { %7487 = dma.hbm_to_vmem [thread:$0]  (!%p8989_p6), %s8925_s29, 16, %s1129_s10, [#allocation45]  }
 0x198   : > { %s8069_s9 = scalar_lea.hbm %s8935_s21, 1536 }
 0x199   : > { %p8070_p7 = scmp.ne.s32.totalorder %s8935_s21, %s8069_s9  ;;  %p8076_p4 = scmp.lt.u32.totalorder %s8069_s9, %s8935_s21 }
 0x19b   : > { %p8072_p9 = pnand %p8070_p7, %p9001_p8 }
 0x19d   : > { %p8073_p10 = pneg %p8072_p9 }
 0x19f   : > { %p8078_p1 = pnand %p8076_p4, %p8073_p10 }
 0x1a1   : > { %8081 = shalt.err (!%p8078_p1)
}
 0x1a2   : > { %s8082_s11 = scalar_lea.vmem %s1150_s16, 1536  ;;  %p8090_p13 = scmp.lt.s32.totalorder %s1150_s16, %s1150_s16 }
 0x1a3   : > { %p8083_p3 = scmp.ne.s32.totalorder %s1150_s16, %s8082_s11  ;;  %p8091_p0 = scmp.lt.s32.totalorder %s8082_s11, %s8082_s11 }
 0x1a5   : > { %p8085_p11 = pnand %p8083_p3, %p9001_p8  ;;  %p8092_p2 = por %p8091_p0, %p8090_p13 }
 0x1a7   : > { %p8086_p12 = pneg %p8085_p11 }
 0x1a9   : > { %p8093_p5 = pnand %p8092_p2, %p8086_p12 }
 0x1ab   : > { %8096 = shalt.err (!%p8093_p5)
}
 0x1ac   : > { %s10024_s10 = sld [smem:[#allocation73_spill]]  ;;  %s8758_s7 = smov [#allocation7]  }
 0x1ad   : > { %7493 = dma.hbm_to_vmem [thread:$0]  (!%p8989_p6), %s8935_s21, 1536, %s1150_s16, [#allocation48], %s10022_s26, %s10022_s26, %s10023_s23  }
 0x1ae   : > { %s830_s15 = sshll.u32 %s8758_s7, 4  ;;  %s831_s15 = int_to_ptr.vmem [resolvable:$true] %s830_s15 }
 0x1b2   : > { %s8097_s3 = scalar_lea.hbm %s10024_s10, 576 }
 0x1b3   : > { %p8098_p7 = scmp.ne.s32.totalorder %s10024_s10, %s8097_s3  ;;  %p8104_p4 = scmp.lt.u32.totalorder %s8097_s3, %s10024_s10 }
 0x1b5   : > { %p8100_p9 = pnand %p8098_p7, %p9001_p8 }
 0x1b7   : > { %p8101_p10 = pneg %p8100_p9 }
 0x1b9   : > { %p8106_p1 = pnand %p8104_p4, %p8101_p10 }
 0x1bb   : > { %8109 = shalt.err (!%p8106_p1)
}
 0x1bc   : > { %s8110_s18 = scalar_lea.vmem %s831_s15, 576  ;;  %p8118_p13 = scmp.lt.s32.totalorder %s831_s15, %s831_s15 }
 0x1bd   : > { %p8111_p3 = scmp.ne.s32.totalorder %s831_s15, %s8110_s18  ;;  %p8119_p0 = scmp.lt.s32.totalorder %s8110_s18, %s8110_s18 }
 0x1bf   : > { %p8113_p11 = pnand %p8111_p3, %p9001_p8  ;;  %p8120_p2 = por %p8119_p0, %p8118_p13 }
 0x1c1   : > { %p8114_p12 = pneg %p8113_p11 }
 0x1c3   : > { %p8121_p5 = pnand %p8120_p2, %p8114_p12 }
 0x1c5   : > { %8124 = shalt.err (!%p8121_p5)
}
 0x1c6   : > { %s8759_s16 = smov 64   ;;  %s10025_s9 = sld [smem:[#allocation74_spill]] }
 0x1c7   : > { %s8760_s11 = smov 4   ;;  %s8761_s7 = smov [#allocation10]  }
 0x1c8   : > { %7412 = dma.hbm_to_vmem [thread:$0]  (!%p8989_p6), %s10024_s10, 576, %s831_s15, [#allocation6], %s8759_s16, %s8759_s16, %s8760_s11  }
 0x1c9   : > { %s855_s3 = sshll.u32 %s8761_s7, 4  ;;  %s8762_s4 = smov [#allocation13]   ;;  %s856_s3 = int_to_ptr.vmem [resolvable:$true] %s855_s3 }
 0x1ca   : > { %s878_s6 = sshll.u32 %s8762_s4, 4  ;;  %s9198_s6 = int_to_ptr.vmem [resolvable:$true] %s878_s6 }
 0x1cc   : > { %s8125_s18 = scalar_lea.hbm %s10025_s9, 16 }
 0x1cd   : > { %p8126_p7 = scmp.ne.s32.totalorder %s10025_s9, %s8125_s18  ;;  %p8132_p4 = scmp.lt.u32.totalorder %s8125_s18, %s10025_s9 }
 0x1cf   : > { %p8128_p9 = pnand %p8126_p7, %p9001_p8 }
 0x1d1   : > { %p8129_p10 = pneg %p8128_p9 }
 0x1d3   : > { %p8134_p1 = pnand %p8132_p4, %p8129_p10 }
 0x1d5   : > { %8137 = shalt.err (!%p8134_p1)
}
 0x1d6   : > { %s8138_s8 = scalar_lea.vmem %s856_s3, 16  ;;  %s8145_s15 = scalar_lea.vmem %s856_s3, 32 }
 0x1d7   : > { %p8139_p3 = scmp.ne.s32.totalorder %s856_s3, %s8138_s8  ;;  %p8146_p13 = scmp.lt.s32.totalorder %s856_s3, %s856_s3 }
 0x1d8   : > { %p8147_p0 = scmp.lt.s32.totalorder %s8145_s15, %s8138_s8 }
 0x1d9   : > { %p8141_p11 = pnand %p8139_p3, %p9001_p8 }
 0x1da   : > { %p8148_p2 = por %p8147_p0, %p8146_p13 }
 0x1db   : > { %p8142_p12 = pneg %p8141_p11 }
 0x1dd   : > { %p8149_p5 = pnand %p8148_p2, %p8142_p12 }
 0x1df   : > { %8152 = shalt.err (!%p8149_p5)
}
 0x1e0   : > { %s10026_s4 = sld [smem:[#allocation75_spill]] }
 0x1e1   : > { %7418 = dma.hbm_to_vmem [thread:$0]  (!%p8989_p6), %s10025_s9, 16, %s856_s3, [#allocation9]  }
 0x1e6   : > { %s8153_s16 = scalar_lea.hbm %s10026_s4, 144 }
 0x1e7   : > { %p8154_p7 = scmp.ne.s32.totalorder %s10026_s4, %s8153_s16  ;;  %p8160_p4 = scmp.lt.u32.totalorder %s8153_s16, %s10026_s4 }
 0x1e9   : > { %p8156_p9 = pnand %p8154_p7, %p9001_p8 }
 0x1eb   : > { %p8157_p10 = pneg %p8156_p9 }
 0x1ed   : > { %p8162_p1 = pnand %p8160_p4, %p8157_p10 }
 0x1ef   : > { %8165 = shalt.err (!%p8162_p1)
}
 0x1f0   : > { %s8166_s8 = scalar_lea.vmem %s9198_s6, 144  ;;  %s8173_s11 = scalar_lea.vmem %s9198_s6, 160 }
 0x1f1   : > { %p8167_p3 = scmp.ne.s32.totalorder %s9198_s6, %s8166_s8  ;;  %p8174_p13 = scmp.lt.s32.totalorder %s9198_s6, %s9198_s6 }
 0x1f2   : > { %p8175_p0 = scmp.lt.s32.totalorder %s8173_s11, %s8166_s8 }
 0x1f3   : > { %p8169_p11 = pnand %p8167_p3, %p9001_p8 }
 0x1f4   : > { %p8176_p2 = por %p8175_p0, %p8174_p13 }
 0x1f5   : > { %p8170_p12 = pneg %p8169_p11 }
 0x1f7   : > { %p8177_p5 = pnand %p8176_p2, %p8170_p12 }
 0x1f9   : > { %8180 = shalt.err (!%p8177_p5)
}
 0x1fa   : > { %s9964_s7 = smov 1   ;;  %s10027_s3 = smov 16  }
 0x1fb   : > { %s10028_s18 = sld [smem:[#allocation77_spill]]  ;;  %s8764_s15 = smov [#allocation16]  }
 0x1fc   : > { %7424 = dma.hbm_to_vmem [thread:$0]  (!%p8989_p6), %s10026_s4, 144, %s9198_s6, [#allocation12], %s10027_s3, %s10027_s3, %s9964_s7  }
 0x1fd   : > { %s903_s16 = sshll.u32 %s8764_s15, 4  ;;  %s8765_s8 = smov [#allocation19]   ;;  %s904_s16 = int_to_ptr.vmem [resolvable:$true] %s903_s16 }
 0x1fe   : > { %s927_s11 = sshll.u32 %s8765_s8, 4  ;;  %s928_s11 = int_to_ptr.vmem [resolvable:$true] %s927_s11 }
 0x201   : > { %s8181_s9 = scalar_lea.hbm %s10028_s18, 16 }
 0x202   : > { %p8182_p7 = scmp.ne.s32.totalorder %s10028_s18, %s8181_s9  ;;  %p8188_p4 = scmp.lt.u32.totalorder %s8181_s9, %s10028_s18 }
 0x204   : > { %p8184_p9 = pnand %p8182_p7, %p9001_p8 }
 0x206   : > { %p8185_p10 = pneg %p8184_p9 }
 0x208   : > { %p8190_p1 = pnand %p8188_p4, %p8185_p10 }
 0x20a   : > { %8193 = shalt.err (!%p8190_p1)
}
 0x20b   : > { %s8194_s10 = scalar_lea.vmem %s904_s16, 16  ;;  %s8201_s6 = scalar_lea.vmem %s904_s16, 32 }
 0x20c   : > { %p8195_p3 = scmp.ne.s32.totalorder %s904_s16, %s8194_s10  ;;  %p8202_p13 = scmp.lt.s32.totalorder %s904_s16, %s904_s16 }
 0x20d   : > { %p8203_p0 = scmp.lt.s32.totalorder %s8201_s6, %s8194_s10 }
 0x20e   : > { %p8197_p11 = pnand %p8195_p3, %p9001_p8 }
 0x20f   : > { %p8204_p2 = por %p8203_p0, %p8202_p13 }
 0x210   : > { %p8198_p12 = pneg %p8197_p11 }
 0x212   : > { %p8205_p5 = pnand %p8204_p2, %p8198_p12 }
 0x214   : > { %8208 = shalt.err (!%p8205_p5)
}
 0x215   : > { %s10029_s15 = sld [smem:[#allocation79_spill]] }
 0x216   : > { %7430 = dma.hbm_to_vmem [thread:$0]  (!%p8989_p6), %s10028_s18, 16, %s904_s16, [#allocation15]  }
 0x21b   : > { %s8209_s9 = scalar_lea.hbm %s10029_s15, 16 }
 0x21c   : > { %p8210_p7 = scmp.ne.s32.totalorder %s10029_s15, %s8209_s9  ;;  %p8216_p4 = scmp.lt.u32.totalorder %s8209_s9, %s10029_s15 }
 0x21e   : > { %p8212_p9 = pnand %p8210_p7, %p9001_p8 }
 0x220   : > { %p8213_p10 = pneg %p8212_p9 }
 0x222   : > { %p8218_p1 = pnand %p8216_p4, %p8213_p10 }
 0x224   : > { %8221 = shalt.err (!%p8218_p1)
}
 0x225   : > { %s8222_s10 = scalar_lea.vmem %s928_s11, 16  ;;  %s8229_s8 = scalar_lea.vmem %s928_s11, 32 }
 0x226   : > { %p8223_p3 = scmp.ne.s32.totalorder %s928_s11, %s8222_s10  ;;  %p8230_p13 = scmp.lt.s32.totalorder %s928_s11, %s928_s11 }
 0x227   : > { %p8231_p0 = scmp.lt.s32.totalorder %s8229_s8, %s8222_s10 }
 0x228   : > { %p8225_p11 = pnand %p8223_p3, %p9001_p8 }
 0x229   : > { %p8232_p2 = por %p8231_p0, %p8230_p13 }
 0x22a   : > { %p8226_p12 = pneg %p8225_p11 }
 0x22c   : > { %p8233_p5 = pnand %p8232_p2, %p8226_p12 }
 0x22e   : > { %8236 = shalt.err (!%p8233_p5)
}
 0x22f   : > { %s10030_s16 = sld [smem:[#allocation80_spill]]  ;;  %s8766_s6 = smov [#allocation22]  }
 0x230   : > { %7436 = dma.hbm_to_vmem [thread:$0]  (!%p8989_p6), %s10029_s15, 16, %s928_s11, [#allocation18]  }
 0x231   : > { %s948_s9 = sshll.u32 %s8766_s6, 4  ;;  %s8767_s7 = smov [#allocation25]   ;;  %s949_s9 = int_to_ptr.vmem [resolvable:$true] %s948_s9 }
 0x232   : > { %s973_s4 = sshll.u32 %s8767_s7, 4  ;;  %s974_s4 = int_to_ptr.vmem [resolvable:$true] %s973_s4 }
 0x235   : > { %s8237_s12 = scalar_lea.hbm %s10030_s16, 256 }
 0x236   : > { %p8238_p7 = scmp.ne.s32.totalorder %s10030_s16, %s8237_s12  ;;  %p8244_p4 = scmp.lt.u32.totalorder %s8237_s12, %s10030_s16 }
 0x238   : > { %p8240_p9 = pnand %p8238_p7, %p9001_p8 }
 0x23a   : > { %p8241_p10 = pneg %p8240_p9 }
 0x23c   : > { %p8246_p1 = pnand %p8244_p4, %p8241_p10 }
 0x23e   : > { %8249 = shalt.err (!%p8246_p1)
}
 0x23f   : > { %s8250_s10 = scalar_lea.vmem %s949_s9, 256  ;;  %p8258_p13 = scmp.lt.s32.totalorder %s949_s9, %s949_s9 }
 0x240   : > { %p8251_p3 = scmp.ne.s32.totalorder %s949_s9, %s8250_s10  ;;  %p8259_p0 = scmp.lt.s32.totalorder %s8250_s10, %s8250_s10 }
 0x242   : > { %p8253_p11 = pnand %p8251_p3, %p9001_p8  ;;  %p8260_p2 = por %p8259_p0, %p8258_p13 }
 0x244   : > { %p8254_p12 = pneg %p8253_p11 }
 0x246   : > { %p8261_p5 = pnand %p8260_p2, %p8254_p12 }
 0x248   : > { %8264 = shalt.err (!%p8261_p5)
}
 0x249   : > { %s10031_s12 = sld [smem:[#allocation82_spill]] }
 0x24a   : > { %7442 = dma.hbm_to_vmem [thread:$0]  (!%p8989_p6), %s10030_s16, 256, %s949_s9, [#allocation21], %s10022_s26, %s10022_s26, %s10023_s23  }
 0x24f   : > { %s8265_s7 = scalar_lea.hbm %s10031_s12, 16 }
 0x250   : > { %p8266_p7 = scmp.ne.s32.totalorder %s10031_s12, %s8265_s7  ;;  %p8272_p4 = scmp.lt.u32.totalorder %s8265_s7, %s10031_s12 }
 0x252   : > { %p8268_p9 = pnand %p8266_p7, %p9001_p8 }
 0x254   : > { %p8269_p10 = pneg %p8268_p9 }
 0x256   : > { %p8274_p1 = pnand %p8272_p4, %p8269_p10 }
 0x258   : > { %8277 = shalt.err (!%p8274_p1)
}
 0x259   : > { %s8278_s11 = scalar_lea.vmem %s974_s4, 16  ;;  %s8285_s8 = scalar_lea.vmem %s974_s4, 32 }
 0x25a   : > { %p8279_p3 = scmp.ne.s32.totalorder %s974_s4, %s8278_s11  ;;  %p8286_p13 = scmp.lt.s32.totalorder %s974_s4, %s974_s4 }
 0x25b   : > { %p8287_p0 = scmp.lt.s32.totalorder %s8285_s8, %s8278_s11 }
 0x25c   : > { %p8281_p11 = pnand %p8279_p3, %p9001_p8 }
 0x25d   : > { %p8288_p2 = por %p8287_p0, %p8286_p13 }
 0x25e   : > { %p8282_p12 = pneg %p8281_p11 }
 0x260   : > { %p8289_p5 = pnand %p8288_p2, %p8282_p12 }
 0x262   : > { %8292 = shalt.err (!%p8289_p5)
}
 0x263   : > { %s10032_s6 = sld [smem:[#allocation83_spill]]  ;;  %s8768_s9 = smov [#allocation28]  }
 0x264   : > { %7448 = dma.hbm_to_vmem [thread:$0]  (!%p8989_p6), %s10031_s12, 16, %s974_s4, [#allocation24]  }
 0x265   : > { %s996_s10 = sshll.u32 %s8768_s9, 4  ;;  %s8769_s7 = smov [#allocation31]   ;;  %s997_s10 = int_to_ptr.vmem [resolvable:$true] %s996_s10 }
 0x266   : > { %s1021_s14 = sshll.u32 %s8769_s7, 4  ;;  %s1022_s14 = int_to_ptr.vmem [resolvable:$true] %s1021_s14 }
 0x269   : > { %s8293_s15 = scalar_lea.hbm %s10032_s6, 144 }
 0x26a   : > { %p8294_p7 = scmp.ne.s32.totalorder %s10032_s6, %s8293_s15  ;;  %p8300_p4 = scmp.lt.u32.totalorder %s8293_s15, %s10032_s6 }
 0x26c   : > { %p8296_p9 = pnand %p8294_p7, %p9001_p8 }
 0x26e   : > { %p8297_p10 = pneg %p8296_p9 }
 0x270   : > { %p8302_p1 = pnand %p8300_p4, %p8297_p10 }
 0x272   : > { %8305 = shalt.err (!%p8302_p1)
}
 0x273   : > { %s8306_s11 = scalar_lea.vmem %s997_s10, 144  ;;  %s8313_s4 = scalar_lea.vmem %s997_s10, 160 }
 0x274   : > { %p8307_p3 = scmp.ne.s32.totalorder %s997_s10, %s8306_s11  ;;  %p8314_p13 = scmp.lt.s32.totalorder %s997_s10, %s997_s10 }
 0x275   : > { %p8315_p0 = scmp.lt.s32.totalorder %s8313_s4, %s8306_s11 }
 0x276   : > { %p8309_p11 = pnand %p8307_p3, %p9001_p8 }
 0x277   : > { %p8316_p2 = por %p8315_p0, %p8314_p13 }
 0x278   : > { %p8310_p12 = pneg %p8309_p11 }
 0x27a   : > { %p8317_p5 = pnand %p8316_p2, %p8310_p12 }
 0x27c   : > { %8320 = shalt.err (!%p8317_p5)
}
 0x27d   : > { %s10033_s8 = smov 1   ;;  %s10034_s15 = sld [smem:[#allocation85_spill]] }
 0x27e   : > { %7454 = dma.hbm_to_vmem [thread:$0]  (!%p8989_p6), %s10032_s6, 144, %s997_s10, [#allocation27], %s10027_s3, %s10027_s3, %s10033_s8  }
 0x283   : > { %s8321_s9 = scalar_lea.hbm %s10034_s15, 16 }
 0x284   : > { %p8322_p7 = scmp.ne.s32.totalorder %s10034_s15, %s8321_s9  ;;  %p8328_p4 = scmp.lt.u32.totalorder %s8321_s9, %s10034_s15 }
 0x286   : > { %p8324_p9 = pnand %p8322_p7, %p9001_p8 }
 0x288   : > { %p8325_p10 = pneg %p8324_p9 }
 0x28a   : > { %p8330_p1 = pnand %p8328_p4, %p8325_p10 }
 0x28c   : > { %8333 = shalt.err (!%p8330_p1)
}
 0x28d   : > { %s8334_s7 = scalar_lea.vmem %s1022_s14, 16  ;;  %s8341_s11 = scalar_lea.vmem %s1022_s14, 32 }
 0x28e   : > { %p8335_p3 = scmp.ne.s32.totalorder %s1022_s14, %s8334_s7  ;;  %p8342_p13 = scmp.lt.s32.totalorder %s1022_s14, %s1022_s14 }
 0x28f   : > { %p8343_p0 = scmp.lt.s32.totalorder %s8341_s11, %s8334_s7 }
 0x290   : > { %p8337_p11 = pnand %p8335_p3, %p9001_p8 }
 0x291   : > { %p8344_p2 = por %p8343_p0, %p8342_p13 }
 0x292   : > { %p8338_p12 = pneg %p8337_p11 }
 0x294   : > { %p8345_p5 = pnand %p8344_p2, %p8338_p12 }
 0x296   : > { %8348 = shalt.err (!%p8345_p5)
}
 0x297   : > { %s10035_s10 = sld [smem:[#allocation87_spill]]  ;;  %s8770_s4 = smov [#allocation34]  }
 0x298   : > { %7460 = dma.hbm_to_vmem [thread:$0]  (!%p8989_p6), %s10034_s15, 16, %s1022_s14, [#allocation30]  }
 0x299   : > { %s1045_s9 = sshll.u32 %s8770_s4, 4  ;;  %s8771_s6 = smov [#allocation37]   ;;  %s1046_s9 = int_to_ptr.vmem [resolvable:$true] %s1045_s9 }
 0x29a   : > { %s1066_s12 = sshll.u32 %s8771_s6, 4  ;;  %s1067_s12 = int_to_ptr.vmem [resolvable:$true] %s1066_s12 }
 0x29d   : > { %s8349_s16 = scalar_lea.hbm %s10035_s10, 16 }
 0x29e   : > { %p8350_p7 = scmp.ne.s32.totalorder %s10035_s10, %s8349_s16  ;;  %p8356_p4 = scmp.lt.u32.totalorder %s8349_s16, %s10035_s10 }
 0x2a0   : > { %p8352_p9 = pnand %p8350_p7, %p9001_p8 }
 0x2a2   : > { %p8353_p10 = pneg %p8352_p9 }
 0x2a4   : > { %p8358_p1 = pnand %p8356_p4, %p8353_p10 }
 0x2a6   : > { %8361 = shalt.err (!%p8358_p1)
}
 0x2a7   : > { %s8362_s7 = scalar_lea.vmem %s1046_s9, 16  ;;  %s8369_s14 = scalar_lea.vmem %s1046_s9, 32 }
 0x2a8   : > { %p8363_p3 = scmp.ne.s32.totalorder %s1046_s9, %s8362_s7  ;;  %p8370_p13 = scmp.lt.s32.totalorder %s1046_s9, %s1046_s9 }
 0x2a9   : > { %p8371_p0 = scmp.lt.s32.totalorder %s8369_s14, %s8362_s7 }
 0x2aa   : > { %p8365_p11 = pnand %p8363_p3, %p9001_p8 }
 0x2ab   : > { %p8372_p2 = por %p8371_p0, %p8370_p13 }
 0x2ac   : > { %p8366_p12 = pneg %p8365_p11 }
 0x2ae   : > { %p8373_p5 = pnand %p8372_p2, %p8366_p12 }
 0x2b0   : > { %8376 = shalt.err (!%p8373_p5)
}
 0x2b1   : > { %s10036_s6 = sld [smem:[#allocation88_spill]] }
 0x2b2   : > { %7466 = dma.hbm_to_vmem [thread:$0]  (!%p8989_p6), %s10035_s10, 16, %s1046_s9, [#allocation33]  }
 0x2b7   : > { %s8377_s16 = scalar_lea.hbm %s10036_s6, 384 }
 0x2b8   : > { %p8378_p7 = scmp.ne.s32.totalorder %s10036_s6, %s8377_s16  ;;  %p8384_p4 = scmp.lt.u32.totalorder %s8377_s16, %s10036_s6 }
 0x2ba   : > { %p8380_p9 = pnand %p8378_p7, %p9001_p8 }
 0x2bc   : > { %p8381_p10 = pneg %p8380_p9 }
 0x2be   : > { %p8386_p1 = pnand %p8384_p4, %p8381_p10 }
 0x2c0   : > { %8389 = shalt.err (!%p8386_p1)
}
 0x2c1   : > { %s8390_s11 = scalar_lea.vmem %s1067_s12, 384  ;;  %p8398_p13 = scmp.lt.s32.totalorder %s1067_s12, %s1067_s12 }
 0x2c2   : > { %p8391_p3 = scmp.ne.s32.totalorder %s1067_s12, %s8390_s11  ;;  %p8399_p0 = scmp.lt.s32.totalorder %s8390_s11, %s8390_s11 }
 0x2c4   : > { %p8393_p11 = pnand %p8391_p3, %p9001_p8  ;;  %p8400_p2 = por %p8399_p0, %p8398_p13 }
 0x2c6   : > { %p8394_p12 = pneg %p8393_p11 }
 0x2c8   : > { %p8401_p5 = pnand %p8400_p2, %p8394_p12 }
 0x2ca   : > { %8404 = shalt.err (!%p8401_p5)
}
 0x2cb   : > { %s10037_s4 = sld [smem:[#allocation89_spill]]  ;;  %s8772_s9 = smov [#allocation40]  }
 0x2cc   : > { %7472 = dma.hbm_to_vmem [thread:$0]  (!%p8989_p6), %s10036_s6, 384, %s1067_s12, [#allocation36], %s10022_s26, %s10022_s26, %s10023_s23  }
 0x2cd   : > { %s1091_s7 = sshll.u32 %s8772_s9, 4  ;;  %s8773_s14 = smov [#allocation43]   ;;  %s1092_s7 = int_to_ptr.vmem [resolvable:$true] %s1091_s7 }
 0x2ce   : > { %s1114_s16 = sshll.u32 %s8773_s14, 4  ;;  %s1115_s16 = int_to_ptr.vmem [resolvable:$true] %s1114_s16 }
 0x2d1   : > { %s8405_s11 = scalar_lea.hbm %s10037_s4, 16 }
 0x2d2   : > { %p8406_p7 = scmp.ne.s32.totalorder %s10037_s4, %s8405_s11  ;;  %p8412_p4 = scmp.lt.u32.totalorder %s8405_s11, %s10037_s4 }
 0x2d4   : > { %p8408_p9 = pnand %p8406_p7, %p9001_p8 }
 0x2d6   : > { %p8409_p10 = pneg %p8408_p9 }
 0x2d8   : > { %p8414_p1 = pnand %p8412_p4, %p8409_p10 }
 0x2da   : > { %8417 = shalt.err (!%p8414_p1)
}
 0x2db   : > { %s8418_s10 = scalar_lea.vmem %s1092_s7, 16  ;;  %s8425_s12 = scalar_lea.vmem %s1092_s7, 32 }
 0x2dc   : > { %p8419_p3 = scmp.ne.s32.totalorder %s1092_s7, %s8418_s10  ;;  %p8426_p13 = scmp.lt.s32.totalorder %s1092_s7, %s1092_s7 }
 0x2dd   : > { %p8427_p0 = scmp.lt.s32.totalorder %s8425_s12, %s8418_s10 }
 0x2de   : > { %p8421_p11 = pnand %p8419_p3, %p9001_p8 }
 0x2df   : > { %p8428_p2 = por %p8427_p0, %p8426_p13 }
 0x2e0   : > { %p8422_p12 = pneg %p8421_p11 }
 0x2e2   : > { %p8429_p5 = pnand %p8428_p2, %p8422_p12 }
 0x2e4   : > { %8432 = shalt.err (!%p8429_p5)
}
 0x2e5   : > { %s10038_s9 = sld [smem:[#allocation91_spill]] }
 0x2e6   : > { %7478 = dma.hbm_to_vmem [thread:$0]  (!%p8989_p6), %s10037_s4, 16, %s1092_s7, [#allocation39]  }
 0x2eb   : > { %s8433_s14 = scalar_lea.hbm %s10038_s9, 144 }
 0x2ec   : > { %p8434_p7 = scmp.ne.s32.totalorder %s10038_s9, %s8433_s14  ;;  %p8440_p4 = scmp.lt.u32.totalorder %s8433_s14, %s10038_s9 }
 0x2ee   : > { %p8436_p9 = pnand %p8434_p7, %p9001_p8 }
 0x2f0   : > { %p8437_p10 = pneg %p8436_p9 }
 0x2f2   : > { %p8442_p1 = pnand %p8440_p4, %p8437_p10 }
 0x2f4   : > { %8445 = shalt.err (!%p8442_p1)
}
 0x2f5   : > { %s8446_s10 = scalar_lea.vmem %s1115_s16, 144  ;;  %s8453_s11 = scalar_lea.vmem %s1115_s16, 160 }
 0x2f6   : > { %p8447_p3 = scmp.ne.s32.totalorder %s1115_s16, %s8446_s10  ;;  %p8454_p13 = scmp.lt.s32.totalorder %s1115_s16, %s1115_s16 }
 0x2f7   : > { %p8455_p0 = scmp.lt.s32.totalorder %s8453_s11, %s8446_s10 }
 0x2f8   : > { %p8449_p11 = pnand %p8447_p3, %p9001_p8 }
 0x2f9   : > { %p8456_p2 = por %p8455_p0, %p8454_p13 }
 0x2fa   : > { %p8450_p12 = pneg %p8449_p11 }
 0x2fc   : > { %p8457_p5 = pnand %p8456_p2, %p8450_p12 }
 0x2fe   : > { %8460 = shalt.err (!%p8457_p5)
}
 0x2ff   : > { %s10039_s7 = sld [smem:[#allocation92_spill]]  ;;  %s8774_s12 = smov [#allocation46]  }
 0x300   : > { %7484 = dma.hbm_to_vmem [thread:$0]  (!%p8989_p6), %s10038_s9, 144, %s1115_s16, [#allocation42], %s10027_s3, %s10027_s3, %s10033_s8  }
 0x301   : > { %s1139_s14 = sshll.u32 %s8774_s12, 4  ;;  %s8775_s4 = smov [#allocation49]   ;;  %s1140_s14 = int_to_ptr.vmem [resolvable:$true] %s1139_s14 }
 0x302   : > { %s1163_s6 = sshll.u32 %s8775_s4, 4  ;;  %s1164_s6 = int_to_ptr.vmem [resolvable:$true] %s1163_s6 }
 0x305   : > { %s8461_s10 = scalar_lea.hbm %s10039_s7, 16 }
 0x306   : > { %p8462_p7 = scmp.ne.s32.totalorder %s10039_s7, %s8461_s10  ;;  %p8468_p4 = scmp.lt.u32.totalorder %s8461_s10, %s10039_s7 }
 0x308   : > { %p8464_p9 = pnand %p8462_p7, %p9001_p8 }
 0x30a   : > { %p8465_p10 = pneg %p8464_p9 }
 0x30c   : > { %p8470_p1 = pnand %p8468_p4, %p8465_p10 }
 0x30e   : > { %8473 = shalt.err (!%p8470_p1)
}
 0x30f   : > { %s8474_s11 = scalar_lea.vmem %s1140_s14, 16  ;;  %s8481_s3 = scalar_lea.vmem %s1140_s14, 32 }
 0x310   : > { %p8475_p3 = scmp.ne.s32.totalorder %s1140_s14, %s8474_s11  ;;  %p8482_p13 = scmp.lt.s32.totalorder %s1140_s14, %s1140_s14 }
 0x311   : > { %p8483_p0 = scmp.lt.s32.totalorder %s8481_s3, %s8474_s11 }
 0x312   : > { %p8477_p11 = pnand %p8475_p3, %p9001_p8 }
 0x313   : > { %p8484_p2 = por %p8483_p0, %p8482_p13 }
 0x314   : > { %p8478_p12 = pneg %p8477_p11 }
 0x316   : > { %p8485_p5 = pnand %p8484_p2, %p8478_p12 }
 0x318   : > { %8488 = shalt.err (!%p8485_p5)
}
 0x319   : > { %7490 = dma.hbm_to_vmem [thread:$0]  (!%p8989_p6), %s10039_s7, 16, %s1140_s14, [#allocation45]  }
 0x31a   : > { %s8489_s8 = scalar_lea.hbm %s10009_s5, 16 }
 0x31b   : > { %p8490_p7 = scmp.ne.s32.totalorder %s10009_s5, %s8489_s8  ;;  %p8496_p4 = scmp.lt.u32.totalorder %s8489_s8, %s10009_s5 }
 0x31d   : > { %p8492_p9 = pnand %p8490_p7, %p9001_p8 }
 0x31f   : > { %p8493_p10 = pneg %p8492_p9 }
 0x321   : > { %p8498_p1 = pnand %p8496_p4, %p8493_p10 }
 0x323   : > { %8501 = shalt.err (!%p8498_p1)
}
 0x324   : > { %s8502_s4 = scalar_lea.vmem %s1164_s6, 16  ;;  %s8509_s16 = scalar_lea.vmem %s1164_s6, 32 }
 0x325   : > { %p8503_p3 = scmp.ne.s32.totalorder %s1164_s6, %s8502_s4  ;;  %p8510_p13 = scmp.lt.s32.totalorder %s1164_s6, %s1164_s6 }
 0x326   : > { %p8511_p0 = scmp.lt.s32.totalorder %s8509_s16, %s8502_s4 }
 0x327   : > { %p8505_p11 = pnand %p8503_p3, %p9001_p8 }
 0x328   : > { %p8512_p2 = por %p8511_p0, %p8510_p13 }
 0x329   : > { %p8506_p12 = pneg %p8505_p11 }
 0x32b   : > { %p8513_p5 = pnand %p8512_p2, %p8506_p12 }
 0x32d   : > { %8516 = shalt.err (!%p8513_p5)
}
 0x32e   : > { %7496 = dma.hbm_to_vmem [thread:$0]  (!%p8989_p6), %s10009_s5, 16, %s1164_s6, [#allocation48]  }
 0x32f   : > { %s8776_s12 = smov [#allocation50]   ;;  %s8517_s10 = scalar_lea.hbm %s10008_s13, 16 }
 0x330   : > { %s1174_s14 = sshll.u32 %s8776_s12, 4  ;;  %p8518_p7 = scmp.ne.s32.totalorder %s10008_s13, %s8517_s10  ;;  %s1175_s14 = int_to_ptr.vmem [resolvable:$true] %s1174_s14 }
 0x331   : > { %p8524_p4 = scmp.lt.u32.totalorder %s8517_s10, %s10008_s13 }
 0x332   : > { %p8520_p9 = pnand %p8518_p7, %p9001_p8 }
 0x334   : > { %p8521_p10 = pneg %p8520_p9 }
 0x336   : > { %p8526_p1 = pnand %p8524_p4, %p8521_p10 }
 0x338   : > { %8529 = shalt.err (!%p8526_p1)
}
 0x339   : > { %s8530_s11 = scalar_lea.vmem %s1175_s14, 16  ;;  %s8537_s3 = scalar_lea.vmem %s1175_s14, 32 }
 0x33a   : > { %p8531_p3 = scmp.ne.s32.totalorder %s1175_s14, %s8530_s11  ;;  %p8538_p13 = scmp.lt.s32.totalorder %s1175_s14, %s1175_s14 }
 0x33b   : > { %p8539_p0 = scmp.lt.s32.totalorder %s8537_s3, %s8530_s11 }
 0x33c   : > { %p8533_p11 = pnand %p8531_p3, %p9001_p8 }
 0x33d   : > { %p8540_p2 = por %p8539_p0, %p8538_p13 }
 0x33e   : > { %p8534_p12 = pneg %p8533_p11 }
 0x340   : > { %p8541_p5 = pnand %p8540_p2, %p8534_p12 }
 0x342   : > { %8544 = shalt.err (!%p8541_p5)
}
 0x343   : > { %s10040_s27 = sld [smem:[#allocation96_spill]]  ;;  %s6077_s6 = sadd.s32 4294967294, %s8705_s2  }
 0x344   : > { %7499 = dma.hbm_to_vmem [thread:$0]  (!%p8989_p6), %s10008_s13, 16, %s1175_s14, [#allocation51]  }
 0x345   : > { %s9373_s8 = sadd.s32 1, %s8705_s2   ;;  %s104_s4 = sadd.s32 1, %s8701_s1 }
 0x346   : > { %s101_s22 = ssub.s32 %s8705_s2, %s9373_s8  ;;  %s10041_s16 = sld [smem:[#allocation71_spill]] }
 0x347   : > { %p102_p8 = scmp.eq.s32.totalorder %s101_s22, 0  ;;  %p111_p7 = scmp.ne.s32.totalorder %s8701_s1, %s8697_s28 }
 0x348   : > { %p112_p9 = scmp.eq.s32.totalorder %s8705_s2, 0  ;;  %p117_p10 = scmp.ne.s32.totalorder %s8697_s28, %s8693_s0 }
 0x349   : > { %s9384_s12 = scalar_select %p102_p8, %s8701_s1, %s104_s4  }
 0x34a   : > { %p9386_p4 = por %p112_p9, %p111_p7  ;;  %p10043_p1 = scmp.eq.s32.totalorder %s10040_s27, 0 }
 0x34b   : > { %p792_p3 = scmp.eq.s32.totalorder %s10040_s27, 1  ;;  %p798_p11 = scmp.eq.s32.totalorder %s6077_s6, 1 }
 0x34c   : > { %p9392_p6 = por %p10043_p1, %p117_p10  ;;  %p7539_p12 = scmp.lt.s32.totalorder %s8705_s2, 2 }
 0x34d   : > { %s1185_s11 = sand.u32 1, %s8701_s1   ;;  %p9399_p13 = por %p792_p3, %p111_p7 }
 0x34e   : > { %s10044_s14 = scalar_select %p9392_p6, 1, 0 }
 0x34f   : > { %s10045_s3 = scalar_select %p9399_p13, 1, 0 }
 0x350   : > { %p9403_p0 = por %p798_p11, %p117_p10  ;;  %s6111_s4 = sshll.u32 %s1185_s11, 8 }
 0x351   : > { %s6409_s5 = sshll.u32 %s8705_s2, 12  ;;  %s1189_s27 = scalar_lea.vmem [#allocation2], %s6111_s4 }
 0x352   : > { %s10046_s22 = scalar_select %p9403_p0, 1, 0 }
 0x353   : > { %s9409_s7 = scalar_lea.hbm %s10041_s16, %s6409_s5  ;;  %s1196_s6 = sshll.u32 %s1189_s27, 4  ;;  %s9411_s6 = int_to_ptr.vmem [resolvable:$true] %s1196_s6 }
 0x354   : > { %p9415_p2 = pnand %p7539_p12, %p9386_p4  ;;  %s9419_s13 = scalar_lea.sflag [#allocation3], %s1185_s11 }
 0x355   : > { %s8545_s15 = scalar_lea.hbm %s9409_s7, 4096  ;;  %s8550_s5 = scalar_lea.hbm %s10041_s16, 8192 }
 0x356   : > { %p8546_p5 = scmp.ne.s32.totalorder %s9409_s7, %s8545_s15  ;;  %p8547_p8 = pneg %p9415_p2 }
 0x357   : > { %p8551_p10 = scmp.lt.u32.totalorder %s9409_s7, %s10041_s16  ;;  %p8552_p1 = scmp.lt.u32.totalorder %s8550_s5, %s8545_s15 }
 0x358   : > { %p8548_p7 = pnand %p8547_p8, %p8546_p5  ;;  %p8554_p4 = scmp.lt.u32.totalorder %s8545_s15, %s9409_s7 }
 0x359   : > { %p8553_p3 = por %p8552_p1, %p8551_p10 }
 0x35a   : > { %p8549_p9 = pneg %p8548_p7 }
 0x35b   : > { %p8555_p11 = por %p8554_p4, %p8553_p3 }
 0x35d   : > { %p8556_p12 = pnand %p8555_p11, %p8549_p9 }
 0x35f   : > { %8559 = shalt.err (!%p8556_p12)
}
 0x360   : > { %s8560_s10 = scalar_lea.vmem %s9411_s6, 4096  ;;  %s8777_s11 = smov [#allocation2]  }
 0x361   : > { %p8561_p0 = scmp.ne.s32.totalorder %s9411_s6, %s8560_s10  ;;  %s8565_s4 = sshll.u32 %s8777_s11, 4  ;;  %s8566_s4 = int_to_ptr.vmem [resolvable:$false] %s8565_s4 }
 0x362   : > { %s8567_s27 = scalar_lea.vmem %s8566_s4, 8192  ;;  %p8568_p5 = scmp.lt.s32.totalorder %s9411_s6, %s8566_s4 }
 0x363   : > { %p8563_p13 = pnand %p8561_p0, %p8547_p8  ;;  %p8569_p7 = scmp.lt.s32.totalorder %s8567_s27, %s8560_s10 }
 0x365   : > { %p8564_p6 = pneg %p8563_p13  ;;  %p8570_p10 = por %p8569_p7, %p8568_p5 }
 0x367   : > { %p8571_p1 = pnand %p8570_p10, %p8564_p6 }
 0x369   : > { %8574 = shalt.err (!%p8571_p1)
}
 0x36a   : > { %7503 = dma.hbm_to_vmem [thread:$0]  (!%p9415_p2), %s9409_s7, 4096, %s9411_s6, %s9419_s13, %s10022_s26, %s10022_s26, %s10023_s23  }
 0x36b   : > { %s10048_s15 = sld [smem:[#allocation97_spill]] }
 0x371   : > { %p10049_p13 = scmp.ne.s32.totalorder %s10048_s15, 0 }
 0x372   : > { %s9449_s5 = sand.u32 (!%p10049_p13), 1, %s8697_s28   ;;  %p10050_p6 = scmp.ne.s32.totalorder (!%p10049_p13), %s10044_s14, 0 }
 0x373   : > { %1208 = sbr.rel (%p10049_p13) target bundleno = 3730 (0xe92), region = 148  ;;  %s6115_s10 = sshll.u32 (!%p10049_p13), %s9449_s5, 8 }
 0x374   : > { %s1211_s11 = scalar_lea.sflag (!%p10049_p13), [#allocation3], %s9449_s5  ;;  %s9453_s4 = scalar_lea.vmem (!%p10049_p13), [#allocation2], %s6115_s10 }
 0x37a   : > { %8620 = dma.done.wait (%p10050_p6), %s1211_s11, 4096  }
 0x37b   : > { %8622 = vsyncadd (%p10050_p6), %s1211_s11, 4294963200  ;;  %s10051_s9 = sld [smem:[#allocation96_spill]] }
 0x381   : > { %p10052_p0 = scmp.eq.s32.totalorder %s10051_s9, 0 }
 0x383   : > { %8624 = dma.done.wait (%p10052_p0), [#allocation6], 19008   ;;  %p10053_p2 = pmov %p10052_p0 }
 0x384   : > { %p10054_p8 = pmov %p10052_p0 }
 0x385   : > { %8626 = vsyncadd (%p10053_p2), [#allocation6], 4294948288 }
 0x386   : > { %8628 = dma.done.wait (%p10054_p8), [#allocation9], 32   ;;  %p10055_p9 = pmov %p10052_p0 }
 0x387   : > { %p10056_p3 = pmov %p10052_p0 }
 0x388   : > { %8630 = vsyncadd (%p10055_p9), [#allocation9], 4294967264 }
 0x389   : > { %8632 = dma.done.wait (%p10056_p3), [#allocation12], 9360   ;;  %p10057_p4 = pmov %p10052_p0 }
 0x38a   : > { %p10058_p11 = pmov %p10052_p0 }
 0x38b   : > { %8634 = vsyncadd (%p10057_p4), [#allocation12], 4294957936 }
 0x38c   : > { %8636 = dma.done.wait (%p10058_p11), [#allocation15], 32   ;;  %p10059_p12 = pmov %p10052_p0 }
 0x38d   : > { %p10060_p5 = pmov %p10052_p0 }
 0x38e   : > { %8638 = vsyncadd (%p10059_p12), [#allocation15], 4294967264 }
 0x38f   : > { %8640 = dma.done.wait (%p10060_p5), [#allocation18], 272   ;;  %p10061_p7 = pmov %p10052_p0 }
 0x390   : > { %p10062_p10 = pmov %p10052_p0 }
 0x391   : > { %8642 = vsyncadd (%p10061_p7), [#allocation18], 4294967024 }
 0x392   : > { %8644 = dma.done.wait (%p10062_p10), [#allocation21], 272   ;;  %p10063_p1 = pmov %p10052_p0 }
 0x393   : > { %p10064_p13 = pmov %p10052_p0 }
 0x394   : > { %8646 = vsyncadd (%p10063_p1), [#allocation21], 4294967024 }
 0x395   : > { %8648 = dma.done.wait (%p10064_p13), [#allocation24], 32   ;;  %p10065_p6 = pmov %p10052_p0 }
 0x397   : > { %8650 = vsyncadd (%p10065_p6), [#allocation24], 4294967264 }
 0x398   : > { %8652 = dma.done.wait (%p10052_p0), [#allocation27], 2448   ;;  %p10066_p2 = pmov %p10052_p0 }
 0x399   : > { %p10067_p8 = pmov %p10052_p0 }
 0x39a   : > { %8654 = vsyncadd (%p10066_p2), [#allocation27], 4294964848 }
 0x39b   : > { %8656 = dma.done.wait (%p10067_p8), [#allocation30], 32   ;;  %p10068_p9 = pmov %p10052_p0 }
 0x39c   : > { %p10069_p3 = pmov %p10052_p0 }
 0x39d   : > { %8658 = vsyncadd (%p10068_p9), [#allocation30], 4294967264 }
 0x39e   : > { %8660 = dma.done.wait (%p10069_p3), [#allocation33], 1040   ;;  %p10070_p4 = pmov %p10052_p0 }
 0x39f   : > { %p10071_p11 = pmov %p10052_p0 }
 0x3a0   : > { %8662 = vsyncadd (%p10070_p4), [#allocation33], 4294966256 }
 0x3a1   : > { %8664 = dma.done.wait (%p10071_p11), [#allocation36], 400   ;;  %p10072_p12 = pmov %p10052_p0 }
 0x3a2   : > { %p10073_p5 = pmov %p10052_p0 }
 0x3a3   : > { %8666 = vsyncadd (%p10072_p12), [#allocation36], 4294966896 }
 0x3a4   : > { %8668 = dma.done.wait (%p10073_p5), [#allocation39], 32   ;;  %p10074_p7 = pmov %p10052_p0 }
 0x3a5   : > { %p10075_p10 = pmov %p10052_p0 }
 0x3a6   : > { %8670 = vsyncadd (%p10074_p7), [#allocation39], 4294967264 }
 0x3a7   : > { %8672 = dma.done.wait (%p10075_p10), [#allocation42], 2448   ;;  %p10076_p1 = pmov %p10052_p0 }
 0x3a8   : > { %p10077_p13 = pmov %p10052_p0 }
 0x3a9   : > { %8674 = vsyncadd (%p10076_p1), [#allocation42], 4294964848 }
 0x3aa   : > { %8676 = dma.done.wait (%p10077_p13), [#allocation45], 32   ;;  %p10078_p6 = pmov %p10052_p0 }
 0x3ac   : > { %8678 = vsyncadd (%p10078_p6), [#allocation45], 4294967264 }
 0x3ad   : > { %8680 = dma.done.wait (%p10052_p0), [#allocation48], 1552   ;;  %p10079_p2 = pmov %p10052_p0 }
 0x3ae   : > { %p10080_p8 = pmov %p10052_p0 }
 0x3af   : > { %8682 = vsyncadd (%p10079_p2), [#allocation48], 4294965744 }
 0x3b0   : > { %8684 = dma.done.wait (%p10080_p8), [#allocation51], 16   ;;  %p10081_p9 = pmov %p10052_p0 }
 0x3b1   : > { %v8778_v0 = vmov 0.0|0.0   ;;  %v1419_v1 = vld [vmem:[%s9453_s4] sm:$0xff]  ;;  %v1420_v2 = vld [vmem:[%s9453_s4 + $0x8] sm:$0xff]  ;;  %v1421_v3 = vld [vmem:[%s9453_s4 + $0x10] sm:$0xff]  ;;  %vm2048_vm0 = vcmask 1042432   ;;  %vm2023_vm1 = vcmask 23552  }
 0x3b2   : > { %8686 = vsyncadd (%p10081_p9), [#allocation51], 4294967280  ;;  %7078 = vmatprep.subr.bf16.mxu0 %v8778_v0  ;;  %v7079_v4 = vpack.c.bf16 %v1420_v2, %v1419_v1  ;;  %v1422_v5 = vld [vmem:[%s9453_s4 + $0x18] sm:$0xff]  ;;  %v1423_v7 = vld [vmem:[%s9453_s4 + $0x20] sm:$0xff]  ;;  %vm3393_vm2 = vcmask 523264   ;;  %vm4290_vm3 = vcmask 130048  }
 0x3b3   : > { %v7082_v6 = vpack.c.bf16 %v1422_v5, %v1421_v3  ;;  %v1424_v8 = vld [vmem:[%s9453_s4 + $0x28] sm:$0xff]  ;;  %v1425_v10 = vld [vmem:[%s9453_s4 + $0x30] sm:$0xff]  ;;  %v1426_v11 = vld [vmem:[%s9453_s4 + $0x38] sm:$0xff]  ;;  %vm5091_vm4 = vcmask 195584   ;;  %vm5559_vm5 = vcmask 785408   ;;  %s10082_s13 = sld [smem:[#allocation95_spill]] }
 0x3b4   : > { %7080 = vmatpush1.bf16.msra.mxu0 %v7079_v4  ;;  %v7085_v9 = vpack.c.bf16 %v1424_v8, %v1423_v7  ;;  %v1452_v12 = vld [vmem:[#allocation5 + $0x8] sm:$0xff]  ;;  %v7088_v13 = vpack.c.bf16 %v1426_v11, %v1425_v10  ;;  %v1427_v14 = vld [vmem:[%s9453_s4 + $0x40] sm:$0xff]  ;;  %v1429_v17 = vld [vmem:[%s9453_s4 + $0x50] sm:$0xff]  ;;  %s6147_s26 = sshll.u32 %s9449_s5, 4  ;;  %s6410_s23 = sshll.u32 %s10051_s9, 8 }
 0x3b5   : > { %7081 = vmatprep.subr.bf16.mxu0 %v8778_v0  ;;  %1659 = vmatprep.mubr.f32.mxu0 %v1452_v12  ;;  %v1428_v15 = vld [vmem:[%s9453_s4 + $0x48] sm:$0xff]  ;;  %v1430_v18 = vld [vmem:[%s9453_s4 + $0x58] sm:$0xff]  ;;  %v1431_v20 = vld [vmem:[%s9453_s4 + $0x60] sm:$0xff]  ;;  %s1418_s7 = scalar_lea.vmem [#allocation52], %s6147_s26  ;;  %s5664_s27 = scalar_lea.sflag [#allocation4], %s9449_s5 }
 0x3b6   : > { %v7091_v16 = vpack.c.bf16 %v1428_v15, %v1427_v14  ;;  %v7094_v19 = vpack.c.bf16 %v1430_v18, %v1429_v17  ;;  %v1432_v21 = vld [vmem:[%s9453_s4 + $0x68] sm:$0xff]  ;;  %v1433_v23 = vld [vmem:[%s9453_s4 + $0x70] sm:$0xff]  ;;  %v1434_v24 = vld [vmem:[%s9453_s4 + $0x78] sm:$0xff]  ;;  %s5677_s14 = sshll.u32 %s1418_s7, 4  ;;  %p10083_p4 = scmp.ne.s32.totalorder %s10045_s3, 0  ;;  %s9885_s14 = int_to_ptr.vmem [resolvable:$true] %s5677_s14 }
 0x3b7   : > { %v7097_v22 = vpack.c.bf16 %v1432_v21, %v1431_v20  ;;  %v7100_v25 = vpack.c.bf16 %v1434_v24, %v1433_v23  ;;  %v1435_v26 = vld [vmem:[%s9453_s4 + $0x80] sm:$0xff]  ;;  %v1436_v27 = vld [vmem:[%s9453_s4 + $0x88] sm:$0xff]  ;;  %v1437_v29 = vld [vmem:[%s9453_s4 + $0x90] sm:$0xff]  ;;  %s8575_s15 = scalar_lea.vmem %s9885_s14, 256  ;;  %s8779_s10 = smov [#allocation52]  }
 0x3b8   : > { %7083 = vmatpush1.bf16.msra.mxu0 %v7082_v6  ;;  %v7103_v28 = vpack.c.bf16 %v1436_v27, %v1435_v26  ;;  %v1438_v30 = vld [vmem:[%s9453_s4 + $0x98] sm:$0xff]  ;;  %v1439_v32 = vld [vmem:[%s9453_s4 + $0xa0] sm:$0xff]  ;;  %v1440_v33 = vld [vmem:[%s9453_s4 + $0xa8] sm:$0xff]  ;;  %p8576_p3 = scmp.ne.s32.totalorder %s9885_s14, %s8575_s15  ;;  %s8579_s11 = sshll.u32 %s8779_s10, 4  ;;  %s8580_s11 = int_to_ptr.vmem [resolvable:$false] %s8579_s11 }
 0x3b9   : > { %7084 = vmatprep.subr.bf16.mxu0 %v8778_v0  ;;  %v7106_v31 = vpack.c.bf16 %v1438_v30, %v1437_v29  ;;  %v7109_v34 = vpack.c.bf16 %v1440_v33, %v1439_v32  ;;  %v1441_v35 = vld [vmem:[%s9453_s4 + $0xb0] sm:$0xff]  ;;  %v1442_v36 = vld [vmem:[%s9453_s4 + $0xb8] sm:$0xff]  ;;  %v1443_v38 = vld [vmem:[%s9453_s4 + $0xc0] sm:$0xff]  ;;  %s9883_s6 = scalar_lea.hbm %s10082_s13, %s6410_s23  ;;  %p8582_p5 = scmp.lt.s32.totalorder %s9885_s14, %s8580_s11 }
 0x3ba   : > { %v7112_v37 = vpack.c.bf16 %v1442_v36, %v1441_v35  ;;  %v1444_v39 = vld [vmem:[%s9453_s4 + $0xc8] sm:$0xff]  ;;  %v1445_v41 = vld [vmem:[%s9453_s4 + $0xd0] sm:$0xff]  ;;  %v1446_v42 = vld [vmem:[%s9453_s4 + $0xd8] sm:$0xff]  ;;  %p8577_p11 = pnand %p8576_p3, %p10083_p4 }
 0x3bb   : > { %v7115_v40 = vpack.c.bf16 %v1444_v39, %v1443_v38  ;;  %v7118_v43 = vpack.c.bf16 %v1446_v42, %v1445_v41  ;;  %v1447_v44 = vld [vmem:[%s9453_s4 + $0xe0] sm:$0xff]  ;;  %v1448_v45 = vld [vmem:[%s9453_s4 + $0xe8] sm:$0xff]  ;;  %v1449_v47 = vld [vmem:[%s9453_s4 + $0xf0] sm:$0xff] }
 0x3bc   : > { %7086 = vmatpush1.bf16.msra.mxu0 %v7085_v9  ;;  %v7121_v46 = vpack.c.bf16 %v1448_v45, %v1447_v44  ;;  %v1450_v48 = vld [vmem:[%s9453_s4 + $0xf8] sm:$0xff]  ;;  %v1451_v50 = vld [vmem:[#allocation5] sm:$0xff]  ;;  %v1453_v52 = vld [vmem:[#allocation5 + $0x10] sm:$0xff]  ;;  %p8578_p12 = pneg %p8577_p11  ;;  %s8581_s4 = scalar_lea.vmem %s8580_s11, 512 }
 0x3bd   : > { %7087 = vmatprep.subr.bf16.mxu0 %v8778_v0  ;;  %v7124_v49 = vpack.c.bf16 %v1450_v48, %v1449_v47  ;;  %v1454_v51 = vld [vmem:[#allocation5 + $0x18] sm:$0xff]  ;;  %v1456_v53 = vld [vmem:[#allocation5 + $0x28] sm:$0xff]  ;;  %v1455_v54 = vld [vmem:[#allocation5 + $0x20] sm:$0xff]  ;;  %p8583_p7 = scmp.lt.s32.totalorder %s8581_s4, %s8575_s15 }
 0x3be   : > { %v1458_v55 = vld [vmem:[#allocation5 + $0x38] sm:$0xff]  ;;  %v1457_v56 = vld [vmem:[#allocation5 + $0x30] sm:$0xff]  ;;  %v1460_v57 = vld [vmem:[#allocation5 + $0x48] sm:$0xff] }
 0x3bf   : > { %v1459_v58 = vld [vmem:[#allocation5 + $0x40] sm:$0xff]  ;;  %v1462_v59 = vld [vmem:[#allocation5 + $0x58] sm:$0xff]  ;;  %v1461_v60 = vld [vmem:[#allocation5 + $0x50] sm:$0xff]  ;;  %p8584_p10 = por %p8583_p7, %p8582_p5 }
 0x3c0   : > { %7089 = vmatpush1.bf16.msra.mxu0 %v7088_v13  ;;  %v1464_v61 = vld [vmem:[#allocation5 + $0x68] sm:$0xff]  ;;  %v1463_v62 = vld [vmem:[#allocation5 + $0x60] sm:$0xff]  ;;  %v1466_v63 = vld [vmem:[#allocation5 + $0x78] sm:$0xff] }
 0x3c1   : > { %7090 = vmatprep.subr.bf16.mxu0 %v8778_v0  ;;  %v1468_v1 = vld [vmem:[#allocation5 + $0x88] sm:$0xff]  ;;  %v1467_v2 = vld [vmem:[#allocation5 + $0x80] sm:$0xff]  ;;  %v1470_v3 = vld [vmem:[#allocation5 + $0x98] sm:$0xff]  ;;  %p8585_p1 = pnand %p8584_p10, %p8578_p12 }
 0x3c2   : > { %v1469_v4 = vld [vmem:[#allocation5 + $0x90] sm:$0xff]  ;;  %v1472_v5 = vld [vmem:[#allocation5 + $0xa8] sm:$0xff]  ;;  %v1471_v6 = vld [vmem:[#allocation5 + $0xa0] sm:$0xff] }
 0x3c3   : > { %v1474_v7 = vld [vmem:[#allocation5 + $0xb8] sm:$0xff]  ;;  %v1473_v8 = vld [vmem:[#allocation5 + $0xb0] sm:$0xff]  ;;  %v1476_v9 = vld [vmem:[#allocation5 + $0xc8] sm:$0xff] }
 0x3c4   : > { %7092 = vmatpush1.bf16.msra.mxu0 %v7091_v16  ;;  %v1475_v10 = vld [vmem:[#allocation5 + $0xc0] sm:$0xff]  ;;  %v1478_v11 = vld [vmem:[#allocation5 + $0xd8] sm:$0xff]  ;;  %v1477_v12 = vld [vmem:[#allocation5 + $0xd0] sm:$0xff] }
 0x3c5   : > { %7093 = vmatprep.subr.bf16.mxu0 %v8778_v0  ;;  %v1480_v13 = vld [vmem:[#allocation5 + $0xe8] sm:$0xff]  ;;  %v1479_v14 = vld [vmem:[#allocation5 + $0xe0] sm:$0xff]  ;;  %v1482_v15 = vld [vmem:[#allocation5 + $0xf8] sm:$0xff] }
 0x3c6   : > { %v1481_v16 = vld [vmem:[#allocation5 + $0xf0] sm:$0xff]  ;;  %v1484_v17 = vld [vmem:[#allocation5 + $0x108] sm:$0xff]  ;;  %v1483_v18 = vld [vmem:[#allocation5 + $0x100] sm:$0xff] }
 0x3c7   : > { %v1485_v20 = vld [vmem:[#allocation5 + $0x110] sm:$0xff]  ;;  %v1488_v21 = vld [vmem:[#allocation5 + $0x128] sm:$0xff]  ;;  %v1490_v23 = vld [vmem:[#allocation5 + $0x138] sm:$0xff] }
 0x3c8   : > { %7095 = vmatpush1.bf16.msra.mxu0 %v7094_v19  ;;  %v1486_v19 = vld [vmem:[#allocation5 + $0x118] sm:$0xff]  ;;  %v1489_v24 = vld [vmem:[#allocation5 + $0x130] sm:$0xff]  ;;  %v1491_v26 = vld [vmem:[#allocation5 + $0x140] sm:$0xff] }
 0x3c9   : > { %7096 = vmatprep.subr.bf16.mxu0 %v8778_v0  ;;  %v1494_v27 = vld [vmem:[#allocation5 + $0x158] sm:$0xff]  ;;  %v1496_v29 = vld [vmem:[#allocation5 + $0x168] sm:$0xff]  ;;  %v1495_v30 = vld [vmem:[#allocation5 + $0x160] sm:$0xff] }
 0x3ca   : > { %v1497_v32 = vld [vmem:[#allocation5 + $0x170] sm:$0xff]  ;;  %v1500_v33 = vld [vmem:[#allocation5 + $0x188] sm:$0xff]  ;;  %v1502_v35 = vld [vmem:[#allocation5 + $0x198] sm:$0xff] }
 0x3cb   : > { %v1501_v36 = vld [vmem:[#allocation5 + $0x190] sm:$0xff]  ;;  %v1503_v38 = vld [vmem:[#allocation5 + $0x1a0] sm:$0xff]  ;;  %v1506_v39 = vld [vmem:[#allocation5 + $0x1b8] sm:$0xff] }
 0x3cc   : > { %7098 = vmatpush1.bf16.msra.mxu0 %v7097_v22  ;;  %v1487_v22 = vld [vmem:[#allocation5 + $0x120] sm:$0xff]  ;;  %v1508_v41 = vld [vmem:[#allocation5 + $0x1c8] sm:$0xff]  ;;  %v1509_v44 = vld [vmem:[#allocation5 + $0x1d0] sm:$0xff] }
 0x3cd   : > { %7099 = vmatprep.subr.bf16.mxu0 %v8778_v0  ;;  %v1507_v42 = vld [vmem:[#allocation5 + $0x1c0] sm:$0xff]  ;;  %v1512_v45 = vld [vmem:[#allocation5 + $0x1e8] sm:$0xff]  ;;  %v1514_v48 = vld [vmem:[#allocation5 + $0x1f8] sm:$0xff] }
 0x3ce   : > { %v1511_v47 = vld [vmem:[#allocation5 + $0x1e0] sm:$0xff] }
 0x3d0   : > { %7101 = vmatpush1.bf16.msra.mxu0 %v7100_v25  ;;  %v1492_v25 = vld [vmem:[#allocation5 + $0x148] sm:$0xff] }
 0x3d1   : > { %7102 = vmatprep.subr.bf16.mxu0 %v8778_v0 }
 0x3d4   : > { %7104 = vmatpush1.bf16.msra.mxu0 %v7103_v28  ;;  %v1493_v28 = vld [vmem:[#allocation5 + $0x150] sm:$0xff] }
 0x3d5   : > { %7105 = vmatprep.subr.bf16.mxu0 %v8778_v0 }
 0x3d8   : > { %7107 = vmatpush1.bf16.msra.mxu0 %v7106_v31  ;;  %v1498_v31 = vld [vmem:[#allocation5 + $0x178] sm:$0xff] }
 0x3d9   : > { %7108 = vmatprep.subr.bf16.mxu0 %v8778_v0 }
 0x3dc   : > { %7110 = vmatpush1.bf16.msra.mxu0 %v7109_v34  ;;  %v1499_v34 = vld [vmem:[#allocation5 + $0x180] sm:$0xff] }
 0x3dd   : > { %7111 = vmatprep.subr.bf16.mxu0 %v8778_v0 }
 0x3e0   : > { %7113 = vmatpush1.bf16.msra.mxu0 %v7112_v37  ;;  %v1504_v37 = vld [vmem:[#allocation5 + $0x1a8] sm:$0xff] }
 0x3e1   : > { %7114 = vmatprep.subr.bf16.mxu0 %v8778_v0 }
 0x3e4   : > { %7116 = vmatpush1.bf16.msra.mxu0 %v7115_v40  ;;  %v1505_v40 = vld [vmem:[#allocation5 + $0x1b0] sm:$0xff] }
 0x3e5   : > { %7117 = vmatprep.subr.bf16.mxu0 %v8778_v0 }
 0x3e8   : > { %7119 = vmatpush1.bf16.msra.mxu0 %v7118_v43  ;;  %v1510_v43 = vld [vmem:[#allocation5 + $0x1d8] sm:$0xff] }
 0x3e9   : > { %7120 = vmatprep.subr.bf16.mxu0 %v8778_v0 }
 0x3ec   : > { %7122 = vmatpush1.bf16.msra.mxu0 %v7121_v46  ;;  %v2022_v46 = vld [vmem:[#allocation7 + $0x4] sm:$0x7] }
 0x3ed   : > { %7123 = vmatprep.subr.bf16.mxu0 %v8778_v0  ;;  %v1465_v0 = vld [vmem:[#allocation5 + $0x70] sm:$0xff]  ;;  %6667 = vmatprep.subr.msk.mxu1 %vm2048_vm0, %v2022_v46 }
 0x3ee   : > { %6668 = vmatpush3.msk.msra.mxu1 %vm2048_vm0, %v2022_v46  ;;  %v1565_v46 = vld [vmem:[#allocation5 + $0x390] sm:$0xff] }
 0x3f0   : > { %7125 = vmatpush1.bf16.msra.mxu0 %v7124_v49  ;;  %v1513_v49 = vld [vmem:[#allocation5 + $0x1f0] sm:$0xff] }
 0x3f3   : > { %1660 = vmatmul.mubr.f32.vlgmr.msra.gmra.mrb[0].mxu0 %v1451_v50  ;;  %v1516_v50 = vld [vmem:[#allocation5 + $0x208] sm:$0xff] }
 0x3f4   : > { %1664 = vmatprep.mubr.f32.mxu0 %v1454_v51  ;;  %v1515_v51 = vld [vmem:[#allocation5 + $0x200] sm:$0xff] }
 0x3f7   : > { %1665 = vmatmul.mubr.f32.gmra.mrb[2].mxu0 %v1453_v52  ;;  %v1518_v52 = vld [vmem:[#allocation5 + $0x218] sm:$0xff] }
 0x3f8   : > { %1669 = vmatprep.mubr.f32.mxu0 %v1456_v53  ;;  %v1517_v53 = vld [vmem:[#allocation5 + $0x210] sm:$0xff] }
 0x3fb   : > { %1670 = vmatmul.mubr.f32.gmra.mrb[4].mxu0 %v1455_v54  ;;  %v1520_v54 = vld [vmem:[#allocation5 + $0x228] sm:$0xff] }
 0x3fc   : > { %1674 = vmatprep.mubr.f32.mxu0 %v1458_v55  ;;  %v1519_v55 = vld [vmem:[#allocation5 + $0x220] sm:$0xff] }
 0x3ff   : > { %1675 = vmatmul.mubr.f32.gmra.mrb[6].mxu0 %v1457_v56  ;;  %v1522_v56 = vld [vmem:[#allocation5 + $0x238] sm:$0xff] }
 0x400   : > { %1679 = vmatprep.mubr.f32.mxu0 %v1460_v57  ;;  %v1521_v57 = vld [vmem:[#allocation5 + $0x230] sm:$0xff] }
 0x403   : > { %1680 = vmatmul.mubr.f32.gmra.mrb[8].mxu0 %v1459_v58  ;;  %v1524_v58 = vld [vmem:[#allocation5 + $0x248] sm:$0xff] }
 0x404   : > { %1684 = vmatprep.mubr.f32.mxu0 %v1462_v59  ;;  %v1523_v59 = vld [vmem:[#allocation5 + $0x240] sm:$0xff] }
 0x407   : > { %1685 = vmatmul.mubr.f32.gmra.mrb[10].mxu0 %v1461_v60  ;;  %v1526_v60 = vld [vmem:[#allocation5 + $0x258] sm:$0xff] }
 0x408   : > { %1689 = vmatprep.mubr.f32.mxu0 %v1464_v61  ;;  %v1525_v61 = vld [vmem:[#allocation5 + $0x250] sm:$0xff] }
 0x40b   : > { %1690 = vmatmul.mubr.f32.gmra.mrb[12].mxu0 %v1463_v62  ;;  %v9573_v62 = vld [vmem:[#allocation7] sm:$0x7] }
 0x40c   : > { %1694 = vmatprep.mubr.f32.mxu0 %v1466_v63  ;;  %v1528_v63 = vld [vmem:[#allocation5 + $0x268] sm:$0xff]  ;;  %6681 = vmatprep.subr.msk.mxu1 %vm2048_vm0, %v9573_v62 }
 0x40f   : > { %1695 = vmatmul.mubr.f32.gmra.mrb[14].mxu0 %v1465_v0  ;;  %v1527_v0 = vld [vmem:[#allocation5 + $0x260] sm:$0xff] }
 0x410   : > { %1699 = vmatprep.mubr.f32.mxu0 %v1468_v1  ;;  %v1530_v1 = vld [vmem:[#allocation5 + $0x278] sm:$0xff] }
 0x413   : > { %1700 = vmatmul.mubr.f32.gmra.mrb[16].mxu0 %v1467_v2  ;;  %v1529_v2 = vld [vmem:[#allocation5 + $0x270] sm:$0xff] }
 0x414   : > { %1704 = vmatprep.mubr.f32.mxu0 %v1470_v3  ;;  %v1532_v3 = vld [vmem:[#allocation5 + $0x288] sm:$0xff] }
 0x417   : > { %1705 = vmatmul.mubr.f32.gmra.mrb[18].mxu0 %v1469_v4  ;;  %v1531_v4 = vld [vmem:[#allocation5 + $0x280] sm:$0xff] }
 0x418   : > { %1709 = vmatprep.mubr.f32.mxu0 %v1472_v5  ;;  %v1534_v5 = vld [vmem:[#allocation5 + $0x298] sm:$0xff] }
 0x41b   : > { %1710 = vmatmul.mubr.f32.gmra.mrb[20].mxu0 %v1471_v6  ;;  %v1533_v6 = vld [vmem:[#allocation5 + $0x290] sm:$0xff] }
 0x41c   : > { %1714 = vmatprep.mubr.f32.mxu0 %v1474_v7  ;;  %v1536_v7 = vld [vmem:[#allocation5 + $0x2a8] sm:$0xff] }
 0x41f   : > { %1715 = vmatmul.mubr.f32.gmra.mrb[22].mxu0 %v1473_v8  ;;  %v1535_v8 = vld [vmem:[#allocation5 + $0x2a0] sm:$0xff] }
 0x420   : > { %1719 = vmatprep.mubr.f32.mxu0 %v1476_v9  ;;  %v1538_v9 = vld [vmem:[#allocation5 + $0x2b8] sm:$0xff] }
 0x423   : > { %1720 = vmatmul.mubr.f32.gmra.mrb[24].mxu0 %v1475_v10  ;;  %v1537_v10 = vld [vmem:[#allocation5 + $0x2b0] sm:$0xff] }
 0x424   : > { %1724 = vmatprep.mubr.f32.mxu0 %v1478_v11  ;;  %v1540_v11 = vld [vmem:[#allocation5 + $0x2c8] sm:$0xff] }
 0x427   : > { %1725 = vmatmul.mubr.f32.gmra.mrb[26].mxu0 %v1477_v12  ;;  %v1539_v12 = vld [vmem:[#allocation5 + $0x2c0] sm:$0xff] }
 0x428   : > { %1729 = vmatprep.mubr.f32.mxu0 %v1480_v13  ;;  %v1542_v13 = vld [vmem:[#allocation5 + $0x2d8] sm:$0xff] }
 0x42b   : > { %1730 = vmatmul.mubr.f32.gmra.mrb[28].mxu0 %v1479_v14  ;;  %v1541_v14 = vld [vmem:[#allocation5 + $0x2d0] sm:$0xff] }
 0x42c   : > { %1734 = vmatprep.mubr.f32.mxu0 %v1482_v15  ;;  %v1544_v15 = vld [vmem:[#allocation5 + $0x2e8] sm:$0xff] }
 0x42f   : > { %1735 = vmatmul.mubr.f32.gmra.mrb[30].mxu0 %v1481_v16  ;;  %v1543_v16 = vld [vmem:[#allocation5 + $0x2e0] sm:$0xff] }
 0x430   : > { %1739 = vmatprep.mubr.f32.mxu0 %v1484_v17  ;;  %v1546_v17 = vld [vmem:[#allocation5 + $0x2f8] sm:$0xff] }
 0x433   : > { %1740 = vmatmul.mubr.f32.gmra.mrb[32].mxu0 %v1483_v18  ;;  %v1545_v18 = vld [vmem:[#allocation5 + $0x2f0] sm:$0xff] }
 0x434   : > { %1744 = vmatprep.mubr.f32.mxu0 %v1486_v19  ;;  %v1548_v19 = vld [vmem:[#allocation5 + $0x308] sm:$0xff] }
 0x437   : > { %1745 = vmatmul.mubr.f32.gmra.mrb[34].mxu0 %v1485_v20  ;;  %v1547_v20 = vld [vmem:[#allocation5 + $0x300] sm:$0xff] }
 0x438   : > { %1749 = vmatprep.mubr.f32.mxu0 %v1488_v21  ;;  %v1550_v21 = vld [vmem:[#allocation5 + $0x318] sm:$0xff] }
 0x43b   : > { %1750 = vmatmul.mubr.f32.gmra.mrb[36].mxu0 %v1487_v22  ;;  %v1549_v22 = vld [vmem:[#allocation5 + $0x310] sm:$0xff] }
 0x43c   : > { %1754 = vmatprep.mubr.f32.mxu0 %v1490_v23  ;;  %v1552_v23 = vld [vmem:[#allocation5 + $0x328] sm:$0xff] }
 0x43f   : > { %1755 = vmatmul.mubr.f32.gmra.mrb[38].mxu0 %v1489_v24  ;;  %v1551_v24 = vld [vmem:[#allocation5 + $0x320] sm:$0xff] }
 0x440   : > { %1759 = vmatprep.mubr.f32.mxu0 %v1492_v25  ;;  %v1554_v25 = vld [vmem:[#allocation5 + $0x338] sm:$0xff] }
 0x443   : > { %1760 = vmatmul.mubr.f32.gmra.mrb[40].mxu0 %v1491_v26  ;;  %v1553_v26 = vld [vmem:[#allocation5 + $0x330] sm:$0xff] }
 0x444   : > { %1764 = vmatprep.mubr.f32.mxu0 %v1494_v27  ;;  %v1556_v27 = vld [vmem:[#allocation5 + $0x348] sm:$0xff] }
 0x447   : > { %1765 = vmatmul.mubr.f32.gmra.mrb[42].mxu0 %v1493_v28  ;;  %v1555_v28 = vld [vmem:[#allocation5 + $0x340] sm:$0xff] }
 0x448   : > { %1769 = vmatprep.mubr.f32.mxu0 %v1496_v29  ;;  %v1558_v29 = vld [vmem:[#allocation5 + $0x358] sm:$0xff] }
 0x44b   : > { %1770 = vmatmul.mubr.f32.gmra.mrb[44].mxu0 %v1495_v30  ;;  %v1557_v30 = vld [vmem:[#allocation5 + $0x350] sm:$0xff] }
 0x44c   : > { %1774 = vmatprep.mubr.f32.mxu0 %v1498_v31  ;;  %v1560_v31 = vld [vmem:[#allocation5 + $0x368] sm:$0xff] }
 0x44f   : > { %1775 = vmatmul.mubr.f32.gmra.mrb[46].mxu0 %v1497_v32 }
 0x450   : > { %1779 = vmatprep.mubr.f32.mxu0 %v1500_v33 }
 0x453   : > { %1780 = vmatmul.mubr.f32.gmra.mrb[48].mxu0 %v1499_v34  ;;  %v1559_v34 = vld [vmem:[#allocation5 + $0x360] sm:$0xff] }
 0x454   : > { %1784 = vmatprep.mubr.f32.mxu0 %v1502_v35  ;;  %v1562_v35 = vld [vmem:[#allocation5 + $0x378] sm:$0xff] }
 0x457   : > { %1785 = vmatmul.mubr.f32.gmra.mrb[50].mxu0 %v1501_v36 }
 0x458   : > { %1789 = vmatprep.mubr.f32.mxu0 %v1504_v37 }
 0x45b   : > { %1790 = vmatmul.mubr.f32.gmra.mrb[52].mxu0 %v1503_v38  ;;  %v1561_v38 = vld [vmem:[#allocation5 + $0x370] sm:$0xff] }
 0x45c   : > { %1794 = vmatprep.mubr.f32.mxu0 %v1506_v39  ;;  %v1564_v39 = vld [vmem:[#allocation5 + $0x388] sm:$0xff] }
 0x45f   : > { %1795 = vmatmul.mubr.f32.gmra.mrb[54].mxu0 %v1505_v40 }
 0x460   : > { %1799 = vmatprep.mubr.f32.mxu0 %v1508_v41 }
 0x463   : > { %1800 = vmatmul.mubr.f32.gmra.mrb[56].mxu0 %v1507_v42  ;;  %v1563_v42 = vld [vmem:[#allocation5 + $0x380] sm:$0xff] }
 0x464   : > { %1804 = vmatprep.mubr.f32.mxu0 %v1510_v43  ;;  %v1566_v43 = vld [vmem:[#allocation5 + $0x398] sm:$0xff] }
 0x467   : > { %1805 = vmatmul.mubr.f32.gmra.mrb[58].mxu0 %v1509_v44 }
 0x468   : > { %1809 = vmatprep.mubr.f32.mxu0 %v1512_v45 }
 0x46b   : > { %1810 = vmatmul.mubr.f32.gmra.mrb[60].mxu0 %v1511_v47  ;;  %v1568_v47 = vld [vmem:[#allocation5 + $0x3a8] sm:$0xff] }
 0x46c   : > { %1814 = vmatprep.mubr.f32.mxu0 %v1514_v48 }
 0x46f   : > { %1815 = vmatmul.mubr.f32.gmra.mrb[62].mxu0 %v1513_v49 }
 0x470   : > { %1819 = vmatprep.mubr.f32.mxu0 %v1516_v50  ;;  %v1567_v50 = vld [vmem:[#allocation5 + $0x3a0] sm:$0xff] }
 0x473   : > { %1820 = vmatmul.mubr.f32.gmra.mrb[64].mxu0 %v1515_v51  ;;  %v1570_v51 = vld [vmem:[#allocation5 + $0x3b8] sm:$0xff] }
 0x474   : > { %1824 = vmatprep.mubr.f32.mxu0 %v1518_v52 }
 0x477   : > { %1825 = vmatmul.mubr.f32.gmra.mrb[66].mxu0 %v1517_v53 }
 0x478   : > { %1829 = vmatprep.mubr.f32.mxu0 %v1520_v54  ;;  %v1569_v54 = vld [vmem:[#allocation5 + $0x3b0] sm:$0xff] }
 0x47b   : > { %1830 = vmatmul.mubr.f32.gmra.mrb[68].mxu0 %v1519_v55  ;;  %v1572_v55 = vld [vmem:[#allocation5 + $0x3c8] sm:$0xff] }
 0x47c   : > { %1834 = vmatprep.mubr.f32.mxu0 %v1522_v56 }
 0x47f   : > { %1835 = vmatmul.mubr.f32.gmra.mrb[70].mxu0 %v1521_v57 }
 0x480   : > { %1839 = vmatprep.mubr.f32.mxu0 %v1524_v58  ;;  %v1571_v58 = vld [vmem:[#allocation5 + $0x3c0] sm:$0xff] }
 0x483   : > { %1840 = vmatmul.mubr.f32.gmra.mrb[72].mxu0 %v1523_v59  ;;  %v1574_v59 = vld [vmem:[#allocation5 + $0x3d8] sm:$0xff] }
 0x484   : > { %1844 = vmatprep.mubr.f32.mxu0 %v1526_v60 }
 0x487   : > { %1845 = vmatmul.mubr.f32.gmra.mrb[74].mxu0 %v1525_v61 }
 0x488   : > { %1849 = vmatprep.mubr.f32.mxu0 %v1528_v63  ;;  %v1573_v63 = vld [vmem:[#allocation5 + $0x3d0] sm:$0xff] }
 0x48b   : > { %1850 = vmatmul.mubr.f32.gmra.mrb[76].mxu0 %v1527_v0  ;;  %v1576_v0 = vld [vmem:[#allocation5 + $0x3e8] sm:$0xff] }
 0x48c   : > { %1854 = vmatprep.mubr.f32.mxu0 %v1530_v1 }
 0x48f   : > { %1855 = vmatmul.mubr.f32.gmra.mrb[78].mxu0 %v1529_v2 }
 0x490   : > { %1859 = vmatprep.mubr.f32.mxu0 %v1532_v3  ;;  %v1575_v3 = vld [vmem:[#allocation5 + $0x3e0] sm:$0xff] }
 0x493   : > { %1860 = vmatmul.mubr.f32.gmra.mrb[80].mxu0 %v1531_v4  ;;  %v1578_v4 = vld [vmem:[#allocation5 + $0x3f8] sm:$0xff] }
 0x494   : > { %1864 = vmatprep.mubr.f32.mxu0 %v1534_v5 }
 0x497   : > { %1865 = vmatmul.mubr.f32.gmra.mrb[82].mxu0 %v1533_v6  ;;  %v2290_v6 = vld [vmem:[#allocation7 + $0x8] sm:$0x7] }
 0x498   : > { %1869 = vmatprep.mubr.f32.mxu0 %v1536_v7 }
 0x49b   : > { %1870 = vmatmul.mubr.f32.gmra.mrb[84].mxu0 %v1535_v8  ;;  %v1577_v8 = vld [vmem:[#allocation5 + $0x3f0] sm:$0xff] }
 0x49c   : > { %1874 = vmatprep.mubr.f32.mxu0 %v1538_v9  ;;  %v1580_v9 = vld [vmem:[#allocation5 + $0x408] sm:$0xff] }
 0x49f   : > { %1875 = vmatmul.mubr.f32.gmra.mrb[86].mxu0 %v1537_v10 }
 0x4a0   : > { %1879 = vmatprep.mubr.f32.mxu0 %v1540_v11 }
 0x4a3   : > { %1880 = vmatmul.mubr.f32.gmra.mrb[88].mxu0 %v1539_v12  ;;  %v1579_v12 = vld [vmem:[#allocation5 + $0x400] sm:$0xff] }
 0x4a4   : > { %1884 = vmatprep.mubr.f32.mxu0 %v1542_v13  ;;  %v1582_v13 = vld [vmem:[#allocation5 + $0x418] sm:$0xff] }
 0x4a7   : > { %1885 = vmatmul.mubr.f32.gmra.mrb[90].mxu0 %v1541_v14 }
 0x4a8   : > { %1889 = vmatprep.mubr.f32.mxu0 %v1544_v15 }
 0x4ab   : > { %1890 = vmatmul.mubr.f32.gmra.mrb[92].mxu0 %v1543_v16  ;;  %v1581_v16 = vld [vmem:[#allocation5 + $0x410] sm:$0xff] }
 0x4ac   : > { %1894 = vmatprep.mubr.f32.mxu0 %v1546_v17  ;;  %v1584_v17 = vld [vmem:[#allocation5 + $0x428] sm:$0xff] }
 0x4af   : > { %1895 = vmatmul.mubr.f32.gmra.mrb[94].mxu0 %v1545_v18 }
 0x4b0   : > { %1899 = vmatprep.mubr.f32.mxu0 %v1548_v19  ;;  %v1583_v19 = vld [vmem:[#allocation5 + $0x420] sm:$0xff] }
 0x4b3   : > { %1900 = vmatmul.mubr.f32.gmra.mrb[96].mxu0 %v1547_v20  ;;  %v1586_v20 = vld [vmem:[#allocation5 + $0x438] sm:$0xff] }
 0x4b4   : > { %1904 = vmatprep.mubr.f32.mxu0 %v1550_v21 }
 0x4b7   : > { %1905 = vmatmul.mubr.f32.gmra.mrb[98].mxu0 %v1549_v22 }
 0x4b8   : > { %1909 = vmatprep.mubr.f32.mxu0 %v1552_v23  ;;  %v1585_v23 = vld [vmem:[#allocation5 + $0x430] sm:$0xff] }
 0x4bb   : > { %1910 = vmatmul.mubr.f32.gmra.mrb[100].mxu0 %v1551_v24  ;;  %v1588_v24 = vld [vmem:[#allocation5 + $0x448] sm:$0xff] }
 0x4bc   : > { %1914 = vmatprep.mubr.f32.mxu0 %v1554_v25 }
 0x4bf   : > { %1915 = vmatmul.mubr.f32.gmra.mrb[102].mxu0 %v1553_v26 }
 0x4c0   : > { %1919 = vmatprep.mubr.f32.mxu0 %v1556_v27  ;;  %v1587_v27 = vld [vmem:[#allocation5 + $0x440] sm:$0xff] }
 0x4c3   : > { %1920 = vmatmul.mubr.f32.gmra.mrb[104].mxu0 %v1555_v28  ;;  %v1590_v28 = vld [vmem:[#allocation5 + $0x458] sm:$0xff] }
 0x4c4   : > { %1924 = vmatprep.mubr.f32.mxu0 %v1558_v29 }
 0x4c6   : > { %v9577_v32 = vpop.f32.mrb[0].mxu0 }
 0x4c7   : > { %v1663_v33 = vpop.f32.mrb[1].mxu0  ;;  %1925 = vmatmul.mubr.f32.gmra.mrb[106].mxu0 %v1557_v30 }
 0x4c8   : > { %1929 = vmatprep.mubr.f32.mxu0 %v1560_v31  ;;  %v1589_v31 = vld [vmem:[#allocation5 + $0x450] sm:$0xff]  ;;  %v1592_v33 = vld [vmem:[#allocation5 + $0x468] sm:$0xff] }
 0x4ca   : > { %v9579_v36 = vpop.f32.mrb[2].mxu0 }
 0x4cb   : > { %v1668_v37 = vpop.f32.mrb[3].mxu0  ;;  %1930 = vmatmul.mubr.f32.gmra.mrb[108].mxu0 %v1559_v34 }
 0x4cc   : > { %1934 = vmatprep.mubr.f32.mxu0 %v1562_v35  ;;  %v2432_v37 = vld [vmem:[#allocation7 + $0xc] sm:$0x7] }
 0x4ce   : > { %v9581_v40 = vpop.f32.mrb[4].mxu0 }
 0x4cf   : > { %v1673_v41 = vpop.f32.mrb[5].mxu0  ;;  %1935 = vmatmul.mubr.f32.gmra.mrb[110].mxu0 %v1561_v38  ;;  %v1591_v38 = vld [vmem:[#allocation5 + $0x460] sm:$0xff] }
 0x4d0   : > { %1939 = vmatprep.mubr.f32.mxu0 %v1564_v39  ;;  %v1594_v39 = vld [vmem:[#allocation5 + $0x478] sm:$0xff] }
 0x4d2   : > { %v9583_v44 = vpop.f32.mrb[6].mxu0 }
 0x4d3   : > { %v1678_v45 = vpop.f32.mrb[7].mxu0  ;;  %1940 = vmatmul.mubr.f32.gmra.mrb[112].mxu0 %v1563_v42 }
 0x4d4   : > { %1944 = vmatprep.mubr.f32.mxu0 %v1566_v43 }
 0x4d6   : > { %v9585_v48 = vpop.f32.mrb[8].mxu0 }
 0x4d7   : > { %v1683_v49 = vpop.f32.mrb[9].mxu0  ;;  %1945 = vmatmul.mubr.f32.gmra.mrb[114].mxu0 %v1565_v46  ;;  %v2574_v46 = vld [vmem:[#allocation7 + $0x10] sm:$0x7] }
 0x4d8   : > { %1949 = vmatprep.mubr.f32.mxu0 %v1568_v47 }
 0x4da   : > { %v9587_v52 = vpop.f32.mrb[10].mxu0 }
 0x4db   : > { %v1688_v53 = vpop.f32.mrb[11].mxu0  ;;  %1950 = vmatmul.mubr.f32.gmra.mrb[116].mxu0 %v1567_v50 }
 0x4dc   : > { %1954 = vmatprep.mubr.f32.mxu0 %v1570_v51 }
 0x4de   : > { %v9589_v56 = vpop.f32.mrb[12].mxu0 }
 0x4df   : > { %v1693_v57 = vpop.f32.mrb[13].mxu0  ;;  %1955 = vmatmul.mubr.f32.gmra.mrb[118].mxu0 %v1569_v54 }
 0x4e0   : > { %1959 = vmatprep.mubr.f32.mxu0 %v1572_v55  ;;  %v2716_v57 = vld [vmem:[#allocation7 + $0x14] sm:$0x7] }
 0x4e2   : > { %v9591_v60 = vpop.f32.mrb[14].mxu0 }
 0x4e3   : > { %v1698_v61 = vpop.f32.mrb[15].mxu0  ;;  %1960 = vmatmul.mubr.f32.gmra.mrb[120].mxu0 %v1571_v58 }
 0x4e4   : > { %1964 = vmatprep.mubr.f32.mxu0 %v1574_v59 }
 0x4e6   : > { %v1701_v1 = vpop.f32.mrb[16].mxu0 }
 0x4e7   : > { %v1703_v2 = vpop.f32.mrb[17].mxu0  ;;  %1965 = vmatmul.mubr.f32.gmra.mrb[122].mxu0 %v1573_v63  ;;  %6669 = vmatprep.mubr.msk.f32.mxu1 %vm2023_vm1, %v1701_v1 }
 0x4e8   : > { %1969 = vmatprep.mubr.f32.mxu0 %v1576_v0 }
 0x4ea   : > { %v1706_v5 = vpop.f32.mrb[18].mxu0 }
 0x4eb   : > { %v1708_v7 = vpop.f32.mrb[19].mxu0  ;;  %1970 = vmatmul.mubr.f32.gmra.mrb[124].mxu0 %v1575_v3  ;;  %6670 = vmatmul.mubr.msk.f32.vlgmr.msra.gmra.mrb[0].mxu1 %vm2023_vm1, %v1706_v5 }
 0x4ec   : > { %1974 = vmatprep.mubr.f32.mxu0 %v1578_v4  ;;  %6682 = vmatpush3.msk.msra.mxu1 %vm2048_vm0, %v9573_v62 }
 0x4ed   : > { %6695 = vmatprep.subr.msk.mxu1 %vm2048_vm0, %v2290_v6 }
 0x4ee   : > { %v1711_v10 = vpop.f32.mrb[20].mxu0 }
 0x4ef   : > { %v1713_v11 = vpop.f32.mrb[21].mxu0  ;;  %1975 = vmatmul.mubr.f32.gmra.mrb[126].mxu0 %v1577_v8  ;;  %6672 = vmatprep.mubr.msk.f32.mxu1 %vm2023_vm1, %v1711_v10 }
 0x4f0   : > { %1979 = vmatprep.mubr.f32.mxu0 %v1580_v9  ;;  %v2858_v11 = vld [vmem:[#allocation7 + $0x18] sm:$0x7] }
 0x4f2   : > { %v1716_v14 = vpop.f32.mrb[22].mxu0 }
 0x4f3   : > { %v1718_v15 = vpop.f32.mrb[23].mxu0  ;;  %1980 = vmatmul.mubr.f32.gmra.mrb[128].mxu0 %v1579_v12  ;;  %6673 = vmatmul.mubr.msk.f32.gmra.mrb[2].mxu1 %vm2023_vm1, %v1716_v14 }
 0x4f4   : > { %1984 = vmatprep.mubr.f32.mxu0 %v1582_v13 }
 0x4f6   : > { %v1721_v62 = vpop.f32.mrb[24].mxu0 }
 0x4f7   : > { %v1723_v18 = vpop.f32.mrb[25].mxu0  ;;  %1985 = vmatmul.mubr.f32.gmra.mrb[130].mxu0 %v1581_v16  ;;  %6675 = vmatprep.mubr.msk.f32.mxu1 %vm2023_vm1, %v1721_v62 }
 0x4f8   : > { %1989 = vmatprep.mubr.f32.mxu0 %v1584_v17 }
 0x4fa   : > { %v1726_v21 = vpop.f32.mrb[26].mxu0 }
 0x4fb   : > { %v1728_v22 = vpop.f32.mrb[27].mxu0  ;;  %1990 = vmatmul.mubr.f32.gmra.mrb[132].mxu0 %v1583_v19  ;;  %6676 = vmatmul.mubr.msk.f32.gmra.mrb[4].mxu1 %vm2023_vm1, %v1726_v21 }
 0x4fc   : > { %1994 = vmatprep.mubr.f32.mxu0 %v1586_v20 }
 0x4fe   : > { %v1731_v25 = vpop.f32.mrb[28].mxu0 }
 0x4ff   : > { %v1733_v26 = vpop.f32.mrb[29].mxu0  ;;  %1995 = vmatmul.mubr.f32.gmra.mrb[134].mxu0 %v1585_v23  ;;  %6678 = vmatprep.mubr.msk.f32.mxu1 %vm2023_vm1, %v1731_v25 }
 0x500   : > { %1999 = vmatprep.mubr.f32.mxu0 %v1588_v24 }
 0x502   : > { %v1736_v29 = vpop.f32.mrb[30].mxu0 }
 0x503   : > { %v1738_v30 = vpop.f32.mrb[31].mxu0  ;;  %2000 = vmatmul.mubr.f32.gmra.mrb[136].mxu0 %v1587_v27  ;;  %6679 = vmatmul.mubr.msk.f32.gmra.mrb[6].mxu1 %vm2023_vm1, %v1736_v29  ;;  %v3000_v27 = vld [vmem:[#allocation7 + $0x1c] sm:$0x7] }
 0x504   : > { %6683 = vmatprep.mubr.msk.f32.mxu1 %vm2023_vm1, %v9577_v32  ;;  %2004 = vmatprep.mubr.f32.mxu0 %v1590_v28 }
 0x506   : > { %v1741_v34 = vpop.f32.mrb[32].mxu0 }
 0x507   : > { %v1743_v35 = vpop.f32.mrb[33].mxu0  ;;  %2005 = vmatmul.mubr.f32.gmra.mrb[138].mxu0 %v1589_v31  ;;  %6684 = vmatmul.mubr.msk.f32.vlgmr.msra.gmra.mrb[0].mxu1 %vm2023_vm1, %v9579_v36  ;;  %v1593_v36 = vld [vmem:[#allocation5 + $0x470] sm:$0xff] }
 0x508   : > { %6686 = vmatprep.mubr.msk.f32.mxu1 %vm2023_vm1, %v9581_v40  ;;  %2009 = vmatprep.mubr.f32.mxu0 %v1592_v33 }
 0x509   : > { %6696 = vmatpush3.msk.msra.mxu1 %vm2048_vm0, %v2290_v6 }
 0x50a   : > { %v1746_v41 = vpop.f32.mrb[34].mxu0  ;;  %6709 = vmatprep.subr.msk.mxu1 %vm2048_vm0, %v2432_v37 }
 0x50b   : > { %v1748_v32 = vpop.f32.mrb[35].mxu0  ;;  %2010 = vmatmul.mubr.f32.gmra.mrb[140].mxu0 %v1591_v38  ;;  %6687 = vmatmul.mubr.msk.f32.gmra.mrb[2].mxu1 %vm2023_vm1, %v9583_v44 }
 0x50c   : > { %6689 = vmatprep.mubr.msk.f32.mxu1 %vm2023_vm1, %v9585_v48  ;;  %2014 = vmatprep.mubr.f32.mxu0 %v1594_v39 }
 0x50e   : > { %v1751_v42 = vpop.f32.mrb[36].mxu0 }
 0x50f   : > { %v1753_v40 = vpop.f32.mrb[37].mxu0  ;;  %2015 = vmatmul.mubr.f32.gmra.mrb[142].mxu0 %v1593_v36  ;;  %6690 = vmatmul.mubr.msk.f32.gmra.mrb[4].mxu1 %vm2023_vm1, %v9587_v52 }
 0x510   : > { %6692 = vmatprep.mubr.msk.f32.mxu1 %vm2023_vm1, %v9589_v56 }
 0x512   : > { %v1756_v43 = vpop.f32.mrb[38].mxu0 }
 0x513   : > { %v1758_v45 = vpop.f32.mrb[39].mxu0  ;;  %6693 = vmatmul.mubr.msk.f32.gmra.mrb[6].mxu1 %vm2023_vm1, %v9591_v60 }
 0x514   : > { %6697 = vmatprep.mubr.msk.f32.mxu1 %vm2023_vm1, %v1741_v34  ;;  %v3142_v45 = vld [vmem:[#allocation7 + $0x20] sm:$0x7] }
 0x516   : > { %v1761_v44 = vpop.f32.mrb[40].mxu0 }
 0x517   : > { %v1763_v47 = vpop.f32.mrb[41].mxu0  ;;  %6698 = vmatmul.mubr.msk.f32.vlgmr.msra.gmra.mrb[0].mxu1 %vm2023_vm1, %v1746_v41 }
 0x518   : > { %6700 = vmatprep.mubr.msk.f32.mxu1 %vm2023_vm1, %v1751_v42  ;;  %6710 = vmatpush3.msk.msra.mxu1 %vm2048_vm0, %v2432_v37 }
 0x519   : > { %6723 = vmatprep.subr.msk.mxu1 %vm2048_vm0, %v2574_v46 }
 0x51a   : > { %v1766_v48 = vpop.f32.mrb[42].mxu0 }
 0x51b   : > { %v1768_v49 = vpop.f32.mrb[43].mxu0  ;;  %6701 = vmatmul.mubr.msk.f32.gmra.mrb[2].mxu1 %vm2023_vm1, %v1756_v43 }
 0x51c   : > { %6703 = vmatprep.mubr.msk.f32.mxu1 %vm2023_vm1, %v1761_v44 }
 0x51e   : > { %v1771_v50 = vpop.f32.mrb[44].mxu0 }
 0x51f   : > { %v1773_v51 = vpop.f32.mrb[45].mxu0  ;;  %6704 = vmatmul.mubr.msk.f32.gmra.mrb[4].mxu1 %vm2023_vm1, %v1766_v48 }
 0x520   : > { %6706 = vmatprep.mubr.msk.f32.mxu1 %vm2023_vm1, %v1771_v50 }
 0x522   : > { %v1776_v52 = vpop.f32.mrb[46].mxu0 }
 0x523   : > { %v1778_v53 = vpop.f32.mrb[47].mxu0  ;;  %6707 = vmatmul.mubr.msk.f32.gmra.mrb[6].mxu1 %vm2023_vm1, %v1776_v52 }
 0x526   : > { %v1781_v54 = vpop.f32.mrb[48].mxu0 }
 0x527   : > { %v1783_v55 = vpop.f32.mrb[49].mxu0  ;;  %6711 = vmatprep.mubr.msk.f32.mxu1 %vm2023_vm1, %v1781_v54 }
 0x52a   : > { %v1786_v56 = vpop.f32.mrb[50].mxu0 }
 0x52b   : > { %v1788_v58 = vpop.f32.mrb[51].mxu0  ;;  %6712 = vmatmul.mubr.msk.f32.vlgmr.msra.gmra.mrb[0].mxu1 %vm2023_vm1, %v1786_v56 }
 0x52c   : > { %6724 = vmatpush3.msk.msra.mxu1 %vm2048_vm0, %v2574_v46 }
 0x52d   : > { %6737 = vmatprep.subr.msk.mxu1 %vm2048_vm0, %v2716_v57 }
 0x52e   : > { %v1791_v59 = vpop.f32.mrb[52].mxu0 }
 0x52f   : > { %v1793_v60 = vpop.f32.mrb[53].mxu0  ;;  %6714 = vmatprep.mubr.msk.f32.mxu1 %vm2023_vm1, %v1791_v59 }
 0x532   : > { %v1796_v61 = vpop.f32.mrb[54].mxu0 }
 0x533   : > { %v1798_v63 = vpop.f32.mrb[55].mxu0  ;;  %6715 = vmatmul.mubr.msk.f32.gmra.mrb[2].mxu1 %vm2023_vm1, %v1796_v61 }
 0x536   : > { %v1801_v0 = vpop.f32.mrb[56].mxu0 }
 0x537   : > { %v1803_v1 = vpop.f32.mrb[57].mxu0  ;;  %6717 = vmatprep.mubr.msk.f32.mxu1 %vm2023_vm1, %v1801_v0 }
 0x53a   : > { %v1806_v2 = vpop.f32.mrb[58].mxu0 }
 0x53b   : > { %v1808_v3 = vpop.f32.mrb[59].mxu0  ;;  %6718 = vmatmul.mubr.msk.f32.gmra.mrb[4].mxu1 %vm2023_vm1, %v1806_v2 }
 0x53e   : > { %v1811_v4 = vpop.f32.mrb[60].mxu0 }
 0x53f   : > { %v1813_v5 = vpop.f32.mrb[61].mxu0  ;;  %6720 = vmatprep.mubr.msk.f32.mxu1 %vm2023_vm1, %v1811_v4 }
 0x542   : > { %v1816_v6 = vpop.f32.mrb[62].mxu0 }
 0x543   : > { %v1818_v7 = vpop.f32.mrb[63].mxu0  ;;  %6721 = vmatmul.mubr.msk.f32.gmra.mrb[6].mxu1 %vm2023_vm1, %v1816_v6 }
 0x546   : > { %v1821_v8 = vpop.f32.mrb[64].mxu0 }
 0x547   : > { %v1823_v9 = vpop.f32.mrb[65].mxu0  ;;  %6725 = vmatprep.mubr.msk.f32.mxu1 %vm2023_vm1, %v1821_v8 }
 0x54a   : > { %v1826_v10 = vpop.f32.mrb[66].mxu0 }
 0x54b   : > { %v1828_v12 = vpop.f32.mrb[67].mxu0  ;;  %6726 = vmatmul.mubr.msk.f32.vlgmr.msra.gmra.mrb[0].mxu1 %vm2023_vm1, %v1826_v10 }
 0x54c   : > { %6738 = vmatpush3.msk.msra.mxu1 %vm2048_vm0, %v2716_v57 }
 0x54d   : > { %6751 = vmatprep.subr.msk.mxu1 %vm2048_vm0, %v2858_v11 }
 0x54e   : > { %v1831_v13 = vpop.f32.mrb[68].mxu0 }
 0x54f   : > { %v1833_v14 = vpop.f32.mrb[69].mxu0  ;;  %6728 = vmatprep.mubr.msk.f32.mxu1 %vm2023_vm1, %v1831_v13 }
 0x552   : > { %v1836_v15 = vpop.f32.mrb[70].mxu0 }
 0x553   : > { %v1838_v16 = vpop.f32.mrb[71].mxu0  ;;  %6729 = vmatmul.mubr.msk.f32.gmra.mrb[2].mxu1 %vm2023_vm1, %v1836_v15 }
 0x556   : > { %v1841_v17 = vpop.f32.mrb[72].mxu0 }
 0x557   : > { %v1843_v62 = vpop.f32.mrb[73].mxu0  ;;  %6731 = vmatprep.mubr.msk.f32.mxu1 %vm2023_vm1, %v1841_v17 }
 0x55a   : > { %v1846_v18 = vpop.f32.mrb[74].mxu0 }
 0x55b   : > { %v1848_v19 = vpop.f32.mrb[75].mxu0  ;;  %6732 = vmatmul.mubr.msk.f32.gmra.mrb[4].mxu1 %vm2023_vm1, %v1846_v18 }
 0x55e   : > { %v1851_v20 = vpop.f32.mrb[76].mxu0 }
 0x55f   : > { %v1853_v21 = vpop.f32.mrb[77].mxu0  ;;  %6734 = vmatprep.mubr.msk.f32.mxu1 %vm2023_vm1, %v1851_v20 }
 0x562   : > { %v1856_v22 = vpop.f32.mrb[78].mxu0 }
 0x563   : > { %v1858_v23 = vpop.f32.mrb[79].mxu0  ;;  %6735 = vmatmul.mubr.msk.f32.gmra.mrb[6].mxu1 %vm2023_vm1, %v1856_v22 }
 0x566   : > { %v1861_v24 = vpop.f32.mrb[80].mxu0 }
 0x567   : > { %v1863_v25 = vpop.f32.mrb[81].mxu0  ;;  %6739 = vmatprep.mubr.msk.f32.mxu1 %vm2023_vm1, %v1861_v24 }
 0x56a   : > { %v1866_v26 = vpop.f32.mrb[82].mxu0 }
 0x56b   : > { %v1868_v28 = vpop.f32.mrb[83].mxu0  ;;  %6740 = vmatmul.mubr.msk.f32.vlgmr.msra.gmra.mrb[0].mxu1 %vm2023_vm1, %v1866_v26  ;;  %v3321_v26 = vld [vmem:[#allocation11] sm:$0xff] }
 0x56c   : > { %6752 = vmatpush3.msk.msra.mxu1 %vm2048_vm0, %v2858_v11 }
 0x56d   : > { %6765 = vmatprep.subr.msk.mxu1 %vm2048_vm0, %v3000_v27 }
 0x56e   : > { %v1871_v29 = vpop.f32.mrb[84].mxu0 }
 0x56f   : > { %v1873_v30 = vpop.f32.mrb[85].mxu0  ;;  %6742 = vmatprep.mubr.msk.f32.mxu1 %vm2023_vm1, %v1871_v29  ;;  %v6230_v29 = vld [vmem:[#allocation10] ss:$0 sm:$0xff] }
 0x572   : > { %v1876_v31 = vpop.f32.mrb[86].mxu0 }
 0x573   : > { %v1878_v33 = vpop.f32.mrb[87].mxu0  ;;  %6743 = vmatmul.mubr.msk.f32.gmra.mrb[2].mxu1 %vm2023_vm1, %v1876_v31 }
 0x576   : > { %v1881_v34 = vpop.f32.mrb[88].mxu0 }
 0x577   : > { %v1883_v35 = vpop.f32.mrb[89].mxu0  ;;  %6745 = vmatprep.mubr.msk.f32.mxu1 %vm2023_vm1, %v1881_v34 }
 0x57a   : > { %v1886_v37 = vpop.f32.mrb[90].mxu0 }
 0x57b   : > { %v1888_v38 = vpop.f32.mrb[91].mxu0  ;;  %6746 = vmatmul.mubr.msk.f32.gmra.mrb[4].mxu1 %vm2023_vm1, %v1886_v37 }
 0x57e   : > { %v1891_v39 = vpop.f32.mrb[92].mxu0 }
 0x57f   : > { %v1893_v41 = vpop.f32.mrb[93].mxu0  ;;  %6748 = vmatprep.mubr.msk.f32.mxu1 %vm2023_vm1, %v1891_v39 }
 0x582   : > { %v1896_v32 = vpop.f32.mrb[94].mxu0 }
 0x583   : > { %v1898_v36 = vpop.f32.mrb[95].mxu0  ;;  %6749 = vmatmul.mubr.msk.f32.gmra.mrb[6].mxu1 %vm2023_vm1, %v1896_v32 }
 0x586   : > { %v1901_v42 = vpop.f32.mrb[96].mxu0 }
 0x587   : > { %v1903_v40 = vpop.f32.mrb[97].mxu0  ;;  %6753 = vmatprep.mubr.msk.f32.mxu1 %vm2023_vm1, %v1901_v42 }
 0x58a   : > { %v1906_v43 = vpop.f32.mrb[98].mxu0 }
 0x58b   : > { %v1908_v44 = vpop.f32.mrb[99].mxu0  ;;  %6754 = vmatmul.mubr.msk.f32.vlgmr.msra.gmra.mrb[0].mxu1 %vm2023_vm1, %v1906_v43 }
 0x58c   : > { %6766 = vmatpush3.msk.msra.mxu1 %vm2048_vm0, %v3000_v27  ;;  %v6229_v27 = vld [vmem:[#allocation8] ss:$0 sm:$0xff] }
 0x58d   : > { %6779 = vmatprep.subr.msk.mxu1 %vm2048_vm0, %v3142_v45 }
 0x58e   : > { %v1911_v46 = vpop.f32.mrb[100].mxu0 }
 0x58f   : > { %v1913_v47 = vpop.f32.mrb[101].mxu0  ;;  %6756 = vmatprep.mubr.msk.f32.mxu1 %vm2023_vm1, %v1911_v46 }
 0x592   : > { %v1916_v48 = vpop.f32.mrb[102].mxu0 }
 0x593   : > { %v1918_v49 = vpop.f32.mrb[103].mxu0  ;;  %6757 = vmatmul.mubr.msk.f32.gmra.mrb[2].mxu1 %vm2023_vm1, %v1916_v48 }
 0x596   : > { %v1921_v50 = vpop.f32.mrb[104].mxu0 }
 0x597   : > { %v1923_v51 = vpop.f32.mrb[105].mxu0  ;;  %6759 = vmatprep.mubr.msk.f32.mxu1 %vm2023_vm1, %v1921_v50 }
 0x59a   : > { %v1926_v52 = vpop.f32.mrb[106].mxu0 }
 0x59b   : > { %v1928_v53 = vpop.f32.mrb[107].mxu0  ;;  %6760 = vmatmul.mubr.msk.f32.gmra.mrb[4].mxu1 %vm2023_vm1, %v1926_v52 }
 0x59e   : > { %v1931_v54 = vpop.f32.mrb[108].mxu0 }
 0x59f   : > { %v1933_v55 = vpop.f32.mrb[109].mxu0  ;;  %6762 = vmatprep.mubr.msk.f32.mxu1 %vm2023_vm1, %v1931_v54 }
 0x5a2   : > { %v1936_v56 = vpop.f32.mrb[110].mxu0 }
 0x5a3   : > { %v1938_v57 = vpop.f32.mrb[111].mxu0  ;;  %6763 = vmatmul.mubr.msk.f32.gmra.mrb[6].mxu1 %vm2023_vm1, %v1936_v56 }
 0x5a6   : > { %v1941_v58 = vpop.f32.mrb[112].mxu0 }
 0x5a7   : > { %v1943_v59 = vpop.f32.mrb[113].mxu0  ;;  %6767 = vmatprep.mubr.msk.f32.mxu1 %vm2023_vm1, %v1941_v58 }
 0x5aa   : > { %v1946_v60 = vpop.f32.mrb[114].mxu0 }
 0x5ab   : > { %v1948_v61 = vpop.f32.mrb[115].mxu0  ;;  %6768 = vmatmul.mubr.msk.f32.vlgmr.msra.gmra.mrb[0].mxu1 %vm2023_vm1, %v1946_v60 }
 0x5ac   : > { %6780 = vmatpush3.msk.msra.mxu1 %vm2048_vm0, %v3142_v45 }
 0x5ae   : > { %v1951_v63 = vpop.f32.mrb[116].mxu0 }
 0x5af   : > { %v1953_v0 = vpop.f32.mrb[117].mxu0  ;;  %6770 = vmatprep.mubr.msk.f32.mxu1 %vm2023_vm1, %v1951_v63 }
 0x5b2   : > { %v1956_v1 = vpop.f32.mrb[118].mxu0 }
 0x5b3   : > { %v1958_v2 = vpop.f32.mrb[119].mxu0  ;;  %6771 = vmatmul.mubr.msk.f32.gmra.mrb[2].mxu1 %vm2023_vm1, %v1956_v1 }
 0x5b4   : > { %v3322_v2 = vld [vmem:[#allocation11 + $0x8] sm:$0xff] }
 0x5b6   : > { %v1961_v3 = vpop.f32.mrb[120].mxu0 }
 0x5b7   : > { %v1963_v4 = vpop.f32.mrb[121].mxu0  ;;  %6773 = vmatprep.mubr.msk.f32.mxu1 %vm2023_vm1, %v1961_v3  ;;  %v3323_v3 = vld [vmem:[#allocation11 + $0x10] sm:$0xff] }
 0x5b8   : > { %v3324_v4 = vld [vmem:[#allocation11 + $0x18] sm:$0xff] }
 0x5ba   : > { %v1966_v5 = vpop.f32.mrb[122].mxu0 }
 0x5bb   : > { %v1968_v6 = vpop.f32.mrb[123].mxu0  ;;  %6774 = vmatmul.mubr.msk.f32.gmra.mrb[4].mxu1 %vm2023_vm1, %v1966_v5  ;;  %v3325_v5 = vld [vmem:[#allocation11 + $0x20] sm:$0xff] }
 0x5bc   : > { %v3326_v6 = vld [vmem:[#allocation11 + $0x28] sm:$0xff] }
 0x5be   : > { %v1971_v7 = vpop.f32.mrb[124].mxu0 }
 0x5bf   : > { %v1973_v8 = vpop.f32.mrb[125].mxu0  ;;  %6776 = vmatprep.mubr.msk.f32.mxu1 %vm2023_vm1, %v1971_v7  ;;  %v3327_v7 = vld [vmem:[#allocation11 + $0x30] sm:$0xff] }
 0x5c0   : > { %v3328_v8 = vld [vmem:[#allocation11 + $0x38] sm:$0xff] }
 0x5c2   : > { %v1976_v9 = vpop.f32.mrb[126].mxu0 }
 0x5c3   : > { %v1978_v10 = vpop.f32.mrb[127].mxu0  ;;  %6777 = vmatmul.mubr.msk.f32.gmra.mrb[6].mxu1 %vm2023_vm1, %v1976_v9  ;;  %v3329_v9 = vld [vmem:[#allocation11 + $0x40] sm:$0xff] }
 0x5c4   : > { %v3330_v10 = vld [vmem:[#allocation11 + $0x48] sm:$0xff] }
 0x5c6   : > { %v1981_v11 = vpop.f32.mrb[128].mxu0 }
 0x5c7   : > { %v1983_v12 = vpop.f32.mrb[129].mxu0  ;;  %6781 = vmatprep.mubr.msk.f32.mxu1 %vm2023_vm1, %v1981_v11  ;;  %v3331_v11 = vld [vmem:[#allocation11 + $0x50] sm:$0xff] }
 0x5c8   : > { %v3332_v12 = vld [vmem:[#allocation11 + $0x58] sm:$0xff] }
 0x5ca   : > { %v1986_v13 = vpop.f32.mrb[130].mxu0 }
 0x5cb   : > { %v1988_v14 = vpop.f32.mrb[131].mxu0  ;;  %6782 = vmatmul.mubr.msk.f32.vlgmr.msra.gmra.mrb[0].mxu1 %vm2023_vm1, %v1986_v13  ;;  %v3333_v13 = vld [vmem:[#allocation11 + $0x60] sm:$0xff] }
 0x5cc   : > { %v3334_v14 = vld [vmem:[#allocation11 + $0x68] sm:$0xff] }
 0x5ce   : > { %v1991_v15 = vpop.f32.mrb[132].mxu0 }
 0x5cf   : > { %v1993_v16 = vpop.f32.mrb[133].mxu0  ;;  %6784 = vmatprep.mubr.msk.f32.mxu1 %vm2023_vm1, %v1991_v15  ;;  %v3335_v15 = vld [vmem:[#allocation11 + $0x70] sm:$0xff] }
 0x5d0   : > { %v3336_v16 = vld [vmem:[#allocation11 + $0x78] sm:$0xff] }
 0x5d2   : > { %v1996_v17 = vpop.f32.mrb[134].mxu0 }
 0x5d3   : > { %v1998_v62 = vpop.f32.mrb[135].mxu0  ;;  %6785 = vmatmul.mubr.msk.f32.gmra.mrb[2].mxu1 %vm2023_vm1, %v1996_v17  ;;  %v3337_v17 = vld [vmem:[#allocation11 + $0x80] sm:$0xff] }
 0x5d4   : > { %v3338_v62 = vld [vmem:[#allocation11 + $0x88] sm:$0xff] }
 0x5d6   : > { %v2001_v18 = vpop.f32.mrb[136].mxu0 }
 0x5d7   : > { %v2003_v19 = vpop.f32.mrb[137].mxu0  ;;  %6787 = vmatprep.mubr.msk.f32.mxu1 %vm2023_vm1, %v2001_v18  ;;  %v3339_v18 = vld [vmem:[#allocation11 + $0x90] sm:$0xff] }
 0x5d8   : > { %v3340_v19 = vld [vmem:[#allocation11 + $0x98] sm:$0xff] }
 0x5da   : > { %v2006_v20 = vpop.f32.mrb[138].mxu0 }
 0x5db   : > { %v2008_v21 = vpop.f32.mrb[139].mxu0  ;;  %6788 = vmatmul.mubr.msk.f32.gmra.mrb[4].mxu1 %vm2023_vm1, %v2006_v20  ;;  %v3341_v20 = vld [vmem:[#allocation11 + $0xa0] sm:$0xff] }
 0x5dc   : > { %v3342_v21 = vld [vmem:[#allocation11 + $0xa8] sm:$0xff] }
 0x5de   : > { %v2011_v22 = vpop.f32.mrb[140].mxu0 }
 0x5df   : > { %v2013_v23 = vpop.f32.mrb[141].mxu0  ;;  %6790 = vmatprep.mubr.msk.f32.mxu1 %vm2023_vm1, %v2011_v22  ;;  %v3343_v22 = vld [vmem:[#allocation11 + $0xb0] sm:$0xff] }
 0x5e0   : > { %v3344_v23 = vld [vmem:[#allocation11 + $0xb8] sm:$0xff] }
 0x5e2   : > { %v2016_v24 = vpop.f32.mrb[142].mxu0 }
 0x5e3   : > { %v2018_v25 = vpop.f32.mrb[143].mxu0  ;;  %6791 = vmatmul.mubr.msk.f32.gmra.mrb[6].mxu1 %vm2023_vm1, %v2016_v24  ;;  %v3345_v24 = vld [vmem:[#allocation11 + $0xc0] sm:$0xff] }
 0x5e4   : > { %6809 = vmatprep.mubr.msk.f32.mxu1 %vm3393_vm2, %v3321_v26  ;;  %v3346_v25 = vld [vmem:[#allocation11 + $0xc8] sm:$0xff]  ;;  %v3347_v26 = vld [vmem:[#allocation11 + $0xd0] sm:$0xff] }
 0x69e   : > { %v6783_v28 = vpop.f32.mrb[0].mxu1 }
 0x69f   : > { %v3291_v30 = vmul.f32 %v6783_v28, %v6229_v27  ;;  %v3236_v31 = vpop.f32.mrb[1].mxu1  ;;  %v3349_v28 = vld [vmem:[#allocation11 + $0xe0] sm:$0xff] }
 0x6a0   : > { %v3290_v33 = vmul.f32 %v6229_v27, %v3236_v31  ;;  %v3352_v31 = vld [vmem:[#allocation11 + $0xf8] sm:$0xff] }
 0x6a1   : > { %v9690_v34 = vadd.f32 %v6230_v29, %v3291_v30  ;;  %v3351_v30 = vld [vmem:[#allocation11 + $0xf0] sm:$0xff] }
 0x6a2   : > { %v9692_v35 = vadd.f32 %v6230_v29, %v3290_v33  ;;  %v3353_v33 = vld [vmem:[#allocation11 + $0x100] sm:$0xff] }
 0x6a3   : > { %v3314_v37 = vmax.f32 %v9690_v34, 0.0 }
 0x6a4   : > { %v3313_v38 = vmax.f32 %v9692_v35, 0.0 }
 0x6a6   : > { %v6786_v39 = vpop.f32.mrb[2].mxu1  ;;  %v7126_v41 = vpack.c.bf16 %v3314_v37, %v3313_v38 }
 0x6a7   : > { %v3293_v32 = vmul.f32 %v6786_v39, %v6229_v27  ;;  %v3246_v36 = vpop.f32.mrb[3].mxu1  ;;  %v3354_v39 = vld [vmem:[#allocation11 + $0x108] sm:$0xff] }
 0x6a8   : > { %v3292_v42 = vmul.f32 %v6229_v27, %v3246_v36  ;;  %7127 = vmatprep.subr.bf16.mxu1 %v7126_v41  ;;  %v3357_v36 = vld [vmem:[#allocation11 + $0x120] sm:$0xff] }
 0x6a9   : > { %v9700_v40 = vadd.f32 %v6230_v29, %v3293_v32  ;;  %7129 = vmatpush3.bf16.msra.mxu1 %v7126_v41  ;;  %v3355_v41 = vld [vmem:[#allocation11 + $0x110] sm:$0xff]  ;;  %v3356_v32 = vld [vmem:[#allocation11 + $0x118] sm:$0xff] }
 0x6aa   : > { %v9702_v43 = vadd.f32 %v6230_v29, %v3292_v42  ;;  %v3358_v42 = vld [vmem:[#allocation11 + $0x128] sm:$0xff] }
 0x6ab   : > { %v3316_v45 = vmax.f32 %v9700_v40, 0.0 }
 0x6ac   : > { %v3315_v44 = vmax.f32 %v9702_v43, 0.0 }
 0x6ae   : > { %v6789_v46 = vpop.f32.mrb[4].mxu1  ;;  %v7130_v47 = vpack.c.bf16 %v3316_v45, %v3315_v44 }
 0x6af   : > { %v3295_v48 = vmul.f32 %v6789_v46, %v6229_v27  ;;  %v3256_v49 = vpop.f32.mrb[5].mxu1  ;;  %v3359_v46 = vld [vmem:[#allocation11 + $0x130] sm:$0xff] }
 0x6b0   : > { %v3294_v50 = vmul.f32 %v6229_v27, %v3256_v49  ;;  %7131 = vmatprep.subr.bf16.mxu1 %v7130_v47  ;;  %v3362_v49 = vld [vmem:[#allocation11 + $0x148] sm:$0xff] }
 0x6b1   : > { %v9710_v51 = vadd.f32 %v6230_v29, %v3295_v48  ;;  %7133 = vmatpush3.bf16.msra.mxu1 %v7130_v47  ;;  %v3360_v47 = vld [vmem:[#allocation11 + $0x138] sm:$0xff]  ;;  %v3361_v48 = vld [vmem:[#allocation11 + $0x140] sm:$0xff] }
 0x6b2   : > { %v9712_v52 = vadd.f32 %v6230_v29, %v3294_v50  ;;  %v3363_v50 = vld [vmem:[#allocation11 + $0x150] sm:$0xff] }
 0x6b3   : > { %v3318_v53 = vmax.f32 %v9710_v51, 0.0  ;;  %v4981_v51 = vld [vmem:[#allocation32] sm:$0xff] }
 0x6b4   : > { %v3317_v54 = vmax.f32 %v9712_v52, 0.0  ;;  %v4627_v52 = vld [vmem:[#allocation26] sm:$0xff] }
 0x6b6   : > { %v6792_v55 = vpop.f32.mrb[6].mxu1  ;;  %v7134_v56 = vpack.c.bf16 %v3318_v53, %v3317_v54 }
 0x6b7   : > { %v3297_v57 = vmul.f32 %v6792_v55, %v6229_v27  ;;  %v3266_v58 = vpop.f32.mrb[7].mxu1  ;;  %v3364_v55 = vld [vmem:[#allocation11 + $0x158] sm:$0xff] }
 0x6b8   : > { %v3296_v59 = vmul.f32 %v6229_v27, %v3266_v58  ;;  %7135 = vmatprep.subr.bf16.mxu1 %v7134_v56  ;;  %v3348_v27 = vld [vmem:[#allocation11 + $0xd8] sm:$0xff]  ;;  %v3367_v58 = vld [vmem:[#allocation11 + $0x170] sm:$0xff] }
 0x6b9   : > { %v9720_v60 = vadd.f32 %v6230_v29, %v3297_v57  ;;  %7137 = vmatpush3.bf16.msra.mxu1 %v7134_v56  ;;  %v3365_v56 = vld [vmem:[#allocation11 + $0x160] sm:$0xff]  ;;  %v3366_v57 = vld [vmem:[#allocation11 + $0x168] sm:$0xff] }
 0x6ba   : > { %v9722_v61 = vadd.f32 %v6230_v29, %v3296_v59  ;;  %v3350_v29 = vld [vmem:[#allocation11 + $0xe8] sm:$0xff]  ;;  %v3368_v59 = vld [vmem:[#allocation11 + $0x178] sm:$0xff] }
 0x6bb   : > { %v3320_v63 = vmax.f32 %v9720_v60, 0.0  ;;  %v6332_v60 = vld [vmem:[#allocation23] ss:$0 sm:$0xff] }
 0x6bc   : > { %v3319_v0 = vmax.f32 %v9722_v61, 0.0 }
 0x6be   : > { %v7138_v1 = vpack.c.bf16 %v3320_v63, %v3319_v0 }
 0x6c0   : > { %7139 = vmatprep.subr.bf16.mxu1 %v7138_v1 }
 0x6c1   : > { %7141 = vmatpush3.bf16.msra.mxu1 %v7138_v1  ;;  %v3369_v1 = vld [vmem:[#allocation11 + $0x180] sm:$0xff] }
 0x6c4   : > { %6810 = vmatmul.mubr.msk.f32.vlgmr.msra.gmra.mrb[8].mxu1 %vm3393_vm2, %v3322_v2  ;;  %v3370_v2 = vld [vmem:[#allocation11 + $0x188] sm:$0xff] }
 0x6c5   : > { %6812 = vmatprep.mubr.msk.f32.mxu1 %vm3393_vm2, %v3323_v3  ;;  %v3371_v3 = vld [vmem:[#allocation11 + $0x190] sm:$0xff] }
 0x6c8   : > { %6813 = vmatmul.mubr.msk.f32.gmra.mrb[10].mxu1 %vm3393_vm2, %v3324_v4  ;;  %v3372_v4 = vld [vmem:[#allocation11 + $0x198] sm:$0xff] }
 0x6c9   : > { %6815 = vmatprep.mubr.msk.f32.mxu1 %vm3393_vm2, %v3325_v5  ;;  %v3373_v5 = vld [vmem:[#allocation11 + $0x1a0] sm:$0xff] }
 0x6cc   : > { %6816 = vmatmul.mubr.msk.f32.gmra.mrb[12].mxu1 %vm3393_vm2, %v3326_v6  ;;  %v3374_v6 = vld [vmem:[#allocation11 + $0x1a8] sm:$0xff] }
 0x6cd   : > { %6818 = vmatprep.mubr.msk.f32.mxu1 %vm3393_vm2, %v3327_v7  ;;  %v3375_v7 = vld [vmem:[#allocation11 + $0x1b0] sm:$0xff] }
 0x6d0   : > { %6819 = vmatmul.mubr.msk.f32.gmra.mrb[14].mxu1 %vm3393_vm2, %v3328_v8  ;;  %v3376_v8 = vld [vmem:[#allocation11 + $0x1b8] sm:$0xff] }
 0x6d1   : > { %6821 = vmatprep.mubr.msk.f32.mxu1 %vm3393_vm2, %v3329_v9  ;;  %v3377_v9 = vld [vmem:[#allocation11 + $0x1c0] sm:$0xff] }
 0x6d4   : > { %6822 = vmatmul.mubr.msk.f32.gmra.mrb[16].mxu1 %vm3393_vm2, %v3330_v10  ;;  %v3378_v10 = vld [vmem:[#allocation11 + $0x1c8] sm:$0xff] }
 0x6d5   : > { %6824 = vmatprep.mubr.msk.f32.mxu1 %vm3393_vm2, %v3331_v11  ;;  %v3379_v11 = vld [vmem:[#allocation11 + $0x1d0] sm:$0xff] }
 0x6d8   : > { %6825 = vmatmul.mubr.msk.f32.gmra.mrb[18].mxu1 %vm3393_vm2, %v3332_v12  ;;  %v3380_v12 = vld [vmem:[#allocation11 + $0x1d8] sm:$0xff] }
 0x6d9   : > { %6827 = vmatprep.mubr.msk.f32.mxu1 %vm3393_vm2, %v3333_v13  ;;  %v3381_v13 = vld [vmem:[#allocation11 + $0x1e0] sm:$0xff] }
 0x6dc   : > { %6828 = vmatmul.mubr.msk.f32.gmra.mrb[20].mxu1 %vm3393_vm2, %v3334_v14  ;;  %v4288_v14 = vld [vmem:[#allocation17] sm:$0xff] }
 0x6dd   : > { %6830 = vmatprep.mubr.msk.f32.mxu1 %vm3393_vm2, %v3335_v15  ;;  %v4289_v15 = vld [vmem:[#allocation17 + $0x8] sm:$0xff] }
 0x6e0   : > { %6831 = vmatmul.mubr.msk.f32.gmra.mrb[22].mxu1 %vm3393_vm2, %v3336_v16  ;;  %v7142_v16 = vpack.c.bf16 %v4289_v15, %v4288_v14 }
 0x6e1   : > { %6833 = vmatprep.mubr.msk.f32.mxu1 %vm3393_vm2, %v3337_v17  ;;  %v3382_v17 = vld [vmem:[#allocation11 + $0x1e8] sm:$0xff] }
 0x6e2   : > { %7143 = vmatprep.subr.bf16.mxu1 %v7142_v16 }
 0x6e3   : > { %7145 = vmatpush3.bf16.msra.mxu1 %v7142_v16 }
 0x6e4   : > { %6834 = vmatmul.mubr.msk.f32.gmra.mrb[24].mxu1 %vm3393_vm2, %v3338_v62  ;;  %v3383_v62 = vld [vmem:[#allocation11 + $0x1f0] sm:$0xff] }
 0x6e5   : > { %6836 = vmatprep.mubr.msk.f32.mxu1 %vm3393_vm2, %v3339_v18  ;;  %v3384_v18 = vld [vmem:[#allocation11 + $0x1f8] sm:$0xff] }
 0x6e8   : > { %6837 = vmatmul.mubr.msk.f32.gmra.mrb[26].mxu1 %vm3393_vm2, %v3340_v19  ;;  %v3385_v19 = vld [vmem:[#allocation11 + $0x200] sm:$0xff] }
 0x6e9   : > { %6839 = vmatprep.mubr.msk.f32.mxu1 %vm3393_vm2, %v3341_v20  ;;  %v3386_v20 = vld [vmem:[#allocation11 + $0x208] sm:$0xff] }
 0x6ec   : > { %6840 = vmatmul.mubr.msk.f32.gmra.mrb[28].mxu1 %vm3393_vm2, %v3342_v21  ;;  %v3387_v21 = vld [vmem:[#allocation11 + $0x210] sm:$0xff] }
 0x6ed   : > { %6842 = vmatprep.mubr.msk.f32.mxu1 %vm3393_vm2, %v3343_v22  ;;  %v3388_v22 = vld [vmem:[#allocation11 + $0x218] sm:$0xff] }
 0x6f0   : > { %6843 = vmatmul.mubr.msk.f32.gmra.mrb[30].mxu1 %vm3393_vm2, %v3344_v23  ;;  %v3389_v23 = vld [vmem:[#allocation11 + $0x220] sm:$0xff] }
 0x6f1   : > { %6845 = vmatprep.mubr.msk.f32.mxu1 %vm3393_vm2, %v3345_v24  ;;  %v3390_v24 = vld [vmem:[#allocation11 + $0x228] sm:$0xff] }
 0x6f4   : > { %6846 = vmatmul.mubr.msk.f32.gmra.mrb[32].mxu1 %vm3393_vm2, %v3346_v25  ;;  %v3391_v25 = vld [vmem:[#allocation11 + $0x230] sm:$0xff] }
 0x6f5   : > { %6848 = vmatprep.mubr.msk.f32.mxu1 %vm3393_vm2, %v3347_v26  ;;  %v3392_v26 = vld [vmem:[#allocation11 + $0x238] sm:$0xff] }
 0x6f8   : > { %6849 = vmatmul.mubr.msk.f32.gmra.mrb[34].mxu1 %vm3393_vm2, %v3348_v27 }
 0x6f9   : > { %6851 = vmatprep.mubr.msk.f32.mxu1 %vm3393_vm2, %v3349_v28 }
 0x6fc   : > { %6852 = vmatmul.mubr.msk.f32.gmra.mrb[36].mxu1 %vm3393_vm2, %v3350_v29 }
 0x6fd   : > { %6854 = vmatprep.mubr.msk.f32.mxu1 %vm3393_vm2, %v3351_v30 }
 0x700   : > { %6855 = vmatmul.mubr.msk.f32.gmra.mrb[38].mxu1 %vm3393_vm2, %v3352_v31 }
 0x701   : > { %6857 = vmatprep.mubr.msk.f32.mxu1 %vm3393_vm2, %v3353_v33 }
 0x704   : > { %6858 = vmatmul.mubr.msk.f32.gmra.mrb[40].mxu1 %vm3393_vm2, %v3354_v39 }
 0x705   : > { %6860 = vmatprep.mubr.msk.f32.mxu1 %vm3393_vm2, %v3355_v41 }
 0x708   : > { %6861 = vmatmul.mubr.msk.f32.gmra.mrb[42].mxu1 %vm3393_vm2, %v3356_v32  ;;  %v6303_v32 = vld [vmem:[#allocation13] ss:$0 sm:$0xff] }
 0x709   : > { %6863 = vmatprep.mubr.msk.f32.mxu1 %vm3393_vm2, %v3357_v36  ;;  %v6304_v36 = vld [vmem:[#allocation13 + $0x1] ss:$0 sm:$0xff] }
 0x70c   : > { %6864 = vmatmul.mubr.msk.f32.gmra.mrb[44].mxu1 %vm3393_vm2, %v3358_v42 }
 0x70d   : > { %6866 = vmatprep.mubr.msk.f32.mxu1 %vm3393_vm2, %v3359_v46 }
 0x710   : > { %6867 = vmatmul.mubr.msk.f32.gmra.mrb[46].mxu1 %vm3393_vm2, %v3360_v47 }
 0x711   : > { %6869 = vmatprep.mubr.msk.f32.mxu1 %vm3393_vm2, %v3361_v48 }
 0x714   : > { %6870 = vmatmul.mubr.msk.f32.gmra.mrb[48].mxu1 %vm3393_vm2, %v3362_v49 }
 0x715   : > { %6872 = vmatprep.mubr.msk.f32.mxu1 %vm3393_vm2, %v3363_v50 }
 0x718   : > { %6873 = vmatmul.mubr.msk.f32.gmra.mrb[50].mxu1 %vm3393_vm2, %v3364_v55 }
 0x719   : > { %6875 = vmatprep.mubr.msk.f32.mxu1 %vm3393_vm2, %v3365_v56 }
 0x71c   : > { %6876 = vmatmul.mubr.msk.f32.gmra.mrb[52].mxu1 %vm3393_vm2, %v3366_v57 }
 0x71d   : > { %6878 = vmatprep.mubr.msk.f32.mxu1 %vm3393_vm2, %v3367_v58 }
 0x720   : > { %6879 = vmatmul.mubr.msk.f32.gmra.mrb[54].mxu1 %vm3393_vm2, %v3368_v59 }
 0x721   : > { %6881 = vmatprep.mubr.msk.f32.mxu1 %vm3393_vm2, %v3369_v1 }
 0x724   : > { %6882 = vmatmul.mubr.msk.f32.gmra.mrb[56].mxu1 %vm3393_vm2, %v3370_v2 }
 0x725   : > { %6884 = vmatprep.mubr.msk.f32.mxu1 %vm3393_vm2, %v3371_v3 }
 0x728   : > { %6885 = vmatmul.mubr.msk.f32.gmra.mrb[58].mxu1 %vm3393_vm2, %v3372_v4 }
 0x729   : > { %6887 = vmatprep.mubr.msk.f32.mxu1 %vm3393_vm2, %v3373_v5 }
 0x72c   : > { %6888 = vmatmul.mubr.msk.f32.gmra.mrb[60].mxu1 %vm3393_vm2, %v3374_v6 }
 0x72d   : > { %6890 = vmatprep.mubr.msk.f32.mxu1 %vm3393_vm2, %v3375_v7 }
 0x730   : > { %6891 = vmatmul.mubr.msk.f32.gmra.mrb[62].mxu1 %vm3393_vm2, %v3376_v8 }
 0x731   : > { %6893 = vmatprep.mubr.msk.f32.mxu1 %vm3393_vm2, %v3377_v9 }
 0x734   : > { %6894 = vmatmul.mubr.msk.f32.gmra.mrb[64].mxu1 %vm3393_vm2, %v3378_v10 }
 0x735   : > { %6896 = vmatprep.mubr.msk.f32.mxu1 %vm3393_vm2, %v3379_v11 }
 0x738   : > { %6897 = vmatmul.mubr.msk.f32.gmra.mrb[66].mxu1 %vm3393_vm2, %v3380_v12 }
 0x739   : > { %6899 = vmatprep.mubr.msk.f32.mxu1 %vm3393_vm2, %v3381_v13 }
 0x73c   : > { %6900 = vmatmul.mubr.msk.f32.gmra.mrb[68].mxu1 %vm3393_vm2, %v3382_v17 }
 0x73d   : > { %6902 = vmatprep.mubr.msk.f32.mxu1 %vm3393_vm2, %v3383_v62 }
 0x740   : > { %6903 = vmatmul.mubr.msk.f32.gmra.mrb[70].mxu1 %vm3393_vm2, %v3384_v18 }
 0x741   : > { %6905 = vmatprep.mubr.msk.f32.mxu1 %vm3393_vm2, %v3385_v19  ;;  %v6305_v19 = vld [vmem:[#allocation13 + $0x2] ss:$0 sm:$0xff] }
 0x744   : > { %6906 = vmatmul.mubr.msk.f32.gmra.mrb[72].mxu1 %vm3393_vm2, %v3386_v20 }
 0x745   : > { %6908 = vmatprep.mubr.msk.f32.mxu1 %vm3393_vm2, %v3387_v21 }
 0x748   : > { %6909 = vmatmul.mubr.msk.f32.gmra.mrb[74].mxu1 %vm3393_vm2, %v3388_v22 }
 0x749   : > { %6911 = vmatprep.mubr.msk.f32.mxu1 %vm3393_vm2, %v3389_v23 }
 0x74c   : > { %6912 = vmatmul.mubr.msk.f32.gmra.mrb[76].mxu1 %vm3393_vm2, %v3390_v24 }
 0x74d   : > { %6914 = vmatprep.mubr.msk.f32.mxu1 %vm3393_vm2, %v3391_v25 }
 0x750   : > { %6915 = vmatmul.mubr.msk.f32.gmra.mrb[78].mxu1 %vm3393_vm2, %v3392_v26 }
 0x797   : > { %v6811_v27 = vpop.f32.mrb[8].mxu1 }
 0x798   : > { %v3676_v28 = vpop.f32.mrb[9].mxu1  ;;  %v4043_v46 = vmul.f32 %v6811_v27, %v6303_v32 }
 0x799   : > { %v4042_v49 = vmul.f32 %v6303_v32, %v3676_v28 }
 0x79b   : > { %v6814_v29 = vpop.f32.mrb[10].mxu1 }
 0x79c   : > { %v3686_v30 = vpop.f32.mrb[11].mxu1  ;;  %v4045_v58 = vmul.f32 %v6814_v29, %v6303_v32 }
 0x79d   : > { %v4044_v2 = vmul.f32 %v6303_v32, %v3686_v30 }
 0x79f   : > { %v6817_v31 = vpop.f32.mrb[12].mxu1 }
 0x7a0   : > { %v3696_v33 = vpop.f32.mrb[13].mxu1  ;;  %v4047_v7 = vmul.f32 %v6817_v31, %v6303_v32 }
 0x7a1   : > { %v4046_v10 = vmul.f32 %v6303_v32, %v3696_v33 }
 0x7a3   : > { %v6820_v39 = vpop.f32.mrb[14].mxu1 }
 0x7a4   : > { %v3706_v41 = vpop.f32.mrb[15].mxu1  ;;  %v4049_v15 = vmul.f32 %v6820_v39, %v6303_v32 }
 0x7a5   : > { %v4048_v62 = vmul.f32 %v6303_v32, %v3706_v41 }
 0x7a7   : > { %v6823_v42 = vpop.f32.mrb[16].mxu1 }
 0x7a8   : > { %v4067_v47 = vmul.f32 %v6823_v42, %v6304_v36  ;;  %v3716_v48 = vpop.f32.mrb[17].mxu1 }
 0x7a9   : > { %v4066_v50 = vmul.f32 %v6304_v36, %v3716_v48 }
 0x7aa   : > { %v4075_v55 = vadd.f32 %v4067_v47, %v4043_v46 }
 0x7ab   : > { %v4074_v56 = vadd.f32 %v4066_v50, %v4042_v49  ;;  %v6826_v57 = vpop.f32.mrb[18].mxu1 }
 0x7ac   : > { %v4069_v59 = vmul.f32 %v6826_v57, %v6304_v36  ;;  %v3726_v1 = vpop.f32.mrb[19].mxu1 }
 0x7ad   : > { %v4068_v3 = vmul.f32 %v6304_v36, %v3726_v1 }
 0x7ae   : > { %v4077_v4 = vadd.f32 %v4069_v59, %v4045_v58  ;;  %v6306_v58 = vld [vmem:[#allocation13 + $0x3] ss:$0 sm:$0xff] }
 0x7af   : > { %v4076_v5 = vadd.f32 %v4068_v3, %v4044_v2  ;;  %v6829_v6 = vpop.f32.mrb[20].mxu1 }
 0x7b0   : > { %v4071_v8 = vmul.f32 %v6829_v6, %v6304_v36  ;;  %v3736_v9 = vpop.f32.mrb[21].mxu1 }
 0x7b1   : > { %v4070_v11 = vmul.f32 %v6304_v36, %v3736_v9 }
 0x7b2   : > { %v4079_v12 = vadd.f32 %v4071_v8, %v4047_v7 }
 0x7b3   : > { %v4078_v13 = vadd.f32 %v4070_v11, %v4046_v10  ;;  %v6832_v14 = vpop.f32.mrb[22].mxu1 }
 0x7b4   : > { %v4073_v16 = vmul.f32 %v6832_v14, %v6304_v36  ;;  %v3746_v17 = vpop.f32.mrb[23].mxu1 }
 0x7b5   : > { %v4072_v18 = vmul.f32 %v6304_v36, %v3746_v17 }
 0x7b6   : > { %v4081_v20 = vadd.f32 %v4073_v16, %v4049_v15 }
 0x7b7   : > { %v4080_v21 = vadd.f32 %v4072_v18, %v4048_v62  ;;  %v6835_v22 = vpop.f32.mrb[24].mxu1 }
 0x7b8   : > { %v4091_v23 = vmul.f32 %v6835_v22, %v6305_v19  ;;  %v3756_v24 = vpop.f32.mrb[25].mxu1 }
 0x7b9   : > { %v4090_v25 = vmul.f32 %v6305_v19, %v3756_v24 }
 0x7ba   : > { %v4099_v26 = vadd.f32 %v4091_v23, %v4075_v55 }
 0x7bb   : > { %v4098_v27 = vadd.f32 %v4090_v25, %v4074_v56  ;;  %v6838_v28 = vpop.f32.mrb[26].mxu1 }
 0x7bc   : > { %v4093_v29 = vmul.f32 %v6838_v28, %v6305_v19  ;;  %v3766_v30 = vpop.f32.mrb[27].mxu1 }
 0x7bd   : > { %v4092_v31 = vmul.f32 %v6305_v19, %v3766_v30 }
 0x7be   : > { %v4101_v33 = vadd.f32 %v4093_v29, %v4077_v4 }
 0x7bf   : > { %v4100_v42 = vadd.f32 %v4092_v31, %v4076_v5  ;;  %v6841_v39 = vpop.f32.mrb[28].mxu1 }
 0x7c0   : > { %v4095_v46 = vmul.f32 %v6841_v39, %v6305_v19  ;;  %v3776_v47 = vpop.f32.mrb[29].mxu1 }
 0x7c1   : > { %v4094_v41 = vmul.f32 %v6305_v19, %v3776_v47 }
 0x7c2   : > { %v4103_v32 = vadd.f32 %v4095_v46, %v4079_v12 }
 0x7c3   : > { %v4102_v36 = vadd.f32 %v4094_v41, %v4078_v13  ;;  %v6844_v48 = vpop.f32.mrb[30].mxu1 }
 0x7c4   : > { %v4097_v49 = vmul.f32 %v6844_v48, %v6305_v19  ;;  %v3786_v50 = vpop.f32.mrb[31].mxu1 }
 0x7c5   : > { %v4096_v57 = vmul.f32 %v6305_v19, %v3786_v50 }
 0x7c6   : > { %v4105_v59 = vadd.f32 %v4097_v49, %v4081_v20 }
 0x7c7   : > { %v4104_v55 = vadd.f32 %v4096_v57, %v4080_v21  ;;  %v6847_v56 = vpop.f32.mrb[32].mxu1  ;;  %v6307_v21 = vld [vmem:[#allocation13 + $0x4] ss:$0 sm:$0xff] }
 0x7c8   : > { %v4115_v1 = vmul.f32 %v6847_v56, %v6306_v58  ;;  %v3796_v2 = vpop.f32.mrb[33].mxu1 }
 0x7c9   : > { %v4114_v3 = vmul.f32 %v6306_v58, %v3796_v2 }
 0x7ca   : > { %v4123_v6 = vadd.f32 %v4115_v1, %v4099_v26 }
 0x7cb   : > { %v4122_v4 = vadd.f32 %v4114_v3, %v4098_v27  ;;  %v6850_v5 = vpop.f32.mrb[34].mxu1 }
 0x7cc   : > { %v4117_v7 = vmul.f32 %v6850_v5, %v6306_v58  ;;  %v3806_v8 = vpop.f32.mrb[35].mxu1 }
 0x7cd   : > { %v4116_v9 = vmul.f32 %v6306_v58, %v3806_v8 }
 0x7ce   : > { %v4125_v10 = vadd.f32 %v4117_v7, %v4101_v33 }
 0x7cf   : > { %v4124_v11 = vadd.f32 %v4116_v9, %v4100_v42  ;;  %v6853_v12 = vpop.f32.mrb[36].mxu1 }
 0x7d0   : > { %v4119_v13 = vmul.f32 %v6853_v12, %v6306_v58  ;;  %v3816_v14 = vpop.f32.mrb[37].mxu1 }
 0x7d1   : > { %v4118_v15 = vmul.f32 %v6306_v58, %v3816_v14 }
 0x7d2   : > { %v4127_v16 = vadd.f32 %v4119_v13, %v4103_v32 }
 0x7d3   : > { %v4126_v17 = vadd.f32 %v4118_v15, %v4102_v36  ;;  %v6856_v62 = vpop.f32.mrb[38].mxu1 }
 0x7d4   : > { %v4121_v18 = vmul.f32 %v6856_v62, %v6306_v58  ;;  %v3826_v19 = vpop.f32.mrb[39].mxu1 }
 0x7d5   : > { %v4120_v20 = vmul.f32 %v6306_v58, %v3826_v19 }
 0x7d6   : > { %v4129_v22 = vadd.f32 %v4121_v18, %v4105_v59 }
 0x7d7   : > { %v4128_v23 = vadd.f32 %v4120_v20, %v4104_v55  ;;  %v6859_v24 = vpop.f32.mrb[40].mxu1  ;;  %v6308_v55 = vld [vmem:[#allocation13 + $0x5] ss:$0 sm:$0xff] }
 0x7d8   : > { %v4139_v25 = vmul.f32 %v6859_v24, %v6307_v21  ;;  %v3836_v26 = vpop.f32.mrb[41].mxu1 }
 0x7d9   : > { %v4138_v27 = vmul.f32 %v6307_v21, %v3836_v26 }
 0x7da   : > { %v4147_v28 = vadd.f32 %v4139_v25, %v4123_v6 }
 0x7db   : > { %v4146_v29 = vadd.f32 %v4138_v27, %v4122_v4  ;;  %v6862_v30 = vpop.f32.mrb[42].mxu1 }
 0x7dc   : > { %v4141_v31 = vmul.f32 %v6862_v30, %v6307_v21  ;;  %v3846_v33 = vpop.f32.mrb[43].mxu1 }
 0x7dd   : > { %v4140_v42 = vmul.f32 %v6307_v21, %v3846_v33 }
 0x7de   : > { %v4149_v39 = vadd.f32 %v4141_v31, %v4125_v10 }
 0x7df   : > { %v4148_v46 = vadd.f32 %v4140_v42, %v4124_v11  ;;  %v6865_v47 = vpop.f32.mrb[44].mxu1 }
 0x7e0   : > { %v4143_v41 = vmul.f32 %v6865_v47, %v6307_v21  ;;  %v3856_v32 = vpop.f32.mrb[45].mxu1 }
 0x7e1   : > { %v4142_v36 = vmul.f32 %v6307_v21, %v3856_v32 }
 0x7e2   : > { %v4151_v48 = vadd.f32 %v4143_v41, %v4127_v16 }
 0x7e3   : > { %v4150_v49 = vadd.f32 %v4142_v36, %v4126_v17  ;;  %v6868_v50 = vpop.f32.mrb[46].mxu1 }
 0x7e4   : > { %v4145_v57 = vmul.f32 %v6868_v50, %v6307_v21  ;;  %v3866_v58 = vpop.f32.mrb[47].mxu1 }
 0x7e5   : > { %v4144_v59 = vmul.f32 %v6307_v21, %v3866_v58 }
 0x7e6   : > { %v4153_v56 = vadd.f32 %v4145_v57, %v4129_v22 }
 0x7e7   : > { %v4152_v1 = vadd.f32 %v4144_v59, %v4128_v23  ;;  %v6871_v2 = vpop.f32.mrb[48].mxu1  ;;  %v6309_v23 = vld [vmem:[#allocation13 + $0x6] ss:$0 sm:$0xff] }
 0x7e8   : > { %v4163_v3 = vmul.f32 %v6871_v2, %v6308_v55  ;;  %v3876_v6 = vpop.f32.mrb[49].mxu1 }
 0x7e9   : > { %v4162_v4 = vmul.f32 %v6308_v55, %v3876_v6 }
 0x7ea   : > { %v4171_v5 = vadd.f32 %v4163_v3, %v4147_v28 }
 0x7eb   : > { %v4170_v7 = vadd.f32 %v4162_v4, %v4146_v29  ;;  %v6874_v8 = vpop.f32.mrb[50].mxu1 }
 0x7ec   : > { %v4165_v9 = vmul.f32 %v6874_v8, %v6308_v55  ;;  %v3886_v10 = vpop.f32.mrb[51].mxu1 }
 0x7ed   : > { %v4164_v11 = vmul.f32 %v6308_v55, %v3886_v10 }
 0x7ee   : > { %v4173_v12 = vadd.f32 %v4165_v9, %v4149_v39 }
 0x7ef   : > { %v4172_v13 = vadd.f32 %v4164_v11, %v4148_v46  ;;  %v6877_v14 = vpop.f32.mrb[52].mxu1 }
 0x7f0   : > { %v4167_v15 = vmul.f32 %v6877_v14, %v6308_v55  ;;  %v3896_v16 = vpop.f32.mrb[53].mxu1 }
 0x7f1   : > { %v4166_v17 = vmul.f32 %v6308_v55, %v3896_v16 }
 0x7f2   : > { %v4175_v62 = vadd.f32 %v4167_v15, %v4151_v48 }
 0x7f3   : > { %v4174_v18 = vadd.f32 %v4166_v17, %v4150_v49  ;;  %v6880_v19 = vpop.f32.mrb[54].mxu1 }
 0x7f4   : > { %v4169_v20 = vmul.f32 %v6880_v19, %v6308_v55  ;;  %v3906_v21 = vpop.f32.mrb[55].mxu1 }
 0x7f5   : > { %v4168_v22 = vmul.f32 %v6308_v55, %v3906_v21 }
 0x7f6   : > { %v4177_v24 = vadd.f32 %v4169_v20, %v4153_v56 }
 0x7f7   : > { %v4176_v25 = vadd.f32 %v4168_v22, %v4152_v1  ;;  %v6883_v26 = vpop.f32.mrb[56].mxu1  ;;  %v6310_v1 = vld [vmem:[#allocation13 + $0x7] ss:$0 sm:$0xff] }
 0x7f8   : > { %v4187_v27 = vmul.f32 %v6883_v26, %v6309_v23  ;;  %v3916_v28 = vpop.f32.mrb[57].mxu1 }
 0x7f9   : > { %v4186_v29 = vmul.f32 %v6309_v23, %v3916_v28 }
 0x7fa   : > { %v4195_v30 = vadd.f32 %v4187_v27, %v4171_v5 }
 0x7fb   : > { %v4194_v31 = vadd.f32 %v4186_v29, %v4170_v7  ;;  %v6886_v33 = vpop.f32.mrb[58].mxu1 }
 0x7fc   : > { %v4189_v42 = vmul.f32 %v6886_v33, %v6309_v23  ;;  %v3926_v39 = vpop.f32.mrb[59].mxu1 }
 0x7fd   : > { %v4188_v46 = vmul.f32 %v6309_v23, %v3926_v39  ;;  %v6313_v39 = vld [vmem:[#allocation16] ss:$0 sm:$0xff] }
 0x7fe   : > { %v4197_v47 = vadd.f32 %v4189_v42, %v4173_v12 }
 0x7ff   : > { %v4196_v41 = vadd.f32 %v4188_v46, %v4172_v13  ;;  %v6889_v32 = vpop.f32.mrb[60].mxu1 }
 0x800   : > { %v4191_v36 = vmul.f32 %v6889_v32, %v6309_v23  ;;  %v3936_v48 = vpop.f32.mrb[61].mxu1 }
 0x801   : > { %v4190_v49 = vmul.f32 %v6309_v23, %v3936_v48 }
 0x802   : > { %v4199_v50 = vadd.f32 %v4191_v36, %v4175_v62 }
 0x803   : > { %v4198_v57 = vadd.f32 %v4190_v49, %v4174_v18  ;;  %v6892_v58 = vpop.f32.mrb[62].mxu1 }
 0x804   : > { %v4193_v59 = vmul.f32 %v6892_v58, %v6309_v23  ;;  %v3946_v55 = vpop.f32.mrb[63].mxu1 }
 0x805   : > { %v4192_v56 = vmul.f32 %v6309_v23, %v3946_v55 }
 0x806   : > { %v4201_v2 = vadd.f32 %v4193_v59, %v4177_v24 }
 0x807   : > { %v4200_v3 = vadd.f32 %v4192_v56, %v4176_v25  ;;  %v6895_v6 = vpop.f32.mrb[64].mxu1  ;;  %v6311_v25 = vld [vmem:[#allocation13 + $0x8] ss:$0 sm:$0xff] }
 0x808   : > { %v4211_v4 = vmul.f32 %v6895_v6, %v6310_v1  ;;  %v3956_v5 = vpop.f32.mrb[65].mxu1 }
 0x809   : > { %v4210_v7 = vmul.f32 %v6310_v1, %v3956_v5 }
 0x80a   : > { %v4219_v8 = vadd.f32 %v4211_v4, %v4195_v30 }
 0x80b   : > { %v4218_v9 = vadd.f32 %v4210_v7, %v4194_v31  ;;  %v6898_v10 = vpop.f32.mrb[66].mxu1  ;;  %v6312_v31 = vld [vmem:[#allocation14] ss:$0 sm:$0xff] }
 0x80c   : > { %v4213_v11 = vmul.f32 %v6898_v10, %v6310_v1  ;;  %v3966_v12 = vpop.f32.mrb[67].mxu1 }
 0x80d   : > { %v4212_v13 = vmul.f32 %v6310_v1, %v3966_v12 }
 0x80e   : > { %v4221_v14 = vadd.f32 %v4213_v11, %v4197_v47 }
 0x80f   : > { %v4220_v15 = vadd.f32 %v4212_v13, %v4196_v41  ;;  %v6901_v16 = vpop.f32.mrb[68].mxu1 }
 0x810   : > { %v4215_v17 = vmul.f32 %v6901_v16, %v6310_v1  ;;  %v3976_v62 = vpop.f32.mrb[69].mxu1 }
 0x811   : > { %v4214_v18 = vmul.f32 %v6310_v1, %v3976_v62 }
 0x812   : > { %v4223_v19 = vadd.f32 %v4215_v17, %v4199_v50 }
 0x813   : > { %v4222_v20 = vadd.f32 %v4214_v18, %v4198_v57  ;;  %v6904_v21 = vpop.f32.mrb[70].mxu1 }
 0x814   : > { %v4217_v22 = vmul.f32 %v6904_v21, %v6310_v1  ;;  %v3986_v23 = vpop.f32.mrb[71].mxu1 }
 0x815   : > { %v4216_v24 = vmul.f32 %v6310_v1, %v3986_v23 }
 0x816   : > { %v4225_v26 = vadd.f32 %v4217_v22, %v4201_v2 }
 0x817   : > { %v4224_v27 = vadd.f32 %v4216_v24, %v4200_v3  ;;  %v6907_v28 = vpop.f32.mrb[72].mxu1 }
 0x818   : > { %v4235_v29 = vmul.f32 %v6907_v28, %v6311_v25  ;;  %v3996_v30 = vpop.f32.mrb[73].mxu1 }
 0x819   : > { %v4234_v33 = vmul.f32 %v6311_v25, %v3996_v30 }
 0x81a   : > { %v4243_v42 = vadd.f32 %v4235_v29, %v4219_v8 }
 0x81b   : > { %v4242_v46 = vadd.f32 %v4234_v33, %v4218_v9  ;;  %v6910_v47 = vpop.f32.mrb[74].mxu1 }
 0x81c   : > { %v4258_v41 = vmul.f32 %v6312_v31, %v4243_v42  ;;  %v4237_v32 = vmul.f32 %v6910_v47, %v6311_v25  ;;  %v4006_v36 = vpop.f32.mrb[75].mxu1  ;;  %v6323_v47 = vld [vmem:[#allocation20] ss:$0 sm:$0xff] }
 0x81d   : > { %v4257_v48 = vmul.f32 %v6312_v31, %v4242_v46  ;;  %v4236_v49 = vmul.f32 %v6311_v25, %v4006_v36  ;;  %v6322_v46 = vld [vmem:[#allocation19] ss:$0 sm:$0xff] }
 0x81e   : > { %v4273_v50 = vadd.f32 %v6313_v39, %v4258_v41  ;;  %v4245_v57 = vadd.f32 %v4237_v32, %v4221_v14 }
 0x81f   : > { %v4272_v58 = vadd.f32 %v6313_v39, %v4257_v48  ;;  %v4244_v59 = vadd.f32 %v4236_v49, %v4220_v15  ;;  %v6913_v55 = vpop.f32.mrb[76].mxu1 }
 0x820   : > { %v4260_v56 = vmul.f32 %v6312_v31, %v4245_v57  ;;  %v4239_v1 = vmul.f32 %v6913_v55, %v6311_v25  ;;  %v4016_v2 = vpop.f32.mrb[77].mxu1  ;;  %v4281_v5 = vmax.f32 %v4273_v50, 0.0 }
 0x821   : > { %v4280_v3 = vmax.f32 %v4272_v58, 0.0  ;;  %v4259_v6 = vmul.f32 %v6312_v31, %v4244_v59  ;;  %v4238_v4 = vmul.f32 %v6311_v25, %v4016_v2 }
 0x822   : > { %v4275_v7 = vadd.f32 %v6313_v39, %v4260_v56  ;;  %v4247_v8 = vadd.f32 %v4239_v1, %v4223_v19 }
 0x823   : > { %v4274_v9 = vadd.f32 %v6313_v39, %v4259_v6  ;;  %v4246_v10 = vadd.f32 %v4238_v4, %v4222_v20  ;;  %v6916_v11 = vpop.f32.mrb[78].mxu1  ;;  %6921 = vmatprep.mubr.msk.f32.mxu1 %vm4290_vm3, %v4280_v3 }
 0x824   : > { %v4262_v12 = vmul.f32 %v6312_v31, %v4247_v8  ;;  %v4241_v13 = vmul.f32 %v6916_v11, %v6311_v25  ;;  %v4026_v14 = vpop.f32.mrb[79].mxu1  ;;  %6922 = vmatmul.mubr.msk.f32.vlgmr.msra.gmra.mrb[80].mxu1 %vm4290_vm3, %v4281_v5  ;;  %v4283_v62 = vmax.f32 %v4275_v7, 0.0 }
 0x825   : > { %v4282_v15 = vmax.f32 %v4274_v9, 0.0  ;;  %v4261_v16 = vmul.f32 %v6312_v31, %v4246_v10  ;;  %v4240_v17 = vmul.f32 %v6311_v25, %v4026_v14  ;;  %v4985_v14 = vld [vmem:[#allocation32 + $0x20] sm:$0xff] }
 0x826   : > { %v4277_v18 = vadd.f32 %v6313_v39, %v4262_v12  ;;  %v4249_v21 = vadd.f32 %v4241_v13, %v4225_v26  ;;  %v4458_v26 = vld [vmem:[#allocation22] sm:$0xff]  ;;  %v4984_v13 = vld [vmem:[#allocation32 + $0x18] sm:$0xff] }
 0x827   : > { %v4276_v22 = vadd.f32 %v6313_v39, %v4261_v16  ;;  %v4248_v23 = vadd.f32 %v4240_v17, %v4224_v27  ;;  %6924 = vmatprep.mubr.msk.f32.mxu1 %vm4290_vm3, %v4282_v15  ;;  %v4459_v27 = vld [vmem:[#allocation22 + $0x8] sm:$0xff]  ;;  %v6333_v16 = vld [vmem:[#allocation25] ss:$0 sm:$0xff] }
 0x828   : > { %v4264_v19 = vmul.f32 %v6312_v31, %v4249_v21  ;;  %6925 = vmatmul.mubr.msk.f32.gmra.mrb[82].mxu1 %vm4290_vm3, %v4283_v62  ;;  %v4285_v28 = vmax.f32 %v4277_v18, 0.0  ;;  %v7146_v42 = vpack.c.bf16 %v4459_v27, %v4458_v26  ;;  %v4983_v12 = vld [vmem:[#allocation32 + $0x10] sm:$0xff] }
 0x829   : > { %v4284_v20 = vmax.f32 %v4276_v22, 0.0  ;;  %v4263_v24 = vmul.f32 %v6312_v31, %v4248_v23  ;;  %v7170_v61 = vpack.c.bf16 %v4984_v13, %v4983_v12 }
 0x82a   : > { %v4279_v29 = vadd.f32 %v6313_v39, %v4264_v19  ;;  %7147 = vmatprep.subr.bf16.mxu1 %v7146_v42 }
 0x82b   : > { %v4278_v30 = vadd.f32 %v6313_v39, %v4263_v24  ;;  %6927 = vmatprep.mubr.msk.f32.mxu1 %vm4290_vm3, %v4284_v20  ;;  %7149 = vmatpush3.bf16.msra.mxu1 %v7146_v42 }
 0x82c   : > { %6928 = vmatmul.mubr.msk.f32.gmra.mrb[84].mxu1 %vm4290_vm3, %v4285_v28  ;;  %v4287_v33 = vmax.f32 %v4279_v29, 0.0 }
 0x82d   : > { %v4286_v25 = vmax.f32 %v4278_v30, 0.0 }
 0x82f   : > { %6930 = vmatprep.mubr.msk.f32.mxu1 %vm4290_vm3, %v4286_v25 }
 0x830   : > { %6931 = vmatmul.mubr.msk.f32.gmra.mrb[86].mxu1 %vm4290_vm3, %v4287_v33 }
 0x8f7   : > { %v6923_v31 = vpop.f32.mrb[80].mxu1 }
 0x8f8   : > { %v4428_v41 = vmul.f32 %v6923_v31, %v6322_v46  ;;  %v4381_v39 = vpop.f32.mrb[81].mxu1 }
 0x8f9   : > { %v4427_v32 = vmul.f32 %v6322_v46, %v4381_v39 }
 0x8fa   : > { %v4443_v36 = vadd.f32 %v6323_v47, %v4428_v41 }
 0x8fb   : > { %v4442_v48 = vadd.f32 %v6323_v47, %v4427_v32  ;;  %v6926_v49 = vpop.f32.mrb[82].mxu1 }
 0x8fc   : > { %v4430_v50 = vmul.f32 %v6926_v49, %v6322_v46  ;;  %v4391_v57 = vpop.f32.mrb[83].mxu1  ;;  %v4451_v55 = vadd.f32 %v4443_v36, %v3314_v37 }
 0x8fd   : > { %v4450_v58 = vadd.f32 %v4442_v48, %v3313_v38  ;;  %v4429_v59 = vmul.f32 %v6322_v46, %v4391_v57 }
 0x8fe   : > { %v4445_v56 = vadd.f32 %v6323_v47, %v4430_v50 }
 0x8ff   : > { %v4444_v1 = vadd.f32 %v6323_v47, %v4429_v59  ;;  %v6929_v2 = vpop.f32.mrb[84].mxu1  ;;  %6937 = vmatprep.mubr.msk.f32.mxu1 %vm4290_vm3, %v4450_v58 }
 0x900   : > { %v4432_v3 = vmul.f32 %v6929_v2, %v6322_v46  ;;  %v4401_v6 = vpop.f32.mrb[85].mxu1  ;;  %6938 = vmatmul.mubr.msk.f32.vlgmr.msra.gmra.mrb[88].mxu1 %vm4290_vm3, %v4451_v55  ;;  %v4453_v35 = vadd.f32 %v4445_v56, %v3316_v45 }
 0x901   : > { %v4452_v4 = vadd.f32 %v4444_v1, %v3315_v44  ;;  %v4431_v5 = vmul.f32 %v6322_v46, %v4401_v6  ;;  %v4628_v6 = vld [vmem:[#allocation26 + $0x8] sm:$0xff] }
 0x902   : > { %v4447_v38 = vadd.f32 %v6323_v47, %v4432_v3 }
 0x903   : > { %v4446_v7 = vadd.f32 %v6323_v47, %v4431_v5  ;;  %v6932_v34 = vpop.f32.mrb[86].mxu1  ;;  %6940 = vmatprep.mubr.msk.f32.mxu1 %vm4290_vm3, %v4452_v4  ;;  %v4629_v4 = vld [vmem:[#allocation26 + $0x10] sm:$0xff]  ;;  %v4630_v5 = vld [vmem:[#allocation26 + $0x18] sm:$0xff] }
 0x904   : > { %v4434_v37 = vmul.f32 %v6932_v34, %v6322_v46  ;;  %v4411_v8 = vpop.f32.mrb[87].mxu1  ;;  %6941 = vmatmul.mubr.msk.f32.gmra.mrb[90].mxu1 %vm4290_vm3, %v4453_v35  ;;  %v4455_v43 = vadd.f32 %v4447_v38, %v3318_v53  ;;  %v4982_v53 = vld [vmem:[#allocation32 + $0x8] sm:$0xff]  ;;  %v4634_v34 = vld [vmem:[#allocation26 + $0x38] sm:$0xff] }
 0x905   : > { %v4454_v9 = vadd.f32 %v4446_v7, %v3317_v54  ;;  %v4433_v10 = vmul.f32 %v6322_v46, %v4411_v8  ;;  %v7166_v54 = vpack.c.bf16 %v4982_v53, %v4981_v51  ;;  %v4631_v35 = vld [vmem:[#allocation26 + $0x20] sm:$0xff]  ;;  %v4632_v38 = vld [vmem:[#allocation26 + $0x28] sm:$0xff]  ;;  %v4633_v7 = vld [vmem:[#allocation26 + $0x30] sm:$0xff] }
 0x906   : > { %v4449_v44 = vadd.f32 %v6323_v47, %v4434_v37  ;;  %v4635_v37 = vld [vmem:[#allocation26 + $0x40] sm:$0xff]  ;;  %v4636_v8 = vld [vmem:[#allocation26 + $0x48] sm:$0xff]  ;;  %v4988_v53 = vld [vmem:[#allocation32 + $0x38] sm:$0xff] }
 0x907   : > { %v4448_v11 = vadd.f32 %v6323_v47, %v4433_v10  ;;  %6943 = vmatprep.mubr.msk.f32.mxu1 %vm4290_vm3, %v4454_v9  ;;  %7167 = vmatprep.subr.bf16.mxu0 %v7166_v54  ;;  %v4637_v9 = vld [vmem:[#allocation26 + $0x50] sm:$0xff]  ;;  %v4638_v10 = vld [vmem:[#allocation26 + $0x58] sm:$0xff] }
 0x908   : > { %6944 = vmatmul.mubr.msk.f32.gmra.mrb[92].mxu1 %vm4290_vm3, %v4455_v43  ;;  %v4457_v45 = vadd.f32 %v4449_v44, %v3320_v63  ;;  %7169 = vmatpush3.bf16.msra.mxu0 %v7166_v54  ;;  %v4639_v43 = vld [vmem:[#allocation26 + $0x60] sm:$0xff]  ;;  %v4640_v44 = vld [vmem:[#allocation26 + $0x68] sm:$0xff] }
 0x909   : > { %v4456_v40 = vadd.f32 %v4448_v11, %v3319_v0  ;;  %v4986_v0 = vld [vmem:[#allocation32 + $0x28] sm:$0xff]  ;;  %7171 = vmatprep.subr.bf16.mxu0 %v7170_v61  ;;  %v4641_v11 = vld [vmem:[#allocation26 + $0x70] sm:$0xff] }
 0x90a   : > { %v7174_v15 = vpack.c.bf16 %v4986_v0, %v4985_v14  ;;  %v4987_v51 = vld [vmem:[#allocation32 + $0x30] sm:$0xff] }
 0x90b   : > { %6946 = vmatprep.mubr.msk.f32.mxu1 %vm4290_vm3, %v4456_v40  ;;  %v4642_v40 = vld [vmem:[#allocation26 + $0x78] sm:$0xff]  ;;  %v7178_v54 = vpack.c.bf16 %v4988_v53, %v4987_v51  ;;  %v6352_v14 = vld [vmem:[#allocation28] ss:$0 sm:$0xff] }
 0x90c   : > { %6947 = vmatmul.mubr.msk.f32.gmra.mrb[94].mxu1 %vm4290_vm3, %v4457_v45  ;;  %7173 = vmatpush3.bf16.msra.mxu0 %v7170_v61  ;;  %v4643_v45 = vld [vmem:[#allocation26 + $0x80] sm:$0xff]  ;;  %v6353_v61 = vld [vmem:[#allocation28 + $0x1] ss:$0 sm:$0xff]  ;;  %v6362_v51 = vld [vmem:[#allocation31] ss:$0 sm:$0xff] }
 0x90d   : > { %6965 = vmatprep.mubr.msk.f32.mxu1 %vm3393_vm2, %v4627_v52  ;;  %7175 = vmatprep.subr.bf16.mxu0 %v7174_v15  ;;  %v4644_v52 = vld [vmem:[#allocation26 + $0x88] sm:$0xff] }
 0x910   : > { %7177 = vmatpush3.bf16.msra.mxu0 %v7174_v15 }
 0x911   : > { %7179 = vmatprep.subr.bf16.mxu0 %v7178_v54 }
 0x914   : > { %7181 = vmatpush3.bf16.msra.mxu0 %v7178_v54 }
 0x9d3   : > { %v6939_v63 = vpop.f32.mrb[88].mxu1 }
 0x9d4   : > { %v4597_v17 = vmul.f32 %v6939_v63, %v6332_v60  ;;  %v4550_v62 = vpop.f32.mrb[89].mxu1 }
 0x9d5   : > { %v4596_v18 = vmul.f32 %v6332_v60, %v4550_v62  ;;  %v6354_v62 = vld [vmem:[#allocation28 + $0x2] ss:$0 sm:$0xff] }
 0x9d6   : > { %v4612_v21 = vadd.f32 %v6333_v16, %v4597_v17 }
 0x9d7   : > { %v4611_v22 = vadd.f32 %v6333_v16, %v4596_v18  ;;  %v6942_v23 = vpop.f32.mrb[90].mxu1 }
 0x9d8   : > { %v4620_v19 = vmax.f32 %v4612_v21, 0.0  ;;  %v4599_v20 = vmul.f32 %v6942_v23, %v6332_v60  ;;  %v4560_v24 = vpop.f32.mrb[91].mxu1 }
 0x9d9   : > { %v4619_v28 = vmax.f32 %v4611_v22, 0.0  ;;  %v4598_v29 = vmul.f32 %v6332_v60, %v4560_v24  ;;  %v6355_v24 = vld [vmem:[#allocation28 + $0x3] ss:$0 sm:$0xff] }
 0x9da   : > { %v4614_v30 = vadd.f32 %v6333_v16, %v4599_v20 }
 0x9db   : > { %v4613_v25 = vadd.f32 %v6333_v16, %v4598_v29  ;;  %v6945_v33 = vpop.f32.mrb[92].mxu1  ;;  %v7150_v26 = vpack.c.bf16 %v4620_v19, %v4619_v28 }
 0x9dc   : > { %v4622_v27 = vmax.f32 %v4614_v30, 0.0  ;;  %v4601_v42 = vmul.f32 %v6945_v33, %v6332_v60  ;;  %v4570_v46 = vpop.f32.mrb[93].mxu1 }
 0x9dd   : > { %v4621_v31 = vmax.f32 %v4613_v25, 0.0  ;;  %v4600_v47 = vmul.f32 %v6332_v60, %v4570_v46  ;;  %7151 = vmatprep.subr.bf16.mxu1 %v7150_v26 }
 0x9de   : > { %v4616_v41 = vadd.f32 %v6333_v16, %v4601_v42  ;;  %7153 = vmatpush3.bf16.msra.mxu1 %v7150_v26 }
 0x9df   : > { %v4615_v39 = vadd.f32 %v6333_v16, %v4600_v47  ;;  %v6948_v32 = vpop.f32.mrb[94].mxu1  ;;  %v7154_v36 = vpack.c.bf16 %v4622_v27, %v4621_v31  ;;  %v6356_v27 = vld [vmem:[#allocation28 + $0x4] ss:$0 sm:$0xff] }
 0x9e0   : > { %v4624_v48 = vmax.f32 %v4616_v41, 0.0  ;;  %v4603_v49 = vmul.f32 %v6948_v32, %v6332_v60  ;;  %v4580_v50 = vpop.f32.mrb[95].mxu1  ;;  %v6357_v32 = vld [vmem:[#allocation28 + $0x5] ss:$0 sm:$0xff] }
 0x9e1   : > { %v4623_v57 = vmax.f32 %v4615_v39, 0.0  ;;  %v4602_v58 = vmul.f32 %v6332_v60, %v4580_v50  ;;  %7155 = vmatprep.subr.bf16.mxu1 %v7154_v36 }
 0x9e2   : > { %v4618_v59 = vadd.f32 %v6333_v16, %v4603_v49  ;;  %7157 = vmatpush3.bf16.msra.mxu1 %v7154_v36 }
 0x9e3   : > { %v4617_v55 = vadd.f32 %v6333_v16, %v4602_v58  ;;  %v7158_v56 = vpack.c.bf16 %v4624_v48, %v4623_v57 }
 0x9e4   : > { %v4626_v1 = vmax.f32 %v4618_v59, 0.0  ;;  %v6358_v59 = vld [vmem:[#allocation28 + $0x6] ss:$0 sm:$0xff] }
 0x9e5   : > { %v4625_v2 = vmax.f32 %v4617_v55, 0.0  ;;  %7159 = vmatprep.subr.bf16.mxu1 %v7158_v56 }
 0x9e6   : > { %7161 = vmatpush3.bf16.msra.mxu1 %v7158_v56 }
 0x9e7   : > { %v7162_v3 = vpack.c.bf16 %v4626_v1, %v4625_v2 }
 0x9e9   : > { %7163 = vmatprep.subr.bf16.mxu1 %v7162_v3 }
 0x9ea   : > { %7165 = vmatpush3.bf16.msra.mxu1 %v7162_v3 }
 0x9ed   : > { %6966 = vmatmul.mubr.msk.f32.vlgmr.msra.gmra.mrb[96].mxu1 %vm3393_vm2, %v4628_v6 }
 0x9ee   : > { %6968 = vmatprep.mubr.msk.f32.mxu1 %vm3393_vm2, %v4629_v4  ;;  %v6359_v4 = vld [vmem:[#allocation28 + $0x7] ss:$0 sm:$0xff] }
 0x9f1   : > { %6969 = vmatmul.mubr.msk.f32.gmra.mrb[98].mxu1 %vm3393_vm2, %v4630_v5 }
 0x9f2   : > { %6971 = vmatprep.mubr.msk.f32.mxu1 %vm3393_vm2, %v4631_v35 }
 0x9f5   : > { %6972 = vmatmul.mubr.msk.f32.gmra.mrb[100].mxu1 %vm3393_vm2, %v4632_v38 }
 0x9f6   : > { %6974 = vmatprep.mubr.msk.f32.mxu1 %vm3393_vm2, %v4633_v7 }
 0x9f9   : > { %6975 = vmatmul.mubr.msk.f32.gmra.mrb[102].mxu1 %vm3393_vm2, %v4634_v34 }
 0x9fa   : > { %6977 = vmatprep.mubr.msk.f32.mxu1 %vm3393_vm2, %v4635_v37 }
 0x9fd   : > { %6978 = vmatmul.mubr.msk.f32.gmra.mrb[104].mxu1 %vm3393_vm2, %v4636_v8  ;;  %v6360_v8 = vld [vmem:[#allocation28 + $0x8] ss:$0 sm:$0xff] }
 0x9fe   : > { %6980 = vmatprep.mubr.msk.f32.mxu1 %vm3393_vm2, %v4637_v9 }
 0xa01   : > { %6981 = vmatmul.mubr.msk.f32.gmra.mrb[106].mxu1 %vm3393_vm2, %v4638_v10 }
 0xa02   : > { %6983 = vmatprep.mubr.msk.f32.mxu1 %vm3393_vm2, %v4639_v43 }
 0xa05   : > { %6984 = vmatmul.mubr.msk.f32.gmra.mrb[108].mxu1 %vm3393_vm2, %v4640_v44 }
 0xa06   : > { %6986 = vmatprep.mubr.msk.f32.mxu1 %vm3393_vm2, %v4641_v11 }
 0xa09   : > { %6987 = vmatmul.mubr.msk.f32.gmra.mrb[110].mxu1 %vm3393_vm2, %v4642_v40  ;;  %v6361_v40 = vld [vmem:[#allocation29] ss:$0 sm:$0xff] }
 0xa0a   : > { %6989 = vmatprep.mubr.msk.f32.mxu1 %vm3393_vm2, %v4643_v45 }
 0xa0d   : > { %6990 = vmatmul.mubr.msk.f32.gmra.mrb[112].mxu1 %vm3393_vm2, %v4644_v52 }
 0xac0   : > { %v6967_v12 = vpop.f32.mrb[96].mxu1 }
 0xac1   : > { %v4765_v13 = vpop.f32.mrb[97].mxu1  ;;  %v4862_v15 = vmul.f32 %v6967_v12, %v6352_v14 }
 0xac2   : > { %v4861_v16 = vmul.f32 %v6352_v14, %v4765_v13 }
 0xac4   : > { %v6970_v0 = vpop.f32.mrb[98].mxu1 }
 0xac5   : > { %v4874_v60 = vmul.f32 %v6970_v0, %v6353_v61  ;;  %v4775_v63 = vpop.f32.mrb[99].mxu1 }
 0xac6   : > { %v4873_v17 = vmul.f32 %v6353_v61, %v4775_v63 }
 0xac7   : > { %v4876_v18 = vadd.f32 %v4874_v60, %v4862_v15  ;;  %v5088_v15 = vld [vmem:[#allocation37] sm:$0xff]  ;;  %v5089_v60 = vld [vmem:[#allocation37 + $0x8] sm:$0xff] }
 0xac8   : > { %v4875_v21 = vadd.f32 %v4873_v17, %v4861_v16  ;;  %v6973_v22 = vpop.f32.mrb[100].mxu1  ;;  %v7182_v63 = vpack.c.bf16 %v5089_v60, %v5088_v15  ;;  %v5090_v16 = vld [vmem:[#allocation37 + $0x10] sm:$0xff]  ;;  %v6365_v17 = vld [vmem:[#allocation34] ss:$0 sm:$0xff] }
 0xac9   : > { %v4886_v23 = vmul.f32 %v6973_v22, %v6354_v62  ;;  %v4785_v19 = vpop.f32.mrb[101].mxu1 }
 0xaca   : > { %v4885_v20 = vmul.f32 %v6354_v62, %v4785_v19  ;;  %7183 = vmatprep.subr.bf16.mxu0 %v7182_v63 }
 0xacb   : > { %v4888_v28 = vadd.f32 %v4886_v23, %v4876_v18 }
 0xacc   : > { %v4887_v29 = vadd.f32 %v4885_v20, %v4875_v21  ;;  %v6976_v30 = vpop.f32.mrb[102].mxu1  ;;  %v6366_v21 = vld [vmem:[#allocation35] ss:$0 sm:$0xff] }
 0xacd   : > { %v4898_v25 = vmul.f32 %v6976_v30, %v6355_v24  ;;  %v4795_v33 = vpop.f32.mrb[103].mxu1  ;;  %v6370_v30 = vld [vmem:[#allocation40] ss:$0 sm:$0xff] }
 0xace   : > { %v4897_v26 = vmul.f32 %v6355_v24, %v4795_v33  ;;  %v5193_v24 = vld [vmem:[#allocation41] sm:$0xff] }
 0xacf   : > { %v4900_v42 = vadd.f32 %v4898_v25, %v4888_v28  ;;  %7024 = vmatprep.mubr.msk.f32.mxu1 %vm4290_vm3, %v5193_v24  ;;  %v6369_v28 = vld [vmem:[#allocation38] ss:$0 sm:$0xff] }
 0xad0   : > { %v4899_v46 = vadd.f32 %v4897_v26, %v4887_v29  ;;  %v6979_v31 = vpop.f32.mrb[104].mxu1 }
 0xad1   : > { %v4910_v47 = vmul.f32 %v6979_v31, %v6356_v27  ;;  %v4805_v41 = vpop.f32.mrb[105].mxu1 }
 0xad2   : > { %v4909_v39 = vmul.f32 %v6356_v27, %v4805_v41  ;;  %v5194_v41 = vld [vmem:[#allocation41 + $0x8] sm:$0xff] }
 0xad3   : > { %v4912_v36 = vadd.f32 %v4910_v47, %v4900_v42 }
 0xad4   : > { %v4911_v48 = vadd.f32 %v4909_v39, %v4899_v46  ;;  %v6982_v49 = vpop.f32.mrb[106].mxu1  ;;  %v5195_v39 = vld [vmem:[#allocation41 + $0x10] sm:$0xff] }
 0xad5   : > { %v4922_v50 = vmul.f32 %v6982_v49, %v6357_v32  ;;  %v4815_v57 = vpop.f32.mrb[107].mxu1  ;;  %v5199_v49 = vld [vmem:[#allocation41 + $0x30] sm:$0xff] }
 0xad6   : > { %v4921_v58 = vmul.f32 %v6357_v32, %v4815_v57  ;;  %v5196_v32 = vld [vmem:[#allocation41 + $0x18] sm:$0xff]  ;;  %v5201_v57 = vld [vmem:[#allocation41 + $0x40] sm:$0xff] }
 0xad7   : > { %v4924_v55 = vadd.f32 %v4922_v50, %v4912_v36  ;;  %v5197_v36 = vld [vmem:[#allocation41 + $0x20] sm:$0xff]  ;;  %v5200_v50 = vld [vmem:[#allocation41 + $0x38] sm:$0xff] }
 0xad8   : > { %v4923_v56 = vadd.f32 %v4921_v58, %v4911_v48  ;;  %v6985_v1 = vpop.f32.mrb[108].mxu1  ;;  %v5198_v48 = vld [vmem:[#allocation41 + $0x28] sm:$0xff] }
 0xad9   : > { %v4934_v2 = vmul.f32 %v6985_v1, %v6358_v59  ;;  %v4825_v3 = vpop.f32.mrb[109].mxu1  ;;  %v5202_v58 = vld [vmem:[#allocation41 + $0x48] sm:$0xff] }
 0xada   : > { %v4933_v6 = vmul.f32 %v6358_v59, %v4825_v3  ;;  %v5203_v59 = vld [vmem:[#allocation41 + $0x50] sm:$0xff]  ;;  %v5206_v1 = vld [vmem:[#allocation41 + $0x68] sm:$0xff]  ;;  %v5208_v3 = vld [vmem:[#allocation41 + $0x78] sm:$0xff] }
 0xadb   : > { %v4936_v5 = vadd.f32 %v4934_v2, %v4924_v55  ;;  %v5204_v55 = vld [vmem:[#allocation41 + $0x58] sm:$0xff]  ;;  %v5207_v2 = vld [vmem:[#allocation41 + $0x70] sm:$0xff] }
 0xadc   : > { %v4935_v35 = vadd.f32 %v4933_v6, %v4923_v56  ;;  %v6988_v38 = vpop.f32.mrb[110].mxu1  ;;  %v5205_v56 = vld [vmem:[#allocation41 + $0x60] sm:$0xff] }
 0xadd   : > { %v4946_v7 = vmul.f32 %v6988_v38, %v6359_v4  ;;  %v4835_v34 = vpop.f32.mrb[111].mxu1  ;;  %v5209_v6 = vld [vmem:[#allocation41 + $0x80] sm:$0xff] }
 0xade   : > { %v4945_v37 = vmul.f32 %v6359_v4, %v4835_v34  ;;  %v5210_v4 = vld [vmem:[#allocation41 + $0x88] sm:$0xff]  ;;  %v5550_v34 = vld [vmem:[#allocation47 + $0x18] sm:$0xff] }
 0xadf   : > { %v4948_v9 = vadd.f32 %v4946_v7, %v4936_v5  ;;  %v5547_v5 = vld [vmem:[#allocation47] sm:$0xff]  ;;  %v5549_v7 = vld [vmem:[#allocation47 + $0x10] sm:$0xff] }
 0xae0   : > { %v4947_v10 = vadd.f32 %v4945_v37, %v4935_v35  ;;  %v6991_v43 = vpop.f32.mrb[112].mxu1  ;;  %v5548_v35 = vld [vmem:[#allocation47 + $0x8] sm:$0xff]  ;;  %v7194_v37 = vpack.c.bf16 %v5550_v34, %v5549_v7 }
 0xae1   : > { %v4958_v44 = vmul.f32 %v6991_v43, %v6360_v8  ;;  %v4845_v11 = vpop.f32.mrb[113].mxu1  ;;  %v7190_v38 = vpack.c.bf16 %v5548_v35, %v5547_v5  ;;  %v5553_v43 = vld [vmem:[#allocation47 + $0x30] sm:$0xff]  ;;  %v6396_v35 = vld [vmem:[#allocation43 + $0x7] ss:$0 sm:$0xff] }
 0xae2   : > { %v4957_v45 = vmul.f32 %v6360_v8, %v4845_v11  ;;  %v5551_v8 = vld [vmem:[#allocation47 + $0x20] sm:$0xff] }
 0xae3   : > { %v4960_v52 = vadd.f32 %v4958_v44, %v4948_v9  ;;  %v5552_v9 = vld [vmem:[#allocation47 + $0x28] sm:$0xff]  ;;  %v5554_v44 = vld [vmem:[#allocation47 + $0x38] sm:$0xff] }
 0xae4   : > { %v4959_v53 = vadd.f32 %v4957_v45, %v4947_v10  ;;  %v7198_v10 = vpack.c.bf16 %v5552_v9, %v5551_v8  ;;  %v7202_v11 = vpack.c.bf16 %v5554_v44, %v5553_v43  ;;  %v5556_v45 = vld [vmem:[#allocation47 + $0x48] sm:$0xff] }
 0xae5   : > { %v4969_v54 = vmul.f32 %v6361_v40, %v4960_v52 }
 0xae6   : > { %v4968_v12 = vmul.f32 %v6361_v40, %v4959_v53  ;;  %v5555_v40 = vld [vmem:[#allocation47 + $0x40] sm:$0xff]  ;;  %v5558_v53 = vld [vmem:[#allocation47 + $0x58] sm:$0xff] }
 0xae7   : > { %v4978_v13 = vadd.f32 %v6362_v51, %v4969_v54  ;;  %v7206_v52 = vpack.c.bf16 %v5556_v45, %v5555_v40 }
 0xae8   : > { %v4977_v14 = vadd.f32 %v6362_v51, %v4968_v12  ;;  %v5557_v51 = vld [vmem:[#allocation47 + $0x50] sm:$0xff] }
 0xae9   : > { %v4980_v0 = vmax.f32 %v4978_v13, 0.0  ;;  %v7210_v54 = vpack.c.bf16 %v5558_v53, %v5557_v51 }
 0xaea   : > { %v4979_v61 = vmax.f32 %v4977_v14, 0.0  ;;  %v6389_v14 = vld [vmem:[#allocation43] ss:$0 sm:$0xff] }
 0xaec   : > { %7008 = vmatprep.mubr.msk.f32.mxu0 %vm3393_vm2, %v4979_v61  ;;  %v6390_v61 = vld [vmem:[#allocation43 + $0x1] ss:$0 sm:$0xff] }
 0xaed   : > { %7009 = vmatmul.mubr.msk.f32.vlgmr.msra.gmra.mrb[144].mxu0 %vm3393_vm2, %v4980_v0 }
 0xaee   : > { %7185 = vmatpush3.bf16.msra.mxu0 %v7182_v63 }
 0xaef   : > { %7015 = vmatprep.subr.mxu0 %v5090_v16 }
 0xaf2   : > { %7016 = vmatpush3.msra.mxu0 %v5090_v16 }
 0xaf3   : > { %7191 = vmatprep.subr.bf16.mxu0 %v7190_v38 }
 0xbc0   : > { %v7010_v62 = vpop.f32.mrb[144].mxu0 }
 0xbc1   : > { %v5078_v18 = vmul.f32 %v7010_v62, %v6365_v17  ;;  %v5061_v22 = vpop.f32.mrb[145].mxu0  ;;  %v6391_v62 = vld [vmem:[#allocation43 + $0x2] ss:$0 sm:$0xff] }
 0xbc2   : > { %v5077_v23 = vmul.f32 %v6365_v17, %v5061_v22 }
 0xbc3   : > { %v9855_v20 = vadd.f32 %v6366_v21, %v5078_v18 }
 0xbc4   : > { %v9853_v19 = vadd.f32 %v6366_v21, %v5077_v23 }
 0xbc6   : > { %7017 = vmatprep.mubr.msk.f32.mxu0 %vm5091_vm4, %v9853_v19 }
 0xbc7   : > { %7018 = vmatmul.mubr.msk.f32.vlgmr.msra.gmra.mrb[146].mxu0 %vm5091_vm4, %v9855_v20 }
 0xbc8   : > { %7193 = vmatpush3.bf16.msra.mxu0 %v7190_v38 }
 0xbc9   : > { %7195 = vmatprep.subr.bf16.mxu0 %v7194_v37 }
 0xbcc   : > { %7197 = vmatpush3.bf16.msra.mxu0 %v7194_v37 }
 0xbcd   : > { %7199 = vmatprep.subr.bf16.mxu0 %v7198_v10 }
 0xbd0   : > { %7201 = vmatpush3.bf16.msra.mxu0 %v7198_v10  ;;  %v6397_v10 = vld [vmem:[#allocation43 + $0x8] ss:$0 sm:$0xff] }
 0xbd1   : > { %7203 = vmatprep.subr.bf16.mxu0 %v7202_v11 }
 0xbd4   : > { %7205 = vmatpush3.bf16.msra.mxu0 %v7202_v11 }
 0xbd5   : > { %7207 = vmatprep.subr.bf16.mxu0 %v7206_v52 }
 0xbd8   : > { %7209 = vmatpush3.bf16.msra.mxu0 %v7206_v52  ;;  %v6398_v52 = vld [vmem:[#allocation44] ss:$0 sm:$0xff] }
 0xbd9   : > { %7211 = vmatprep.subr.bf16.mxu0 %v7210_v54 }
 0xbdc   : > { %7213 = vmatpush3.bf16.msra.mxu0 %v7210_v54  ;;  %v6399_v54 = vld [vmem:[#allocation46] ss:$0 sm:$0xff] }
 0xc9a   : > { %v7019_v29 = vpop.f32.mrb[146].mxu0 }
 0xc9b   : > { %v5181_v25 = vmul.f32 %v7019_v29, %v6369_v28  ;;  %v5164_v33 = vpop.f32.mrb[147].mxu0  ;;  %v6392_v29 = vld [vmem:[#allocation43 + $0x3] ss:$0 sm:$0xff] }
 0xc9c   : > { %v5180_v26 = vmul.f32 %v6369_v28, %v5164_v33 }
 0xc9d   : > { %v5190_v27 = vadd.f32 %v6370_v30, %v5181_v25 }
 0xc9e   : > { %v5189_v42 = vadd.f32 %v6370_v30, %v5180_v26 }
 0xc9f   : > { %v5192_v46 = vmax.f32 %v5190_v27, 0.0 }
 0xca0   : > { %v5191_v31 = vmax.f32 %v5189_v42, 0.0 }
 0xca2   : > { %v7186_v47 = vpack.c.bf16 %v5192_v46, %v5191_v31  ;;  %v6393_v46 = vld [vmem:[#allocation43 + $0x4] ss:$0 sm:$0xff] }
 0xca4   : > { %7187 = vmatprep.subr.bf16.mxu1 %v7186_v47 }
 0xca5   : > { %7189 = vmatpush3.bf16.msra.mxu1 %v7186_v47 }
 0xca8   : > { %7025 = vmatmul.mubr.msk.f32.vlgmr.msra.gmra.mrb[114].mxu1 %vm4290_vm3, %v5194_v41 }
 0xca9   : > { %7027 = vmatprep.mubr.msk.f32.mxu1 %vm4290_vm3, %v5195_v39 }
 0xcac   : > { %7028 = vmatmul.mubr.msk.f32.gmra.mrb[116].mxu1 %vm4290_vm3, %v5196_v32 }
 0xcad   : > { %7030 = vmatprep.mubr.msk.f32.mxu1 %vm4290_vm3, %v5197_v36 }
 0xcb0   : > { %7031 = vmatmul.mubr.msk.f32.gmra.mrb[118].mxu1 %vm4290_vm3, %v5198_v48  ;;  %v6394_v48 = vld [vmem:[#allocation43 + $0x5] ss:$0 sm:$0xff] }
 0xcb1   : > { %7033 = vmatprep.mubr.msk.f32.mxu1 %vm4290_vm3, %v5199_v49 }
 0xcb4   : > { %7034 = vmatmul.mubr.msk.f32.gmra.mrb[120].mxu1 %vm4290_vm3, %v5200_v50 }
 0xcb5   : > { %7036 = vmatprep.mubr.msk.f32.mxu1 %vm4290_vm3, %v5201_v57 }
 0xcb8   : > { %7037 = vmatmul.mubr.msk.f32.gmra.mrb[122].mxu1 %vm4290_vm3, %v5202_v58 }
 0xcb9   : > { %7039 = vmatprep.mubr.msk.f32.mxu1 %vm4290_vm3, %v5203_v59 }
 0xcbc   : > { %7040 = vmatmul.mubr.msk.f32.gmra.mrb[124].mxu1 %vm4290_vm3, %v5204_v55 }
 0xcbd   : > { %7042 = vmatprep.mubr.msk.f32.mxu1 %vm4290_vm3, %v5205_v56  ;;  %v6395_v56 = vld [vmem:[#allocation43 + $0x6] ss:$0 sm:$0xff] }
 0xcc0   : > { %7043 = vmatmul.mubr.msk.f32.gmra.mrb[126].mxu1 %vm4290_vm3, %v5206_v1 }
 0xcc1   : > { %7045 = vmatprep.mubr.msk.f32.mxu1 %vm4290_vm3, %v5207_v2 }
 0xcc4   : > { %7046 = vmatmul.mubr.msk.f32.gmra.mrb[128].mxu1 %vm4290_vm3, %v5208_v3 }
 0xcc5   : > { %7048 = vmatprep.mubr.msk.f32.mxu1 %vm4290_vm3, %v5209_v6 }
 0xcc8   : > { %7049 = vmatmul.mubr.msk.f32.gmra.mrb[130].mxu1 %vm4290_vm3, %v5210_v4 }
 0xd7b   : > { %v7026_v12 = vpop.f32.mrb[114].mxu1 }
 0xd7c   : > { %v5331_v13 = vpop.f32.mrb[115].mxu1  ;;  %v5428_v15 = vmul.f32 %v7026_v12, %v6389_v14 }
 0xd7d   : > { %v5427_v16 = vmul.f32 %v6389_v14, %v5331_v13 }
 0xd7f   : > { %v7029_v0 = vpop.f32.mrb[116].mxu1 }
 0xd80   : > { %v5440_v60 = vmul.f32 %v7029_v0, %v6390_v61  ;;  %v5341_v63 = vpop.f32.mrb[117].mxu1 }
 0xd81   : > { %v5439_v17 = vmul.f32 %v6390_v61, %v5341_v63  ;;  %v6402_v63 = vld [vmem:[#allocation49] ss:$0 sm:$0xff] }
 0xd82   : > { %v5442_v18 = vadd.f32 %v5440_v60, %v5428_v15 }
 0xd83   : > { %v5441_v21 = vadd.f32 %v5439_v17, %v5427_v16  ;;  %v7032_v22 = vpop.f32.mrb[118].mxu1  ;;  %v6403_v17 = vld [vmem:[#allocation50] ss:$0 sm:$0xff] }
 0xd84   : > { %v5452_v23 = vmul.f32 %v7032_v22, %v6391_v62  ;;  %v5351_v24 = vpop.f32.mrb[119].mxu1 }
 0xd85   : > { %v5451_v28 = vmul.f32 %v6391_v62, %v5351_v24 }
 0xd86   : > { %v5454_v30 = vadd.f32 %v5452_v23, %v5442_v18 }
 0xd87   : > { %v5453_v25 = vadd.f32 %v5451_v28, %v5441_v21  ;;  %v7035_v33 = vpop.f32.mrb[120].mxu1 }
 0xd88   : > { %v5464_v26 = vmul.f32 %v7035_v33, %v6392_v29  ;;  %v5361_v27 = vpop.f32.mrb[121].mxu1 }
 0xd89   : > { %v5463_v42 = vmul.f32 %v6392_v29, %v5361_v27 }
 0xd8a   : > { %v5466_v31 = vadd.f32 %v5464_v26, %v5454_v30 }
 0xd8b   : > { %v5465_v47 = vadd.f32 %v5463_v42, %v5453_v25  ;;  %v7038_v41 = vpop.f32.mrb[122].mxu1 }
 0xd8c   : > { %v5476_v39 = vmul.f32 %v7038_v41, %v6393_v46  ;;  %v5371_v32 = vpop.f32.mrb[123].mxu1 }
 0xd8d   : > { %v5475_v36 = vmul.f32 %v6393_v46, %v5371_v32 }
 0xd8e   : > { %v5478_v49 = vadd.f32 %v5476_v39, %v5466_v31 }
 0xd8f   : > { %v5477_v50 = vadd.f32 %v5475_v36, %v5465_v47  ;;  %v7041_v57 = vpop.f32.mrb[124].mxu1 }
 0xd90   : > { %v5488_v58 = vmul.f32 %v7041_v57, %v6394_v48  ;;  %v5381_v59 = vpop.f32.mrb[125].mxu1 }
 0xd91   : > { %v5487_v55 = vmul.f32 %v6394_v48, %v5381_v59 }
 0xd92   : > { %v5490_v1 = vadd.f32 %v5488_v58, %v5478_v49 }
 0xd93   : > { %v5489_v2 = vadd.f32 %v5487_v55, %v5477_v50  ;;  %v7044_v3 = vpop.f32.mrb[126].mxu1 }
 0xd94   : > { %v5500_v6 = vmul.f32 %v7044_v3, %v6395_v56  ;;  %v5391_v4 = vpop.f32.mrb[127].mxu1 }
 0xd95   : > { %v5499_v5 = vmul.f32 %v6395_v56, %v5391_v4 }
 0xd96   : > { %v5502_v38 = vadd.f32 %v5500_v6, %v5490_v1 }
 0xd97   : > { %v5501_v7 = vadd.f32 %v5499_v5, %v5489_v2  ;;  %v7047_v34 = vpop.f32.mrb[128].mxu1 }
 0xd98   : > { %v5512_v37 = vmul.f32 %v7047_v34, %v6396_v35  ;;  %v5401_v8 = vpop.f32.mrb[129].mxu1 }
 0xd99   : > { %v5511_v9 = vmul.f32 %v6396_v35, %v5401_v8 }
 0xd9a   : > { %v5514_v43 = vadd.f32 %v5512_v37, %v5502_v38 }
 0xd9b   : > { %v5513_v44 = vadd.f32 %v5511_v9, %v5501_v7  ;;  %v7050_v11 = vpop.f32.mrb[130].mxu1 }
 0xd9c   : > { %v5524_v40 = vmul.f32 %v7050_v11, %v6397_v10  ;;  %v5411_v45 = vpop.f32.mrb[131].mxu1 }
 0xd9d   : > { %v5523_v51 = vmul.f32 %v6397_v10, %v5411_v45 }
 0xd9e   : > { %v5526_v53 = vadd.f32 %v5524_v40, %v5514_v43 }
 0xd9f   : > { %v5525_v12 = vadd.f32 %v5523_v51, %v5513_v44 }
 0xda0   : > { %v5535_v13 = vmul.f32 %v6398_v52, %v5526_v53 }
 0xda1   : > { %v5534_v14 = vmul.f32 %v6398_v52, %v5525_v12 }
 0xda2   : > { %v5544_v61 = vadd.f32 %v6399_v54, %v5535_v13 }
 0xda3   : > { %v5543_v0 = vadd.f32 %v6399_v54, %v5534_v14 }
 0xda4   : > { %v5546_v60 = vmax.f32 %v5544_v61, 0.0 }
 0xda5   : > { %v5545_v15 = vmax.f32 %v5543_v0, 0.0 }
 0xda7   : > { %7075 = vmatprep.mubr.msk.f32.mxu0 %vm5559_vm5, %v5545_v15 }
 0xda8   : > { %7076 = vmatmul.mubr.msk.f32.vlgmr.msra.gmra.mrb[148].mxu0 %vm5559_vm5, %v5546_v60 }
 0xe7b   : > { %v7077_v16 = vpop.f32.mrb[148].mxu0 }
 0xe7c   : > { %v5649_v62 = vmul.f32 %v7077_v16, %v6402_v63  ;;  %v5632_v18 = vpop.f32.mrb[149].mxu0 }
 0xe7d   : > { %v5648_v21 = vmul.f32 %v6402_v63, %v5632_v18 }
 0xe7e   : > { %v5658_v22 = vadd.f32 %v6403_v17, %v5649_v62 }
 0xe7f   : > { %v5657_v23 = vadd.f32 %v6403_v17, %v5648_v21 }
 0xe80   : > { %v5660_v24 = vadd.f32 %v5658_v22, %v9855_v20 }
 0xe81   : > { %v5659_v28 = vadd.f32 %v5657_v23, %v9853_v19 }
 0xe82   : > { %5662 = vst.msk [vmem:[%s1418_s7 + $0x8] sm:$0xff] %vm5091_vm4, %v5660_v24 }
 0xe83   : > { %5661 = vst.msk [vmem:[%s1418_s7] sm:$0xff] %vm5091_vm4, %v5659_v28 }
 0xe84   : > { %8588 = shalt.err (!%p8585_p1)
}
 0xe85   : > { %s8589_s9 = scalar_lea.hbm %s9883_s6, 256  ;;  %s8593_s26 = scalar_lea.hbm %s10082_s13, 512 }
 0xe86   : > { %p8590_p13 = scmp.ne.s32.totalorder %s9883_s6, %s8589_s9  ;;  %p8594_p2 = scmp.lt.u32.totalorder %s9883_s6, %s10082_s13 }
 0xe87   : > { %p8595_p8 = scmp.lt.u32.totalorder %s8593_s26, %s8589_s9  ;;  %p8597_p3 = scmp.lt.u32.totalorder %s8589_s9, %s9883_s6 }
 0xe88   : > { %p8591_p6 = pnand %p8590_p13, %p10083_p4 }
 0xe89   : > { %p8596_p9 = por %p8595_p8, %p8594_p2 }
 0xe8a   : > { %p8592_p0 = pneg %p8591_p6 }
 0xe8b   : > { %p8598_p11 = por %p8597_p3, %p8596_p9 }
 0xe8d   : > { %p8599_p12 = pnand %p8598_p11, %p8592_p0 }
 0xe8f   : > { %8602 = shalt.err (!%p8599_p12)
}
 0xe90   : > { %s8780_s23 = smov 128   ;;  %s8781_s7 = smov 8  }
 0xe91   : > { %7404 = dma.vmem_to_hbm [thread:$0]  (%p10083_p4), %s9885_s14, 256, %s9883_s6, %s5664_s27, %s8780_s23, %s8780_s23, %s8781_s7  }
 0xe92 PF: > { %s5692_s15 = sand.u32 1, %s8693_s0   ;;  %p10084_p5 = scmp.ne.s32.totalorder %s10046_s22, 0 }
 0xe93   : > { %p10085_p7 = scmp.ge.s32.totalorder %s8705_s2, 2  ;;  %s5693_s10 = scalar_lea.sflag [#allocation4], %s5692_s15 }
 0xe95   : > { %p7505_p10 = pnand %p10085_p7, %p10084_p5 }
 0xe97   : > { %8688 = dma.done.wait (!%p7505_p10), %s5693_s10, 256  }
 0xe98   : > { %8690 = vsyncadd (!%p7505_p10), %s5693_s10, 4294967040  ;;  %p94_p1 = scmp.ge.s32.totalorder %s9373_s8, 4   ;;  %s10086_s0 = smov %s8697_s28 }
 0xe99   : > { %s10087_s28 = smov %s8701_s1  ;;  %s10088_s1 = smov %s9384_s12 }
 0xe9a   : > { %s10089_s2 = smov %s9373_s8  ;;  %96 = sbr.rel (!%p94_p1) target bundleno = 85 (0x55), region = 381 }
 0xea1   :  { %5698 = vsyncpa [#allocation3], 1 }
 0xea2   :  { %5700 = vsyncpa [#allocation3 + $0x1], 1 }
 0xea3   :  { %5701 = vsyncpa [#allocation6], 1 }
 0xea4   :  { %5702 = vsyncpa [#allocation9], 1 }
 0xea5   :  { %5703 = vsyncpa [#allocation12], 1 }
 0xea6   :  { %5704 = vsyncpa [#allocation15], 1 }
 0xea7   :  { %5705 = vsyncpa [#allocation18], 1 }
 0xea8   :  { %5706 = vsyncpa [#allocation21], 1 }
 0xea9   :  { %5707 = vsyncpa [#allocation24], 1 }
 0xeaa   :  { %5708 = vsyncpa [#allocation27], 1 }
 0xeab   :  { %5709 = vsyncpa [#allocation30], 1 }
 0xeac   :  { %5710 = vsyncpa [#allocation33], 1 }
 0xead   :  { %5711 = vsyncpa [#allocation36], 1 }
 0xeae   :  { %5712 = vsyncpa [#allocation39], 1 }
 0xeaf   :  { %5713 = vsyncpa [#allocation42], 1 }
 0xeb0   :  { %5714 = vsyncpa [#allocation45], 1 }
 0xeb1   :  { %5715 = vsyncpa [#allocation48], 1 }
 0xeb2   :  { %5716 = vsyncpa [#allocation51], 1 }
 0xeb3   :  { %5717 = vsyncpa [#allocation4], 1 }
 0xeb4   :  { %5719 = vsyncpa [#allocation4 + $0x1], 1 }

</bundles_post_ra>
